<compile_context>
chip_gen: v5e
topology: v5e:2x2
jax: 0.10.0
libtpu: 0.0.40
codegen_flags: <defaults>
</compile_context>

<pallas_src>
import functools

import jax
import jax.numpy as jnp
from jax import lax
from jax.experimental import pallas as pl
from jax.experimental.pallas import tpu as pltpu

_TM = 256   # row tile (sublane axis)
_TN = 512   # column tile (lane axis -> unmasked, lane-dense output stores)


def _neg_key_kernel(neg_cutoff_sq, pos_i_ref, pos_jt_ref, brow_ref, bcol_ref,
                    key_ref):
    """One (TM, TN) tile of the fused negated-distance^2 / adjacency key.

    pos_i_ref:  (TM, D) f32  VMEM  (row block of pos)
    pos_jt_ref: (D, TN) f32  VMEM  (column block of pos, pre-transposed, lane-dense)
    brow_ref:   (TM, 1) i32  VMEM
    bcol_ref:   (1, TN) i32  VMEM  (lane-dense column batch ids)
    key_ref:    (TM, TN) f32 VMEM out:  -d2 where edge, -inf otherwise
    """
    pi = pos_i_ref[...]                      # (TM, D)
    pjt = pos_jt_ref[...]                    # (D, TN)
    tm, dim = pi.shape
    tn = pjt.shape[1]

    # -d2 accumulated directly from coordinate differences (3 broadcast FMAs
    # per pair on the VPU; avoids the Gram-matrix cancellation and the useless
    # K=3 MXU matmul).
    neg_d2 = None
    for c in range(dim):                     # static Python loop over D == 3
        diff = pi[:, c:c + 1] - pjt[c:c + 1, :]          # (TM,1)-(1,TN)->(TM,TN)
        term = diff * diff
        neg_d2 = -term if neg_d2 is None else neg_d2 - term

    same_batch = brow_ref[...] == bcol_ref[...]          # (TM,1)==(1,TN)->(TM,TN)
    mask = same_batch & (neg_d2 >= neg_cutoff_sq)        # d2 <= cutoff^2

    i0 = pl.program_id(0) * tm
    j0 = pl.program_id(1) * tn
    # Only tiles whose global row/col ranges overlap can contain i == j pairs;
    # every other tile skips the iota/compare work entirely.
    touches_diag = (i0 < j0 + tn) & (j0 < i0 + tm)

    @pl.when(touches_diag)
    def _():
        ri = lax.broadcasted_iota(jnp.int32, (tm, 1), 0) + i0
        ci = lax.broadcasted_iota(jnp.int32, (1, tn), 1) + j0
        key_ref[...] = jnp.where(mask & (ri != ci), neg_d2, -jnp.inf)

    @pl.when(jnp.logical_not(touches_diag))
    def _():
        key_ref[...] = jnp.where(mask, neg_d2, -jnp.inf)


def _neg_key_padded(pos, batch, cutoff):
    """Returns (n_pad_r, n_pad_c) f32: -d2 where a radius edge exists, -inf otherwise.

    Rows are padded to a multiple of _TM and columns to a multiple of _TN so the
    tile size never degrades; padded rows/columns are all -inf.
    """
    n, d = pos.shape
    n_pad_r = max(((n + _TM - 1) // _TM) * _TM, _TM)
    n_pad_c = max(((n + _TN - 1) // _TN) * _TN, _TN)

    pos_f = pos.astype(jnp.float32)
    pos_rows = jnp.zeros((n_pad_r, d), jnp.float32).at[:n].set(pos_f)
    pos_cols_t = jnp.zeros((d, n_pad_c), jnp.float32).at[:, :n].set(pos_f.T)

    b = batch.astype(jnp.int32)
    # Distinct negative sentinels so padded rows/cols never match anything
    # (assumes real batch ids are non-negative, as in PyG).
    brow = jnp.full((n_pad_r, 1), -1, jnp.int32).at[:n, 0].set(b)
    bcol = jnp.full((1, n_pad_c), -2, jnp.int32).at[0, :n].set(b)

    neg_cutoff_sq = -(float(cutoff) * float(cutoff))      # Python float -> literal

    neg_key = pl.pallas_call(
        functools.partial(_neg_key_kernel, neg_cutoff_sq),
        out_shape=jax.ShapeDtypeStruct((n_pad_r, n_pad_c), jnp.float32),
        grid=(n_pad_r // _TM, n_pad_c // _TN),
        in_specs=[
            pl.BlockSpec((_TM, d), lambda i, j: (i, 0)),   # pos row block
            pl.BlockSpec((d, _TN), lambda i, j: (0, j)),   # pos^T column block
            pl.BlockSpec((_TM, 1), lambda i, j: (i, 0)),   # batch row block
            pl.BlockSpec((1, _TN), lambda i, j: (0, j)),   # batch col block
        ],
        out_specs=pl.BlockSpec((_TM, _TN), lambda i, j: (i, j)),
        compiler_params=pltpu.CompilerParams(
            dimension_semantics=("parallel", "parallel")),
    )(pos_rows, pos_cols_t, brow, bcol)
    return neg_key


def radius_interaction_graph(pos, batch, cutoff=10.0, max_num_neighbors=32):
    """Returns (edge_index[2, E_max] i32, edge_weight[E_max] f32, edge_mask[E_max] bool).

    E_max = N * min(max_num_neighbors, N) + N  (radius edges + self loops).
    Padded (invalid) radius-edge slots have edge_mask=False, indices 0, weight 0.
    """
    n = pos.shape[0]
    neg_key = _neg_key_padded(pos, batch, cutoff)          # (n_pad_r, n_pad_c)

    k = min(max_num_neighbors, n)
    # Nearest-first neighbor cap: top_k on the already-negated key (largest ==
    # nearest).  Runs on the padded array (no N x N slice copy); only the small
    # (n_pad_r, K) result is sliced back to [:n].
    # TODO(synk): fuse the per-row top-K into the Pallas kernel (column grid
    # axis as an "arbitrary" reduction with a (TM, K) running-best scratch) to
    # cut HBM traffic from O(N^2) to O(N*K); Mosaic has no in-kernel sort/top_k
    # primitive today, so the merge step is left to XLA.
    neg_vals, nbr = lax.top_k(neg_key, k)                  # (n_pad_r, K)
    neg_vals = neg_vals[:n]
    nbr = nbr[:n]

    valid = jnp.isfinite(neg_vals)                         # (N, K)
    d2_sel = jnp.where(valid, -neg_vals, 0.0)
    w = jnp.sqrt(jnp.maximum(d2_sel, 0.0))

    centers = jnp.broadcast_to(jnp.arange(n, dtype=jnp.int32)[:, None], (n, k))

    # PyG radius_graph (flow='source_to_target'): row = source (neighbor),
    # col = target (center).  Distance is symmetric so edge_weight matches.
    row_r = jnp.where(valid, nbr.astype(jnp.int32), 0).reshape(-1)
    col_r = jnp.where(valid, centers, 0).reshape(-1)
    w_r = jnp.where(valid, w, 0.0).reshape(-1)
    m_r = valid.reshape(-1)

    # add_self_loops: append (i, i) edges with weight 0 (pos[i] - pos[i] = 0).
    loop = jnp.arange(n, dtype=jnp.int32)
    row = jnp.concatenate([row_r, loop])
    col = jnp.concatenate([col_r, loop])
    edge_weight = jnp.concatenate([w_r, jnp.zeros((n,), jnp.float32)])
    edge_mask = jnp.concatenate([m_r, jnp.ones((n,), dtype=bool)])
    edge_index = jnp.stack([row, col], axis=0)
    return edge_index, edge_weight, edge_mask


def _reference_key(pos, batch, cutoff):
    diff = pos[:, None, :] - pos[None, :, :]
    d2 = jnp.sum(diff * diff, axis=-1)
    same = batch[:, None] == batch[None, :]
    eye = jnp.eye(pos.shape[0], dtype=bool)
    mask = same & (~eye) & (d2 <= cutoff * cutoff)
    return jnp.where(mask, d2, jnp.inf)


if __name__ == "__main__":
    rng = jax.random.PRNGKey(0)
    N = 16                                    # number of nodes
    pos = jax.random.uniform(rng, (N, 3), dtype=jnp.float32, minval=0.0,
                             maxval=2.0)
    batch = jnp.concatenate([jnp.zeros((N // 2,), jnp.int32),
                             jnp.ones((N - N // 2,), jnp.int32)])
    cutoff = 1.0
    max_num_neighbors = 32

    edge_index, edge_weight, edge_mask = radius_interaction_graph(
        pos, batch, cutoff=cutoff, max_num_neighbors=max_num_neighbors)
    jax.block_until_ready((edge_index, edge_weight, edge_mask))

    # Sanity check of the Pallas hot path against a pure-JAX reference.
    key_k = -_neg_key_padded(pos, batch, cutoff)[:N, :N]   # d2 or +inf
    key_r = _reference_key(pos, batch, cutoff)
    fin_k = jnp.isfinite(key_k)
    fin_r = jnp.isfinite(key_r)
    assert bool(jnp.all(fin_k == fin_r)), "adjacency mismatch"
    assert jnp.allclose(jnp.where(fin_k, key_k, 0.0),
                        jnp.where(fin_r, key_r, 0.0), atol=1e-5), "d2 mismatch"

    k = min(max_num_neighbors, N)
    assert edge_index.shape == (2, N * k + N)
    assert edge_weight.shape == (N * k + N,)
    assert edge_mask.shape == (N * k + N,)
    # All valid radius edges must be within the cutoff; self loops have weight 0.
    radius_w = edge_weight[:N * k]
    radius_m = edge_mask[:N * k]
    assert bool(jnp.all(jnp.where(radius_m, radius_w <= cutoff + 1e-5, True)))
    assert bool(jnp.all(edge_weight[N * k:] == 0.0))
    # All valid radius-edge indices must be in range and not self edges.
    r_idx = edge_index[:, :N * k]
    assert bool(jnp.all(jnp.where(radius_m, r_idx[0] != r_idx[1], True)))
    assert bool(jnp.all((r_idx >= 0) & (r_idx < N)))

    print("KERNEL_OK")
</pallas_src>

<mosaic_0001>
module attributes {stable_mosaic.version = 11 : i64} {
  func.func @_neg_key_kernel(%arg0: i32, %arg1: i32, %arg2: memref<256x3xf32, #tpu.memory_space<vmem>>, %arg3: memref<3x512xf32, #tpu.memory_space<vmem>>, %arg4: memref<256x1xi32, #tpu.memory_space<vmem>>, %arg5: memref<1x512xi32, #tpu.memory_space<vmem>>, %arg6: memref<256x512xf32, #tpu.memory_space<vmem>>) attributes {dimension_semantics = [#tpu.dimension_semantics<parallel>, #tpu.dimension_semantics<parallel>], iteration_bounds = array<i64: 1, 1>, scalar_prefetch = 0 : i64, scratch_operands = 0 : i64, tpu.core_type = #tpu.core_type<tc>, window_params = [{transform_indices = @transform_0, window_bounds = array<i64: 256, 3>}, {transform_indices = @transform_1, window_bounds = array<i64: 3, 512>}, {transform_indices = @transform_2, window_bounds = array<i64: 256, 1>}, {transform_indices = @transform_3, window_bounds = array<i64: 1, 512>}, {transform_indices = @transform_4, window_bounds = array<i64: 256, 512>}]} {
    %c0 = arith.constant 0 : index
    %c0_0 = arith.constant 0 : index
    %0 = vector.load %arg2[%c0, %c0_0] : memref<256x3xf32, #tpu.memory_space<vmem>>, vector<256x3xf32>
    %c0_1 = arith.constant 0 : index
    %c0_2 = arith.constant 0 : index
    %1 = vector.load %arg3[%c0_1, %c0_2] : memref<3x512xf32, #tpu.memory_space<vmem>>, vector<3x512xf32>
    %2 = vector.extract_strided_slice %0 {offsets = [0, 0], sizes = [256, 1], strides = [1, 1]} : vector<256x3xf32> to vector<256x1xf32>
    %3 = vector.extract_strided_slice %1 {offsets = [0, 0], sizes = [1, 512], strides = [1, 1]} : vector<3x512xf32> to vector<1x512xf32>
    %4 = vector.broadcast %2 : vector<256x1xf32> to vector<256x512xf32>
    %5 = vector.broadcast %3 : vector<1x512xf32> to vector<256x512xf32>
    %6 = arith.subf %4, %5 : vector<256x512xf32>
    %7 = arith.mulf %6, %6 : vector<256x512xf32>
    %cst = arith.constant 0.000000e+00 : f32
    %8 = vector.broadcast %cst : f32 to vector<256x512xf32>
    %9 = arith.subf %8, %7 : vector<256x512xf32>
    %10 = vector.extract_strided_slice %0 {offsets = [0, 1], sizes = [256, 1], strides = [1, 1]} : vector<256x3xf32> to vector<256x1xf32>
    %11 = vector.extract_strided_slice %1 {offsets = [1, 0], sizes = [1, 512], strides = [1, 1]} : vector<3x512xf32> to vector<1x512xf32>
    %12 = vector.broadcast %10 : vector<256x1xf32> to vector<256x512xf32>
    %13 = vector.broadcast %11 : vector<1x512xf32> to vector<256x512xf32>
    %14 = arith.subf %12, %13 : vector<256x512xf32>
    %15 = arith.mulf %14, %14 : vector<256x512xf32>
    %16 = arith.subf %9, %15 : vector<256x512xf32>
    %17 = vector.extract_strided_slice %0 {offsets = [0, 2], sizes = [256, 1], strides = [1, 1]} : vector<256x3xf32> to vector<256x1xf32>
    %18 = vector.extract_strided_slice %1 {offsets = [2, 0], sizes = [1, 512], strides = [1, 1]} : vector<3x512xf32> to vector<1x512xf32>
    %19 = vector.broadcast %17 : vector<256x1xf32> to vector<256x512xf32>
    %20 = vector.broadcast %18 : vector<1x512xf32> to vector<256x512xf32>
    %21 = arith.subf %19, %20 : vector<256x512xf32>
    %22 = arith.mulf %21, %21 : vector<256x512xf32>
    %23 = arith.subf %16, %22 : vector<256x512xf32>
    %c0_3 = arith.constant 0 : index
    %c0_4 = arith.constant 0 : index
    %24 = vector.load %arg4[%c0_3, %c0_4] : memref<256x1xi32, #tpu.memory_space<vmem>>, vector<256x1xi32>
    %c0_5 = arith.constant 0 : index
    %c0_6 = arith.constant 0 : index
    %25 = vector.load %arg5[%c0_5, %c0_6] : memref<1x512xi32, #tpu.memory_space<vmem>>, vector<1x512xi32>
    %26 = vector.broadcast %24 : vector<256x1xi32> to vector<256x512xi32>
    %27 = vector.broadcast %25 : vector<1x512xi32> to vector<256x512xi32>
    %28 = arith.cmpi eq, %26, %27 : vector<256x512xi32>
    %cst_7 = arith.constant -1.000000e+00 : f32
    %29 = vector.broadcast %cst_7 : f32 to vector<256x512xf32>
    %30 = arith.cmpf oge, %23, %29 : vector<256x512xf32>
    %31 = arith.andi %28, %30 : vector<256x512xi1>
    %c256_i32 = arith.constant 256 : i32
    %32 = arith.muli %arg0, %c256_i32 : i32
    %c512_i32 = arith.constant 512 : i32
    %33 = arith.muli %arg1, %c512_i32 : i32
    %c512_i32_8 = arith.constant 512 : i32
    %34 = arith.addi %33, %c512_i32_8 : i32
    %35 = arith.cmpi slt, %32, %34 : i32
    %c256_i32_9 = arith.constant 256 : i32
    %36 = arith.addi %32, %c256_i32_9 : i32
    %37 = arith.cmpi slt, %33, %36 : i32
    %38 = arith.andi %35, %37 : i1
    %39 = arith.extui %38 : i1 to i32
    %c0_i32 = arith.constant 0 : i32
    %40 = arith.cmpi ne, %39, %c0_i32 : i32
    scf.if %40 {
      %44 = tpu.iota {dimensions = array<i32: 0>} : vector<256x1xi32>
      %45 = vector.broadcast %32 : i32 to vector<256x1xi32>
      %46 = arith.addi %44, %45 : vector<256x1xi32>
      %47 = tpu.iota {dimensions = array<i32: 1>} : vector<1x512xi32>
      %48 = vector.broadcast %33 : i32 to vector<1x512xi32>
      %49 = arith.addi %47, %48 : vector<1x512xi32>
      %50 = vector.broadcast %46 : vector<256x1xi32> to vector<256x512xi32>
      %51 = vector.broadcast %49 : vector<1x512xi32> to vector<256x512xi32>
      %52 = arith.cmpi ne, %50, %51 : vector<256x512xi32>
      %53 = arith.andi %31, %52 : vector<256x512xi1>
      %cst_11 = arith.constant 0xFF800000 : f32
      %54 = vector.broadcast %cst_11 : f32 to vector<256x512xf32>
      %55 = arith.select %53, %23, %54 : vector<256x512xi1>, vector<256x512xf32>
      %c0_12 = arith.constant 0 : index
      %c0_13 = arith.constant 0 : index
      %56 = vector.load %arg6[%c0_12, %c0_13] : memref<256x512xf32, #tpu.memory_space<vmem>>, vector<256x512xf32>
      tpu.vector_store %arg6[%c0_12, %c0_13], %55 {strides = array<i32>} : memref<256x512xf32, #tpu.memory_space<vmem>>, vector<256x512xf32>,
    } else {
    }
    %true = arith.constant true
    %41 = arith.xori %38, %true : i1
    %42 = arith.extui %41 : i1 to i32
    %c0_i32_10 = arith.constant 0 : i32
    %43 = arith.cmpi ne, %42, %c0_i32_10 : i32
    scf.if %43 {
      %cst_11 = arith.constant 0xFF800000 : f32
      %44 = vector.broadcast %cst_11 : f32 to vector<256x512xf32>
      %45 = arith.select %31, %23, %44 : vector<256x512xi1>, vector<256x512xf32>
      %c0_12 = arith.constant 0 : index
      %c0_13 = arith.constant 0 : index
      %46 = vector.load %arg6[%c0_12, %c0_13] : memref<256x512xf32, #tpu.memory_space<vmem>>, vector<256x512xf32>
      tpu.vector_store %arg6[%c0_12, %c0_13], %45 {strides = array<i32>} : memref<256x512xf32, #tpu.memory_space<vmem>>, vector<256x512xf32>,
    } else {
    }
    return
  }
  func.func @transform_0(%arg0: i32, %arg1: i32) -> (i32, i32) {
    %c0_i32 = arith.constant 0 : i32
    %c0_i32_0 = arith.constant 0 : i32
    return %arg0, %c0_i32 : i32, i32
  }
  func.func @transform_1(%arg0: i32, %arg1: i32) -> (i32, i32) {
    %c0_i32 = arith.constant 0 : i32
    %c0_i32_0 = arith.constant 0 : i32
    return %c0_i32, %arg1 : i32, i32
  }
  func.func @transform_2(%arg0: i32, %arg1: i32) -> (i32, i32) {
    %c0_i32 = arith.constant 0 : i32
    %c0_i32_0 = arith.constant 0 : i32
    return %arg0, %c0_i32 : i32, i32
  }
  func.func @transform_3(%arg0: i32, %arg1: i32) -> (i32, i32) {
    %c0_i32 = arith.constant 0 : i32
    %c0_i32_0 = arith.constant 0 : i32
    return %c0_i32, %arg1 : i32, i32
  }
  func.func @transform_4(%arg0: i32, %arg1: i32) -> (i32, i32) {
    %c0_i32 = arith.constant 0 : i32
    return %arg0, %arg1 : i32, i32
  }
}

</mosaic_0001>

<bundles_post_ra>
// kernel: tpu_custom_call.1
= control target key start
LH: loop header
LB: loop body
LE: loop exit
PB: predicated region body
PF: predicated region fallthrough
CT: control target
= control target key end

     0   :  { %v3108_v3 = vmov 1   ;;  %v6328_v4 = vmov 0   ;;  %s6321_s0 = inlined_call_operand.vmem [shape: f32[256,3], index: 0, kind: input, shape index: {}]   ;;  %s6322_s1 = inlined_call_operand.vmem [shape: f32[3,512], index: 1, kind: input, shape index: {}]   ;;  %s6323_s2 = inlined_call_operand.vmem [shape: s32[256,1], index: 2, kind: input, shape index: {}]   ;;  %s6324_s3 = inlined_call_operand.vmem [shape: s32[1,512], index: 3, kind: input, shape index: {}]   ;;  %s6325_s4 = inlined_call_operand.hbm [shape: f32[256,512], index: 4, kind: output, shape index: {}]  }
   0x1   :  { %v3142_v0 = vld [vmem:[%s6321_s0 + $0x20] sm:$0xff]  ;;  %v3147_v1 = vld [vmem:[%s6321_s0 + $0x10] sm:$0xff]  ;;  %v3152_v2 = vld [vmem:[%s6321_s0 + $0x8] sm:$0xff]  ;;  %3059 = vset.pattern.permute.xlu0 %v3108_v3  ;;  %3057 = vset.pattern.permute.xlu2 %v6328_v4 }
   0x2   :  { %3056 = vset.pattern.permute.xlu1 %v6328_v4  ;;  %74 = vperm.xlu2 %3057, %v3142_v0  }
   0x3   :  { %64 = vperm.xlu1 %3056, %v3147_v1   ;;  %615 = vperm.xlu0 %3059, %v3152_v2  }
   0x4   :  { %9 = vsyncpa [#allocation3], 0  ;;  %v3163_v5 = vld [vmem:[%s6321_s0 + $0x28] sm:$0xff]  ;;  %v3168_v6 = vld [vmem:[%s6321_s0 + $0x18] sm:$0xff]  ;;  %v6326_v34 = vmov 2   ;;  %s3038_s18 = sshll.u32 %s6325_s4, 4  ;;  %s3039_s18 = int_to_ptr.hbm [resolvable:$true] %s3038_s18 }
   0x5   :  { %v3173_v7 = vld [vmem:[%s6321_s0 + $0x30] sm:$0xff]  ;;  %v3181_v8 = vld [vmem:[%s6321_s0 + $0x40] sm:$0xff]  ;;  %v3186_v9 = vld [vmem:[%s6321_s0 + $0x38] sm:$0xff]  ;;  %s3112_s4 = smov 512   ;;  %s3113_s19 = smov 32  }
   0x6   :  { %6465 = vst [vmem:[#allocation5_spill] sm:$0xff] %v3181_v8  ;;  %v3191_v10 = vld [vmem:[%s6321_s0 + $0x48] sm:$0xff]  ;;  %v3199_v11 = vld [vmem:[%s6321_s0 + $0x58] sm:$0xff]  ;;  %v3204_v12 = vld [vmem:[%s6321_s0 + $0x50] sm:$0xff] }
   0x7   :  { %6466 = vst [vmem:[#allocation6_spill] sm:$0xff] %v3199_v11  ;;  %v3209_v13 = vld [vmem:[%s6321_s0 + $0x60] sm:$0xff]  ;;  %v3217_v14 = vld [vmem:[%s6321_s0 + $0x70] sm:$0xff]  ;;  %v3222_v15 = vld [vmem:[%s6321_s0 + $0x68] sm:$0xff] }
   0x8   :  { %6467 = vst [vmem:[#allocation7_spill] sm:$0xff] %v3204_v12  ;;  %v3227_v16 = vld [vmem:[%s6321_s0 + $0x78] sm:$0xff]  ;;  %v3235_v17 = vld [vmem:[%s6321_s0 + $0x88] sm:$0xff]  ;;  %v3240_v18 = vld [vmem:[%s6321_s0 + $0x80] sm:$0xff] }
   0x9   :  { %6468 = vst [vmem:[#allocation8_spill] sm:$0xff] %v3217_v14  ;;  %v3245_v19 = vld [vmem:[%s6321_s0 + $0x90] sm:$0xff]  ;;  %v3253_v20 = vld [vmem:[%s6321_s0 + $0xa0] sm:$0xff]  ;;  %v3258_v21 = vld [vmem:[%s6321_s0 + $0x98] sm:$0xff] }
   0xa   :  { %79 = vperm.xlu2 %3057, %v3163_v5   ;;  %6469 = vst [vmem:[#allocation9_spill] sm:$0xff] %v3222_v15  ;;  %v3263_v22 = vld [vmem:[%s6321_s0 + $0xa8] sm:$0xff]  ;;  %v3271_v23 = vld [vmem:[%s6321_s0 + $0xb8] sm:$0xff]  ;;  %v3276_v24 = vld [vmem:[%s6321_s0 + $0xb0] sm:$0xff] }
   0xb   :  { %69 = vperm.xlu1 %3056, %v3168_v6   ;;  %635 = vperm.xlu0 %3059, %v3173_v7   ;;  %6470 = vst [vmem:[#allocation10_spill] sm:$0xff] %v3227_v16  ;;  %v3281_v25 = vld [vmem:[%s6321_s0 + $0xc0] sm:$0xff]  ;;  %v3289_v26 = vld [vmem:[%s6321_s0 + $0xd0] sm:$0xff]  ;;  %v3294_v27 = vld [vmem:[%s6321_s0 + $0xc8] sm:$0xff] }
   0xc   :  { %6471 = vst [vmem:[#allocation11_spill] sm:$0xff] %v3245_v19  ;;  %v3299_v28 = vld [vmem:[%s6321_s0 + $0xd8] sm:$0xff]  ;;  %v3307_v29 = vld [vmem:[%s6321_s0 + $0xe8] sm:$0xff]  ;;  %v3312_v30 = vld [vmem:[%s6321_s0 + $0xe0] sm:$0xff] }
   0xd   :  { %v3317_v31 = vld [vmem:[%s6321_s0 + $0xf0] sm:$0xff]  ;;  %v3325_v32 = vld [vmem:[%s6321_s0 + $0xf8] sm:$0xff]  ;;  %v3330_v33 = vld [vmem:[%s6321_s0] sm:$0xff] }
   0xe   :  { %v3350_v38 = vld [vmem:[%s6322_s1] sm:$0x77]  ;;  %v3355_v39 = vld [vmem:[%s6322_s1 + $0x8] sm:$0x77] }
   0xf   :  { %6472 = vst [vmem:[#allocation12_spill] sm:$0xff] %v3350_v38  ;;  %v214_v43 = vperm.slane %v3350_v38, 0  ;;  %v215_v44 = vperm.slane %v3350_v38, 4  ;;  %v216_v45 = vperm.slane %v3355_v39, 0  ;;  %v217_v46 = vperm.slane %v3355_v39, 4 }
  0x10   :  { %6473 = vst [vmem:[#allocation13_spill] sm:$0xff] %v3355_v39  ;;  %v738_v56 = vperm.slane %v3350_v38, 1  ;;  %v739_v59 = vperm.slane %v3350_v38, 5  ;;  %v740_v60 = vperm.slane %v3355_v39, 1  ;;  %v741_v61 = vperm.slane %v3355_v39, 5 }
  0x11   :  { %v3368_v47 = vperm.slane %v214_v43, 0  ;;  %v3370_v48 = vperm.slane %v215_v44, 0  ;;  %v3372_v49 = vperm.slane %v216_v45, 0  ;;  %v3374_v50 = vperm.slane %v217_v46, 0 }
  0x12   :  { %94 = vperm.xlu2 %3057, %v3181_v8   ;;  %v3401_v43 = vperm.slane %v738_v56, 1  ;;  %v3405_v46 = vperm.slane %v739_v59, 1 }
  0x13   :  { %89 = vperm.xlu1 %3056, %v3186_v9   ;;  %647 = vperm.xlu0 %3059, %v3191_v10  }
  0x1a   :  { %109 = vperm.xlu2 %3057, %v3199_v11  }
  0x1b   :  { %104 = vperm.xlu1 %3056, %v3204_v12   ;;  %659 = vperm.xlu0 %3059, %v3209_v13  }
  0x22   :  { %124 = vperm.xlu2 %3057, %v3217_v14  }
  0x23   :  { %119 = vperm.xlu1 %3056, %v3222_v15   ;;  %671 = vperm.xlu0 %3059, %v3227_v16  }
  0x2a   :  { %139 = vperm.xlu2 %3057, %v3235_v17  }
  0x2b   :  { %134 = vperm.xlu1 %3056, %v3240_v18   ;;  %683 = vperm.xlu0 %3059, %v3245_v19  }
  0x32   :  { %154 = vperm.xlu2 %3057, %v3253_v20  }
  0x33   :  { %149 = vperm.xlu1 %3056, %v3258_v21   ;;  %695 = vperm.xlu0 %3059, %v3263_v22  }
  0x3a   :  { %169 = vperm.xlu2 %3057, %v3271_v23  }
  0x3b   :  { %164 = vperm.xlu1 %3056, %v3276_v24   ;;  %707 = vperm.xlu0 %3059, %v3281_v25  }
  0x42   :  { %184 = vperm.xlu2 %3057, %v3289_v26  }
  0x43   :  { %179 = vperm.xlu1 %3056, %v3294_v27   ;;  %719 = vperm.xlu0 %3059, %v3299_v28  }
  0x4a   :  { %199 = vperm.xlu2 %3057, %v3307_v29  }
  0x4b   :  { %194 = vperm.xlu1 %3056, %v3312_v30   ;;  %731 = vperm.xlu0 %3059, %v3317_v31  }
  0x52   :  { %3058 = vset.pattern.permute.xlu2 %v3108_v3 }
  0x53   :  { %209 = vperm.xlu1 %3056, %v3325_v32   ;;  %3062 = vset.pattern.permute.xlu0 %v6326_v34  ;;  %v3407_v34 = vperm.slane %v740_v60, 1 }
  0x54   :  { %1139 = vperm.xlu0 %3062, %v3152_v2   ;;  %611 = vperm.xlu2 %3058, %v3330_v33  }
  0x5b   :  { %3060 = vset.pattern.permute.xlu1 %v3108_v3 }
  0x5c   :  { %619 = vperm.xlu1 %3060, %v3147_v1   ;;  %1159 = vperm.xlu0 %3062, %v3173_v7   ;;  %v75_v35 = vpop.permute.xlu2 %74 }
  0x5d   :  { %623 = vperm.xlu2 %3058, %v3168_v6   ;;  %v242_v51 = vsub.f32 %v75_v35, %v3368_v47  ;;  %v243_v53 = vsub.f32 %v75_v35, %v3370_v48  ;;  %v244_v54 = vsub.f32 %v75_v35, %v3372_v49  ;;  %v245_v55 = vsub.f32 %v75_v35, %v3374_v50 }
  0x5f   :  { %v3393_v62 = vmul.f32 %v242_v51, %v242_v51  ;;  %v3395_v63 = vmul.f32 %v243_v53, %v243_v53  ;;  %v3397_v3 = vmul.f32 %v244_v54, %v244_v54  ;;  %v3399_v35 = vmul.f32 %v245_v55, %v245_v55 }
  0x60   :  { %v3412_v54 = vperm.slane %v741_v61, 1 }
  0x61   :  { %6474 = vst [vmem:[#allocation14_spill] sm:$0xff] %v3393_v62 }
  0x62   :  { %6475 = vst [vmem:[#allocation15_spill] sm:$0xff] %v3395_v63 }
  0x63   :  { %6476 = vst [vmem:[#allocation16_spill] sm:$0xff] %v3397_v3 }
  0x64   :  { %627 = vperm.xlu1 %3060, %v3142_v0   ;;  %1171 = vperm.xlu0 %3062, %v3191_v10   ;;  %v80_v36 = vpop.permute.xlu2 %79  ;;  %6477 = vst [vmem:[#allocation17_spill] sm:$0xff] %v3399_v35 }
  0x65   :  { %631 = vperm.xlu2 %3058, %v3163_v5   ;;  %v246_v44 = vsub.f32 %v80_v36, %v3368_v47  ;;  %v247_v45 = vsub.f32 %v80_v36, %v3370_v48  ;;  %v248_v4 = vsub.f32 %v80_v36, %v3372_v49  ;;  %v249_v51 = vsub.f32 %v80_v36, %v3374_v50 }
  0x67   :  { %v3437_v3 = vmul.f32 %v248_v4, %v248_v4 }
  0x6c   :  { %639 = vperm.xlu1 %3060, %v3186_v9   ;;  %1183 = vperm.xlu0 %3062, %v3209_v13   ;;  %v95_v37 = vpop.permute.xlu2 %94 }
  0x6d   :  { %643 = vperm.xlu2 %3058, %v3181_v8   ;;  %v258_v53 = vsub.f32 %v95_v37, %v3368_v47  ;;  %v259_v56 = vsub.f32 %v95_v37, %v3370_v48 }
  0x6f   :  { %v3441_v35 = vmul.f32 %v258_v53, %v258_v53 }
  0x74   :  { %651 = vperm.xlu1 %3060, %v3204_v12   ;;  %1195 = vperm.xlu0 %3062, %v3227_v16   ;;  %v110_v40 = vpop.permute.xlu2 %109 }
  0x75   :  { %655 = vperm.xlu2 %3058, %v3199_v11   ;;  %v3360_v41 = vpop.permute.xlu1 %64  ;;  %v3362_v42 = vpop.permute.xlu0 %615  ;;  %v270_v61 = vsub.f32 %v110_v40, %v3368_v47  ;;  %v271_v60 = vsub.f32 %v110_v40, %v3370_v48  ;;  %v272_v36 = vsub.f32 %v110_v40, %v3372_v49 }
  0x76   :  { %v235_v4 = vsub.f32 %v3360_v41, %v3370_v48 }
  0x77   :  { %v3452_v39 = vmul.f32 %v270_v61, %v270_v61 }
  0x78   :  { %v3480_v61 = vmul.f32 %v235_v4, %v235_v4 }
  0x79   :  { %6480 = vst [vmem:[#allocation20_spill] sm:$0xff] %v3452_v39 }
  0x7a   :  { %6485 = vst [vmem:[#allocation25_spill] sm:$0xff] %v3480_v61 }
  0x7c   :  { %663 = vperm.xlu1 %3060, %v3222_v15   ;;  %1207 = vperm.xlu0 %3062, %v3245_v19   ;;  %v3379_v52 = vpop.permute.xlu2 %124  ;;  %v261_v19 = vsub.f32 %v95_v37, %v3374_v50  ;;  %v3439_v15 = vmul.f32 %v249_v51, %v249_v51  ;;  %v236_v51 = vsub.f32 %v3360_v41, %v3372_v49 }
  0x7d   :  { %667 = vperm.xlu2 %3058, %v3217_v14   ;;  %v3386_v57 = vpop.permute.xlu1 %69  ;;  %v3388_v58 = vpop.permute.xlu0 %635  ;;  %v260_v14 = vsub.f32 %v95_v37, %v3372_v49  ;;  %v3431_v37 = vmul.f32 %v246_v44, %v246_v44  ;;  %v282_v53 = vsub.f32 %v3379_v52, %v3368_v47  ;;  %v283_v4 = vsub.f32 %v3379_v52, %v3370_v48 }
  0x7e   :  { %v3448_v44 = vmul.f32 %v261_v19, %v261_v19  ;;  %v3462_v19 = vmul.f32 %v271_v60, %v271_v60  ;;  %v3482_v38 = vmul.f32 %v236_v51, %v236_v51  ;;  %v238_v51 = vsub.f32 %v3386_v57, %v3368_v47 }
  0x7f   :  { %v3446_v63 = vmul.f32 %v260_v14, %v260_v14  ;;  %v3522_v39 = vmul.f32 %v283_v4, %v283_v4 }
  0x80   :  { %6479 = vst [vmem:[#allocation19_spill] sm:$0xff] %v3448_v44 }
  0x81   :  { %6478 = vst [vmem:[#allocation18_spill] sm:$0xff] %v3446_v63 }
  0x82   :  { %6481 = vst [vmem:[#allocation21_spill] sm:$0xff] %v3462_v19  ;;  %v3520_v19 = vmul.f32 %v282_v53, %v282_v53  ;;  %v3539_v53 = vmul.f32 %v238_v51, %v238_v51 }
  0x83   :  { %6488 = vst [vmem:[#allocation28_spill] sm:$0xff] %v3522_v39 }
  0x84   :  { %675 = vperm.xlu1 %3060, %v3240_v18   ;;  %v3419_v59 = vpop.permute.xlu2 %139  ;;  %1219 = vperm.xlu0 %3062, %v3263_v22   ;;  %v3433_v18 = vmul.f32 %v247_v45, %v247_v45  ;;  %v3444_v22 = vmul.f32 %v259_v56, %v259_v56  ;;  %v234_v45 = vsub.f32 %v3360_v41, %v3368_v47 }
  0x85   :  { %679 = vperm.xlu2 %3058, %v3235_v17   ;;  %v3427_v55 = vpop.permute.xlu1 %89  ;;  %v3429_v62 = vpop.permute.xlu0 %647  ;;  %v273_v17 = vsub.f32 %v110_v40, %v3374_v50  ;;  %v237_v40 = vsub.f32 %v3360_v41, %v3374_v50  ;;  %v3464_v56 = vmul.f32 %v272_v36, %v272_v36  ;;  %v756_v36 = vsub.f32 %v3362_v42, %v3407_v34 }
  0x86   :  { %v3474_v8 = vmul.f32 %v234_v45, %v234_v45  ;;  %v285_v45 = vsub.f32 %v3379_v52, %v3374_v50  ;;  %6487 = vst [vmem:[#allocation27_spill] sm:$0xff] %v3520_v19 }
  0x87   :  { %6482 = vst [vmem:[#allocation22_spill] sm:$0xff] %v3464_v56  ;;  %v3469_v16 = vmul.f32 %v273_v17, %v273_v17  ;;  %v3484_v17 = vmul.f32 %v237_v40, %v237_v40  ;;  %v284_v40 = vsub.f32 %v3379_v52, %v3372_v49  ;;  %v240_v52 = vsub.f32 %v3386_v57, %v3372_v49 }
  0x88   :  { %6484 = vst [vmem:[#allocation24_spill] sm:$0xff] %v3474_v8  ;;  %v3531_v61 = vmul.f32 %v285_v45, %v285_v45  ;;  %v3535_v63 = vmul.f32 %v756_v36, %v756_v36  ;;  %v294_v45 = vsub.f32 %v3419_v59, %v3368_v47 }
  0x89   :  { %6483 = vst [vmem:[#allocation23_spill] sm:$0xff] %v3469_v16  ;;  %v239_v16 = vsub.f32 %v3386_v57, %v3370_v48  ;;  %v3529_v14 = vmul.f32 %v284_v40, %v284_v40  ;;  %v775_v40 = vsub.f32 %v3388_v58, %v3405_v46 }
  0x8a   :  { %6486 = vst [vmem:[#allocation26_spill] sm:$0xff] %v3484_v17 }
  0x8b   :  { %6490 = vst [vmem:[#allocation30_spill] sm:$0xff] %v3529_v14  ;;  %v3598_v19 = vmul.f32 %v775_v40, %v775_v40 }
  0x8c   :  { %687 = vperm.xlu1 %3060, %v3258_v21   ;;  %v3477_v60 = vpop.permute.xlu2 %154  ;;  %1231 = vperm.xlu0 %3062, %v3281_v25   ;;  %v754_v25 = vsub.f32 %v3362_v42, %v3401_v43  ;;  %v755_v21 = vsub.f32 %v3362_v42, %v3405_v46  ;;  %6491 = vst [vmem:[#allocation31_spill] sm:$0xff] %v3531_v61 }
  0x8d   :  { %v3487_v12 = vpop.permute.xlu1 %104  ;;  %v3489_v41 = vpop.permute.xlu0 %659  ;;  %691 = vperm.xlu2 %3058, %v3253_v20   ;;  %v757_v20 = vsub.f32 %v3362_v42, %v3412_v54  ;;  %v241_v42 = vsub.f32 %v3386_v57, %v3374_v50  ;;  %6493 = vst [vmem:[#allocation33_spill] sm:$0xff] %v3535_v63  ;;  %v3544_v57 = vmul.f32 %v239_v16, %v239_v16 }
  0x8e   :  { %v3527_v11 = vmul.f32 %v754_v25, %v754_v25  ;;  %v3533_v8 = vmul.f32 %v755_v21, %v755_v21  ;;  %v3546_v25 = vmul.f32 %v240_v52, %v240_v52  ;;  %v295_v21 = vsub.f32 %v3419_v59, %v3370_v48  ;;  %6500 = vst [vmem:[#allocation40_spill] sm:$0xff] %v3598_v19 }
  0x8f   :  { %v3537_v56 = vmul.f32 %v757_v20, %v757_v20  ;;  %v3559_v16 = vmul.f32 %v241_v42, %v241_v42  ;;  %v296_v20 = vsub.f32 %v3419_v59, %v3372_v49  ;;  %v776_v42 = vsub.f32 %v3388_v58, %v3407_v34 }
  0x90   :  { %6489 = vst [vmem:[#allocation29_spill] sm:$0xff] %v3527_v11  ;;  %v3578_v52 = vmul.f32 %v294_v45, %v294_v45  ;;  %v3580_v44 = vmul.f32 %v295_v21, %v295_v21  ;;  %v255_v63 = vsub.f32 %v3427_v55, %v3370_v48  ;;  %v307_v21 = vsub.f32 %v3477_v60, %v3370_v48 }
  0x91   :  { %6492 = vst [vmem:[#allocation32_spill] sm:$0xff] %v3533_v8  ;;  %v3588_v61 = vmul.f32 %v296_v20, %v296_v20  ;;  %v3600_v17 = vmul.f32 %v776_v42, %v776_v42  ;;  %v788_v45 = vsub.f32 %v3429_v62, %v3407_v34 }
  0x92   :  { %6494 = vst [vmem:[#allocation34_spill] sm:$0xff] %v3537_v56  ;;  %v297_v56 = vsub.f32 %v3419_v59, %v3374_v50  ;;  %v256_v59 = vsub.f32 %v3427_v55, %v3372_v49 }
  0x93   :  { %6495 = vst [vmem:[#allocation35_spill] sm:$0xff] %v3578_v52  ;;  %v3665_v52 = vmul.f32 %v788_v45, %v788_v45 }
  0x94   :  { %699 = vperm.xlu1 %3060, %v3276_v24   ;;  %v3542_v4 = vpop.permute.xlu2 %169  ;;  %1243 = vperm.xlu0 %3062, %v3299_v28   ;;  %v774_v28 = vsub.f32 %v3388_v58, %v3401_v43  ;;  %v777_v24 = vsub.f32 %v3388_v58, %v3412_v54  ;;  %6496 = vst [vmem:[#allocation36_spill] sm:$0xff] %v3580_v44 }
  0x95   :  { %v3553_v36 = vpop.permute.xlu1 %119  ;;  %v3555_v51 = vpop.permute.xlu0 %671  ;;  %703 = vperm.xlu2 %3058, %v3271_v23   ;;  %v254_v23 = vsub.f32 %v3427_v55, %v3368_v47  ;;  %6497 = vst [vmem:[#allocation37_spill] sm:$0xff] %v3588_v61  ;;  %v257_v58 = vsub.f32 %v3427_v55, %v3374_v50  ;;  %v3596_v39 = vmul.f32 %v297_v56, %v297_v56 }
  0x96   :  { %v3594_v14 = vmul.f32 %v774_v28, %v774_v28  ;;  %6501 = vst [vmem:[#allocation41_spill] sm:$0xff] %v3600_v17  ;;  %v3602_v8 = vmul.f32 %v777_v24, %v777_v24  ;;  %v3611_v28 = vmul.f32 %v255_v63, %v255_v63  ;;  %v3613_v56 = vmul.f32 %v256_v59, %v256_v59 }
  0x97   :  { %6499 = vst [vmem:[#allocation39_spill] sm:$0xff] %v3596_v39  ;;  %v3604_v11 = vmul.f32 %v254_v23, %v254_v23  ;;  %v3621_v23 = vmul.f32 %v257_v58, %v257_v58  ;;  %v308_v59 = vsub.f32 %v3477_v60, %v3372_v49  ;;  %v309_v58 = vsub.f32 %v3477_v60, %v3374_v50 }
  0x98   :  { %6498 = vst [vmem:[#allocation38_spill] sm:$0xff] %v3594_v14  ;;  %v787_v55 = vsub.f32 %v3429_v62, %v3405_v46  ;;  %v266_v17 = vsub.f32 %v3487_v12, %v3368_v47  ;;  %v3651_v14 = vmul.f32 %v307_v21, %v307_v21  ;;  %v268_v39 = vsub.f32 %v3487_v12, %v3372_v49 }
  0x99   :  { %6502 = vst [vmem:[#allocation42_spill] sm:$0xff] %v3602_v8  ;;  %v3657_v63 = vmul.f32 %v308_v59, %v308_v59  ;;  %v3659_v8 = vmul.f32 %v309_v58, %v309_v58  ;;  %v269_v61 = vsub.f32 %v3487_v12, %v3374_v50  ;;  %v318_v21 = vsub.f32 %v3542_v4, %v3368_v47 }
  0x9a   :  { %6503 = vst [vmem:[#allocation43_spill] sm:$0xff] %v3613_v56  ;;  %v3663_v44 = vmul.f32 %v787_v55, %v787_v55  ;;  %v3674_v59 = vmul.f32 %v266_v17, %v266_v17  ;;  %v320_v45 = vsub.f32 %v3542_v4, %v3372_v49  ;;  %v6514_v55 = vmov 0  }
  0x9b   :  { %6504 = vst [vmem:[#allocation44_spill] sm:$0xff] %v3621_v23  ;;  %v3689_v17 = vmul.f32 %v268_v39, %v268_v39  ;;  %v799_v39 = vsub.f32 %v3489_v41, %v3405_v46 }
  0x9c   :  { %711 = vperm.xlu1 %3060, %v3294_v27   ;;  %v3607_v20 = vpop.permute.xlu2 %184  ;;  %1255 = vperm.xlu0 %3062, %v3317_v31   ;;  %v306_v27 = vsub.f32 %v3477_v60, %v3368_v47  ;;  %v786_v31 = vsub.f32 %v3429_v62, %v3401_v43  ;;  %v267_v60 = vsub.f32 %v3487_v12, %v3370_v48 }
  0x9d   :  { %v3616_v40 = vpop.permute.xlu1 %134  ;;  %v3618_v24 = vpop.permute.xlu0 %683  ;;  %715 = vperm.xlu2 %3058, %v3289_v26   ;;  %v789_v26 = vsub.f32 %v3429_v62, %v3412_v54  ;;  %6506 = vst [vmem:[#allocation46_spill] sm:$0xff] %v3651_v14  ;;  %v319_v12 = vsub.f32 %v3542_v4, %v3370_v48  ;;  %v280_v14 = vsub.f32 %v3553_v36, %v3372_v49 }
  0x9e   :  { %v3649_v19 = vmul.f32 %v306_v27, %v306_v27  ;;  %v3655_v62 = vmul.f32 %v786_v31, %v786_v31  ;;  %6508 = vst [vmem:[#allocation48_spill] sm:$0xff] %v3657_v63  ;;  %v3676_v58 = vmul.f32 %v267_v60, %v267_v60  ;;  %v321_v60 = vsub.f32 %v3542_v4, %v3374_v50 }
  0x9f   :  { %6509 = vst [vmem:[#allocation49_spill] sm:$0xff] %v3659_v8  ;;  %v3667_v27 = vmul.f32 %v789_v26, %v789_v26  ;;  %v3707_v4 = vmul.f32 %v318_v21, %v318_v21  ;;  %v3729_v23 = vmul.f32 %v799_v39, %v799_v39  ;;  %v811_v8 = vsub.f32 %v3555_v51, %v3405_v46 }
  0xa0   :  { %6505 = vst [vmem:[#allocation45_spill] sm:$0xff] %v3649_v19  ;;  %v3718_v63 = vmul.f32 %v321_v60, %v321_v60 }
  0xa1   :  { %6507 = vst [vmem:[#allocation47_spill] sm:$0xff] %v3655_v62  ;;  %v3696_v62 = vmul.f32 %v269_v61, %v269_v61  ;;  %v3711_v61 = vmul.f32 %v320_v45, %v320_v45 }
  0xa2   :  { %6510 = vst [vmem:[#allocation50_spill] sm:$0xff] %v3663_v44  ;;  %v278_v44 = vsub.f32 %v3553_v36, %v3368_v47 }
  0xa3   :  { %6511 = vst [vmem:[#allocation51_spill] sm:$0xff] %v3665_v52  ;;  %v3709_v52 = vmul.f32 %v319_v12, %v319_v12 }
  0xa4   :  { %6512 = vst [vmem:[#allocation52_spill] sm:$0xff] %v3667_v27  ;;  %723 = vperm.xlu1 %3060, %v3312_v30   ;;  %v3672_v31 = vpop.permute.xlu2 %199  ;;  %3064 = vset.pattern.permute.xlu0 %v6514_v55  ;;  %v798_v55 = vsub.f32 %v3489_v41, %v3401_v43  ;;  %v800_v27 = vsub.f32 %v3489_v41, %v3407_v34 }
  0xa5   :  { %6513 = vst [vmem:[#allocation53_spill] sm:$0xff] %v3676_v58  ;;  %v3683_v26 = vpop.permute.xlu1 %149  ;;  %v3685_v42 = vpop.permute.xlu0 %695  ;;  %727 = vperm.xlu2 %3058, %v3307_v29   ;;  %54 = vperm.xlu0 %3064, %v3330_v33   ;;  %v801_v29 = vsub.f32 %v3489_v41, %v3412_v54  ;;  %v279_v30 = vsub.f32 %v3553_v36, %v3370_v48 }
  0xa6   :  { %6515 = vst [vmem:[#allocation54_spill] sm:$0xff] %v3689_v17  ;;  %v281_v41 = vsub.f32 %v3553_v36, %v3374_v50  ;;  %v3727_v19 = vmul.f32 %v798_v55, %v798_v55  ;;  %v3731_v56 = vmul.f32 %v800_v27, %v800_v27  ;;  %v3739_v58 = vmul.f32 %v278_v44, %v278_v44 }
  0xa7   :  { %6516 = vst [vmem:[#allocation55_spill] sm:$0xff] %v3696_v62  ;;  %v3733_v60 = vmul.f32 %v801_v29, %v801_v29  ;;  %v3741_v12 = vmul.f32 %v279_v30, %v279_v30  ;;  %v3748_v29 = vmul.f32 %v280_v14, %v280_v14  ;;  %v6526_v36 = vmov 2  }
  0xa8   :  { %6517 = vst [vmem:[#allocation56_spill] sm:$0xff] %v3707_v4  ;;  %v3750_v45 = vmul.f32 %v281_v41, %v281_v41  ;;  %v331_v44 = vsub.f32 %v3607_v20, %v3370_v48  ;;  %v332_v30 = vsub.f32 %v3607_v20, %v3372_v49  ;;  %v333_v27 = vsub.f32 %v3607_v20, %v3374_v50 }
  0xa9   :  { %6518 = vst [vmem:[#allocation57_spill] sm:$0xff] %v3709_v52  ;;  %v290_v14 = vsub.f32 %v3616_v40, %v3368_v47  ;;  %v810_v41 = vsub.f32 %v3555_v51, %v3401_v43  ;;  %v3797_v17 = vmul.f32 %v811_v8, %v811_v8 }
  0xaa   :  { %6519 = vst [vmem:[#allocation58_spill] sm:$0xff] %v3711_v61 }
  0xab   :  { %6520 = vst [vmem:[#allocation59_spill] sm:$0xff] %v3718_v63  ;;  %v3793_v62 = vmul.f32 %v290_v14, %v290_v14 }
  0xac   :  { %6521 = vst [vmem:[#allocation60_spill] sm:$0xff] %v3727_v19  ;;  %735 = vperm.xlu1 %3060, %v3325_v32   ;;  %v330_v32 = vsub.f32 %v3607_v20, %v3368_v47  ;;  %v293_v19 = vsub.f32 %v3616_v40, %v3374_v50  ;;  %v3789_v20 = vmul.f32 %v332_v30, %v332_v30 }
  0xad   :  { %6522 = vst [vmem:[#allocation61_spill] sm:$0xff] %v3729_v23  ;;  %v3743_v55 = vpop.permute.xlu1 %164  ;;  %v3745_v39 = vpop.permute.xlu0 %707  ;;  %3061 = vset.pattern.permute.xlu2 %v6526_v36  ;;  %59 = vperm.xlu0 %3064, %v3152_v2   ;;  %v812_v23 = vsub.f32 %v3555_v51, %v3407_v34  ;;  %v813_v2 = vsub.f32 %v3555_v51, %v3412_v54 }
  0xae   :  { %6523 = vst [vmem:[#allocation62_spill] sm:$0xff] %v3731_v56  ;;  %v3755_v21 = vpop.permute.xlu2 %611  ;;  %v292_v56 = vsub.f32 %v3616_v40, %v3372_v49  ;;  %1135 = vperm.xlu2 %3061, %v3330_v33   ;;  %v3785_v4 = vmul.f32 %v330_v32, %v330_v32  ;;  %v3787_v33 = vmul.f32 %v331_v44, %v331_v44 }
  0xaf   :  { %6524 = vst [vmem:[#allocation63_spill] sm:$0xff] %v3733_v60  ;;  %v291_v60 = vsub.f32 %v3616_v40, %v3370_v48  ;;  %v3795_v51 = vmul.f32 %v810_v41, %v810_v41  ;;  %v3804_v32 = vmul.f32 %v812_v23, %v812_v23  ;;  %v3806_v44 = vmul.f32 %v813_v2, %v813_v2 }
  0xb0   :  { %6525 = vst [vmem:[#allocation64_spill] sm:$0xff] %v3739_v58  ;;  %v3791_v58 = vmul.f32 %v333_v27, %v333_v27  ;;  %v3801_v63 = vmul.f32 %v292_v56, %v292_v56  ;;  %v3808_v30 = vmul.f32 %v293_v19, %v293_v19  ;;  %v822_v27 = vsub.f32 %v3618_v24, %v3401_v43 }
  0xb1   :  { %6527 = vst [vmem:[#allocation65_spill] sm:$0xff] %v3785_v4  ;;  %v3799_v40 = vmul.f32 %v291_v60, %v291_v60  ;;  %v823_v60 = vsub.f32 %v3618_v24, %v3405_v46  ;;  %v342_v23 = vsub.f32 %v3672_v31, %v3368_v47  ;;  %v343_v19 = vsub.f32 %v3672_v31, %v3370_v48 }
  0xb2   :  { %6528 = vst [vmem:[#allocation66_spill] sm:$0xff] %v3787_v33 }
  0xb3   :  { %6529 = vst [vmem:[#allocation67_spill] sm:$0xff] %v3789_v20  ;;  %v3843_v52 = vmul.f32 %v823_v60, %v823_v60  ;;  %v3845_v61 = vmul.f32 %v342_v23, %v342_v23  ;;  %v3847_v2 = vmul.f32 %v343_v19, %v343_v19  ;;  %v305_v60 = vsub.f32 %v3683_v26, %v3374_v50 }
  0xb4   :  { %6530 = vst [vmem:[#allocation68_spill] sm:$0xff] %v3791_v58  ;;  %3063 = vset.pattern.permute.xlu1 %v6526_v36  ;;  %v3839_v36 = vmul.f32 %v822_v27, %v822_v27 }
  0xb5   :  { %6531 = vst [vmem:[#allocation69_spill] sm:$0xff] %v3795_v51  ;;  %1143 = vperm.xlu1 %3063, %v3147_v1   ;;  %v3813_v14 = vpop.permute.xlu1 %179  ;;  %v3815_v8 = vpop.permute.xlu0 %719  ;;  %84 = vperm.xlu0 %3064, %v3173_v7   ;;  %v825_v1 = vsub.f32 %v3618_v24, %v3412_v54  ;;  %v345_v7 = vsub.f32 %v3672_v31, %v3374_v50 }
  0xb6   :  { %6532 = vst [vmem:[#allocation70_spill] sm:$0xff] %v3797_v17  ;;  %1147 = vperm.xlu2 %3061, %v3168_v6   ;;  %v302_v17 = vsub.f32 %v3683_v26, %v3368_v47  ;;  %v303_v6 = vsub.f32 %v3683_v26, %v3370_v48 }
  0xb7   :  { %6533 = vst [vmem:[#allocation71_spill] sm:$0xff] %v3801_v63  ;;  %v624_v56 = vpop.permute.xlu2 %623  ;;  %v3863_v19 = vmul.f32 %v345_v7, %v345_v7  ;;  %v3872_v4 = vmul.f32 %v825_v1, %v825_v1  ;;  %v6545_v7 = vsub.f32 0.0, %v3544_v57  ;;  %v847_v1 = vsub.f32 %v3745_v39, %v3405_v46 }
  0xb8   :  { %6534 = vst [vmem:[#allocation72_spill] sm:$0xff] %v3804_v32  ;;  %v344_v32 = vsub.f32 %v3672_v31, %v3372_v49  ;;  %v762_v41 = vsub.f32 %v624_v56, %v3401_v43  ;;  %v764_v27 = vsub.f32 %v624_v56, %v3407_v34  ;;  %v304_v31 = vsub.f32 %v3683_v26, %v3372_v49 }
  0xb9   :  { %6535 = vst [vmem:[#allocation73_spill] sm:$0xff] %v3806_v44  ;;  %v824_v44 = vsub.f32 %v3618_v24, %v3407_v34  ;;  %v763_v24 = vsub.f32 %v624_v56, %v3405_v46  ;;  %v765_v23 = vsub.f32 %v624_v56, %v3412_v54  ;;  %v3876_v63 = vmul.f32 %v303_v6, %v303_v6 }
  0xba   :  { %6536 = vst [vmem:[#allocation74_spill] sm:$0xff] %v3808_v30  ;;  %v892_v58 = vmul.f32 %v764_v27, %v764_v27  ;;  %v3874_v30 = vmul.f32 %v302_v17, %v302_v17  ;;  %v6543_v56 = vsub.f32 0.0, %v3539_v53  ;;  %v6549_v53 = vsub.f32 0.0, %v3559_v16 }
  0xbb   :  { %6537 = vst [vmem:[#allocation75_spill] sm:$0xff] %v3839_v36  ;;  %v3856_v36 = vmul.f32 %v344_v32, %v344_v32  ;;  %v891_v51 = vmul.f32 %v763_v24, %v763_v24  ;;  %v3870_v32 = vmul.f32 %v824_v44, %v824_v44  ;;  %v893_v26 = vmul.f32 %v765_v23, %v765_v23 }
  0xbc   :  { %6538 = vst [vmem:[#allocation76_spill] sm:$0xff] %v3843_v52  ;;  %v890_v52 = vmul.f32 %v762_v41, %v762_v41  ;;  %v6547_v24 = vsub.f32 0.0, %v3546_v25  ;;  %v3900_v25 = vmul.f32 %v304_v31, %v304_v31  ;;  %v835_v23 = vsub.f32 %v3685_v42, %v3405_v46 }
  0xbd   :  { %6539 = vst [vmem:[#allocation77_spill] sm:$0xff] %v3856_v36  ;;  %1151 = vperm.xlu1 %3063, %v3142_v0   ;;  %v3866_v20 = vpop.permute.xlu1 %194  ;;  %v3868_v33 = vpop.permute.xlu0 %731  ;;  %v3884_v0 = vsub.f32 %v6545_v7, %v891_v51  ;;  %99 = vperm.xlu0 %3064, %v3191_v10   ;;  %v834_v10 = vsub.f32 %v3685_v42, %v3401_v43 }
  0xbe   :  { %6540 = vst [vmem:[#allocation78_spill] sm:$0xff] %v3863_v19  ;;  %v3880_v41 = vsub.f32 %v6543_v56, %v890_v52  ;;  %v3888_v27 = vsub.f32 %v6547_v24, %v892_v58  ;;  %v3896_v52 = vsub.f32 %v6549_v53, %v893_v26  ;;  %1155 = vperm.xlu2 %3061, %v3163_v5  }
  0xbf   :  { %6541 = vst [vmem:[#allocation79_spill] sm:$0xff] %v3870_v32  ;;  %v632_v44 = vpop.permute.xlu2 %631  ;;  %v3902_v58 = vmul.f32 %v305_v60, %v305_v60  ;;  %v836_v16 = vsub.f32 %v3685_v42, %v3407_v34  ;;  %v314_v5 = vsub.f32 %v3743_v55, %v3368_v47  ;;  %v315_v31 = vsub.f32 %v3743_v55, %v3370_v48 }
  0xc0   :  { %6542 = vst [vmem:[#allocation80_spill] sm:$0xff] %v3872_v4  ;;  %v316_v60 = vsub.f32 %v3743_v55, %v3372_v49  ;;  %v317_v56 = vsub.f32 %v3743_v55, %v3374_v50  ;;  %v837_v7 = vsub.f32 %v3685_v42, %v3412_v54  ;;  %v770_v24 = vsub.f32 %v632_v44, %v3401_v43 }
  0xc1   :  { %6544 = vst [vmem:[#allocation81_spill] sm:$0xff] %v3880_v41  ;;  %v771_v53 = vsub.f32 %v632_v44, %v3405_v46  ;;  %v772_v57 = vsub.f32 %v632_v44, %v3407_v34  ;;  %v846_v6 = vsub.f32 %v3745_v39, %v3401_v43  ;;  %v848_v17 = vsub.f32 %v3745_v39, %v3407_v34 }
  0xc2   :  { %6546 = vst [vmem:[#allocation82_spill] sm:$0xff] %v3884_v0  ;;  %v773_v55 = vsub.f32 %v632_v44, %v3412_v54  ;;  %v3935_v26 = vmul.f32 %v314_v5, %v314_v5  ;;  %v898_v51 = vmul.f32 %v770_v24, %v770_v24  ;;  %v3941_v0 = vmul.f32 %v316_v60, %v316_v60 }
  0xc3   :  { %6548 = vst [vmem:[#allocation83_spill] sm:$0xff] %v3888_v27  ;;  %v899_v4 = vmul.f32 %v771_v53, %v771_v53  ;;  %v900_v32 = vmul.f32 %v772_v57, %v772_v57  ;;  %v3939_v27 = vmul.f32 %v315_v31, %v315_v31  ;;  %v3943_v41 = vmul.f32 %v317_v56, %v317_v56  ;;  %v6559_v56 = vld [vmem:[#allocation5_spill] sm:$0xff] }
  0xc4   :  { %6550 = vst [vmem:[#allocation84_spill] sm:$0xff] %v3896_v52  ;;  %v901_v19 = vmul.f32 %v773_v55, %v773_v55  ;;  %v6553_v5 = vsub.f32 0.0, %v3431_v37  ;;  %v6555_v57 = vsub.f32 0.0, %v3433_v18  ;;  %v6557_v31 = vsub.f32 0.0, %v3437_v3 }
  0xc5   :  { %1163 = vperm.xlu1 %3063, %v3186_v9   ;;  %v3933_v42 = vpop.permute.xlu1 %209  ;;  %6551 = vst [vmem:[#allocation85_spill] sm:$0xff] %v3941_v0  ;;  %114 = vperm.xlu0 %3064, %v3209_v13   ;;  %v849_v9 = vsub.f32 %v3745_v39, %v3412_v54  ;;  %v3963_v36 = vmul.f32 %v834_v10, %v834_v10  ;;  %v6561_v37 = vsub.f32 0.0, %v3439_v15 }
  0xc6   :  { %v3937_v52 = vpop.permute.xlu0 %1139  ;;  %6552 = vst [vmem:[#allocation86_spill] sm:$0xff] %v3943_v41  ;;  %v3950_v24 = vsub.f32 %v6553_v5, %v898_v51  ;;  %v3954_v53 = vsub.f32 %v6555_v57, %v899_v4  ;;  %v3958_v60 = vsub.f32 %v6557_v31, %v900_v32  ;;  %1167 = vperm.xlu2 %3061, %v6559_v56   ;;  %v6570_v56 = vld [vmem:[#allocation7_spill] sm:$0xff] }
  0xc7   :  { %v644_v44 = vpop.permute.xlu2 %643  ;;  %6560 = vst [vmem:[#allocation5_spill] sm:$0xff] %v3963_v36  ;;  %v3967_v39 = vsub.f32 %v6561_v37, %v901_v19  ;;  %v3969_v51 = vmul.f32 %v835_v23, %v835_v23  ;;  %v3971_v18 = vmul.f32 %v836_v16, %v836_v16  ;;  %v3973_v4 = vmul.f32 %v837_v7, %v837_v7 }
  0xc8   :  { %6554 = vst [vmem:[#allocation87_spill] sm:$0xff] %v3950_v24  ;;  %v3975_v3 = vmul.f32 %v846_v6, %v846_v6  ;;  %v3979_v57 = vmul.f32 %v847_v1, %v847_v1  ;;  %v3981_v10 = vmul.f32 %v848_v17, %v848_v17  ;;  %v3985_v23 = vmul.f32 %v849_v9, %v849_v9 }
  0xc9   :  { %6556 = vst [vmem:[#allocation88_spill] sm:$0xff] %v3954_v53  ;;  %v782_v16 = vsub.f32 %v644_v44, %v3401_v43  ;;  %v750_v6 = vsub.f32 %v3755_v21, %v3401_v43  ;;  %v783_v7 = vsub.f32 %v644_v44, %v3405_v46  ;;  %v784_v31 = vsub.f32 %v644_v44, %v3407_v34 }
  0xca   :  { %6558 = vst [vmem:[#allocation89_spill] sm:$0xff] %v3958_v60  ;;  %v785_v1 = vsub.f32 %v644_v44, %v3412_v54  ;;  %v751_v17 = vsub.f32 %v3755_v21, %v3405_v46  ;;  %v752_v9 = vsub.f32 %v3755_v21, %v3407_v34  ;;  %v753_v37 = vsub.f32 %v3755_v21, %v3412_v54 }
  0xcb   :  { %6562 = vst [vmem:[#allocation90_spill] sm:$0xff] %v3967_v39  ;;  %v910_v19 = vmul.f32 %v782_v16, %v782_v16  ;;  %v911_v32 = vmul.f32 %v783_v7, %v783_v7  ;;  %v912_v55 = vmul.f32 %v784_v31, %v784_v31  ;;  %v6576_v7 = vsub.f32 0.0, %v3444_v22 }
  0xcc   :  { %6563 = vst [vmem:[#allocation91_spill] sm:$0xff] %v3969_v51  ;;  %v913_v13 = vmul.f32 %v785_v1, %v785_v1  ;;  %v6581_v51 = vld [vmem:[#allocation19_spill] sm:$0xff]  ;;  %v4025_v53 = vmul.f32 %v750_v6, %v750_v6  ;;  %v4047_v22 = vmul.f32 %v752_v9, %v752_v9 }
  0xcd   :  { %6564 = vst [vmem:[#allocation92_spill] sm:$0xff] %v3971_v18  ;;  %1175 = vperm.xlu1 %3063, %v6570_v56   ;;  %v4014_v31 = vsub.f32 %v6576_v7, %v911_v32  ;;  %v6586_v32 = vld [vmem:[#allocation13_spill] sm:$0xff]  ;;  %v6587_v7 = vld [vmem:[#allocation24_spill] sm:$0xff] }
  0xce   :  { %6565 = vst [vmem:[#allocation93_spill] sm:$0xff] %v3973_v4  ;;  %v620_v15 = vpop.permute.xlu1 %619  ;;  %v4000_v5 = vpop.permute.xlu0 %1159 }
  0xcf   :  { %6566 = vst [vmem:[#allocation94_spill] sm:$0xff] %v3975_v3  ;;  %v758_v44 = vsub.f32 %v620_v15, %v3401_v43  ;;  %v656_v56 = vpop.permute.xlu2 %655  ;;  %v6575_v3 = vld [vmem:[#allocation6_spill] sm:$0xff]  ;;  %v759_v21 = vsub.f32 %v620_v15, %v3405_v46  ;;  %v760_v16 = vsub.f32 %v620_v15, %v3407_v34  ;;  %v761_v4 = vsub.f32 %v620_v15, %v3412_v54 }
  0xd0   :  { %6567 = vst [vmem:[#allocation95_spill] sm:$0xff] %v3979_v57  ;;  %1179 = vperm.xlu2 %3061, %v6575_v3   ;;  %v6584_v3 = vld [vmem:[#allocation12_spill] sm:$0xff] }
  0xd1   :  { %6568 = vst [vmem:[#allocation96_spill] sm:$0xff] %v3981_v10  ;;  %v6573_v10 = vsub.f32 0.0, %v3441_v35  ;;  %v6582_v35 = vsub.f32 0.0, %v6581_v51  ;;  %v888_v39 = vmul.f32 %v760_v16, %v760_v16  ;;  %v889_v60 = vmul.f32 %v761_v4, %v761_v4  ;;  %v6596_v4 = vld [vmem:[#allocation26_spill] sm:$0xff] }
  0xd2   :  { %6569 = vst [vmem:[#allocation97_spill] sm:$0xff] %v3985_v23  ;;  %v6572_v23 = vld [vmem:[#allocation10_spill] sm:$0xff]  ;;  %v6597_v6 = vsub.f32 0.0, %v6596_v4 }
  0xd3   :  { %6571 = vst [vmem:[#allocation7_spill] sm:$0xff] %v4000_v5  ;;  %129 = vperm.xlu0 %3064, %v6572_v23   ;;  %v4006_v57 = vsub.f32 %v6573_v10, %v910_v19  ;;  %v6578_v23 = vld [vmem:[#allocation18_spill] sm:$0xff]  ;;  %v4022_v10 = vsub.f32 %v6582_v35, %v913_v13  ;;  %v886_v19 = vmul.f32 %v758_v44, %v758_v44  ;;  %v6591_v13 = vld [vmem:[#allocation25_spill] sm:$0xff] }
  0xd4   :  { %6577 = vst [vmem:[#allocation6_spill] sm:$0xff] %v4014_v31  ;;  %v6579_v1 = vsub.f32 0.0, %v6578_v23  ;;  %v6588_v23 = vsub.f32 0.0, %v6587_v7  ;;  %v6592_v51 = vsub.f32 0.0, %v6591_v13  ;;  %v4045_v35 = vsub.f32 %v6597_v6, %v889_v60  ;;  %v6610_v31 = vld [vmem:[#allocation22_spill] sm:$0xff] }
  0xd5   :  { %6574 = vst [vmem:[#allocation10_spill] sm:$0xff] %v4006_v57  ;;  %v887_v57 = vmul.f32 %v759_v21, %v759_v21  ;;  %v6594_v21 = vsub.f32 0.0, %v3482_v38  ;;  %v794_v7 = vsub.f32 %v656_v56, %v3401_v43  ;;  %v327_v38 = vsub.f32 %v3813_v14, %v3370_v48 }
  0xd6   :  { %v4018_v18 = vsub.f32 %v6579_v1, %v912_v55  ;;  %6583 = vst [vmem:[#allocation19_spill] sm:$0xff] %v4022_v10  ;;  %v4031_v55 = vsub.f32 %v6588_v23, %v886_v19  ;;  %v4033_v1 = vmul.f32 %v751_v17, %v751_v17  ;;  %v326_v19 = vsub.f32 %v3813_v14, %v3368_v47  ;;  %v6600_v23 = vld [vmem:[#allocation9_spill] sm:$0xff]  ;;  %v628_v9 = vpop.permute.xlu1 %627  ;;  %v4059_v13 = vpop.permute.xlu0 %1171 }
  0xd7   :  { %6585 = vst [vmem:[#allocation12_spill] sm:$0xff] %v4025_v53  ;;  %v4037_v44 = vsub.f32 %v6592_v51, %v887_v57  ;;  %v4041_v16 = vsub.f32 %v6594_v21, %v888_v39  ;;  %1187 = vperm.xlu1 %3063, %v6600_v23   ;;  %v795_v39 = vsub.f32 %v656_v56, %v3405_v46  ;;  %v6602_v21 = vld [vmem:[#allocation11_spill] sm:$0xff]  ;;  %v668_v17 = vpop.permute.xlu2 %667  ;;  %v6604_v53 = vld [vmem:[#allocation20_spill] sm:$0xff]  ;;  %v6611_v24 = vsub.f32 0.0, %v6610_v31 }
  0xd8   :  { %6580 = vst [vmem:[#allocation18_spill] sm:$0xff] %v4018_v18  ;;  %v796_v57 = vsub.f32 %v656_v56, %v3407_v34  ;;  %v797_v60 = vsub.f32 %v656_v56, %v3412_v54  ;;  %v922_v51 = vmul.f32 %v794_v7, %v794_v7  ;;  %v766_v4 = vsub.f32 %v628_v9, %v3401_v43 }
  0xd9   :  { %6589 = vst [vmem:[#allocation13_spill] sm:$0xff] %v4031_v55  ;;  %v767_v6 = vsub.f32 %v628_v9, %v3405_v46  ;;  %v768_v23 = vsub.f32 %v628_v9, %v3407_v34  ;;  %v923_v15 = vmul.f32 %v795_v39, %v795_v39  ;;  %v769_v56 = vsub.f32 %v628_v9, %v3412_v54  ;;  %v6607_v55 = vld [vmem:[#allocation21_spill] sm:$0xff] }
  0xda   :  { %6590 = vst [vmem:[#allocation24_spill] sm:$0xff] %v4033_v1  ;;  %v924_v36 = vmul.f32 %v796_v57, %v796_v57  ;;  %v6603_v1 = vld [vmem:[#allocation8_spill] sm:$0xff]  ;;  %v894_v7 = vmul.f32 %v766_v4, %v766_v4  ;;  %v6608_v10 = vsub.f32 0.0, %v6607_v55  ;;  %v6613_v57 = vld [vmem:[#allocation23_spill] sm:$0xff] }
  0xdb   :  { %6593 = vst [vmem:[#allocation25_spill] sm:$0xff] %v4037_v44  ;;  %144 = vperm.xlu0 %3064, %v6602_v21   ;;  %1191 = vperm.xlu2 %3061, %v6603_v1   ;;  %v895_v21 = vmul.f32 %v767_v6, %v767_v6  ;;  %v896_v44 = vmul.f32 %v768_v23, %v768_v23  ;;  %v6620_v4 = vld [vmem:[#allocation15_spill] sm:$0xff] }
  0xdc   :  { %6595 = vst [vmem:[#allocation98_spill] sm:$0xff] %v4041_v16  ;;  %v4073_v18 = vsub.f32 %v6608_v10, %v923_v15  ;;  %v4077_v39 = vsub.f32 %v6611_v24, %v924_v36  ;;  %v897_v9 = vmul.f32 %v769_v56, %v769_v56  ;;  %v6621_v6 = vsub.f32 0.0, %v6620_v4  ;;  %v6623_v10 = vld [vmem:[#allocation16_spill] sm:$0xff] }
  0xdd   :  { %6598 = vst [vmem:[#allocation26_spill] sm:$0xff] %v4045_v35  ;;  %v6605_v35 = vsub.f32 0.0, %v6604_v53  ;;  %v6617_v53 = vld [vmem:[#allocation14_spill] sm:$0xff]  ;;  %v6624_v15 = vsub.f32 0.0, %v6623_v10  ;;  %v328_v36 = vsub.f32 %v3813_v14, %v3372_v49  ;;  %v329_v24 = vsub.f32 %v3813_v14, %v3374_v50  ;;  %v3067_v14 = vld [vmem:[%s6321_s0 + $0x80] sm:$0xff] }
  0xde   :  { %6599 = vst [vmem:[#allocation99_spill] sm:$0xff] %v4047_v22  ;;  %v925_v22 = vmul.f32 %v797_v60, %v797_v60  ;;  %v6614_v60 = vsub.f32 0.0, %v6613_v57  ;;  %v4091_v55 = vsub.f32 %v6621_v6, %v895_v21  ;;  %v806_v21 = vsub.f32 %v668_v17, %v3401_v43  ;;  %v640_v4 = vpop.permute.xlu1 %639  ;;  %v4122_v6 = vpop.permute.xlu0 %1183 }
  0xdf   :  { %6601 = vst [vmem:[#allocation9_spill] sm:$0xff] %v4059_v13  ;;  %v4069_v16 = vsub.f32 %v6605_v35, %v922_v51  ;;  %v4083_v13 = vmul.f32 %v753_v37, %v753_v37  ;;  %v6618_v35 = vsub.f32 0.0, %v6617_v53  ;;  %v4095_v31 = vsub.f32 %v6624_v15, %v896_v44  ;;  %1199 = vperm.xlu1 %3063, %v3067_v14  }
  0xe0   :  { %6609 = vst [vmem:[#allocation8_spill] sm:$0xff] %v4073_v18  ;;  %v4081_v1 = vsub.f32 %v6614_v60, %v925_v22  ;;  %v858_v37 = vsub.f32 %v3815_v8, %v3401_v43  ;;  %v6626_v22 = vld [vmem:[#allocation17_spill] sm:$0xff]  ;;  %v807_v44 = vsub.f32 %v668_v17, %v3405_v46  ;;  %v808_v57 = vsub.f32 %v668_v17, %v3407_v34 }
  0xe1   :  { %6606 = vst [vmem:[#allocation11_spill] sm:$0xff] %v4069_v16  ;;  %v4087_v51 = vsub.f32 %v6618_v35, %v894_v7  ;;  %v6627_v23 = vsub.f32 0.0, %v6626_v22  ;;  %v859_v7 = vsub.f32 %v3815_v8, %v3405_v46  ;;  %v4115_v60 = vmul.f32 %v326_v19, %v326_v19 }
  0xe2   :  { %6612 = vst [vmem:[#allocation20_spill] sm:$0xff] %v4077_v39  ;;  %v4117_v53 = vmul.f32 %v327_v38, %v327_v38  ;;  %v809_v35 = vsub.f32 %v668_v17, %v3412_v54  ;;  %v934_v10 = vmul.f32 %v806_v21, %v806_v21  ;;  %v935_v15 = vmul.f32 %v807_v44, %v807_v44  ;;  %v680_v38 = vpop.permute.xlu2 %679 }
  0xe3   :  { %6615 = vst [vmem:[#allocation21_spill] sm:$0xff] %v4081_v1  ;;  %v4105_v56 = vsub.f32 %v6627_v23, %v897_v9  ;;  %v860_v9 = vsub.f32 %v3815_v8, %v3407_v34  ;;  %v936_v22 = vmul.f32 %v808_v57, %v808_v57  ;;  %v3068_v23 = vld [vmem:[%s6321_s0 + $0xa8] sm:$0xff]  ;;  %v778_v19 = vsub.f32 %v640_v4, %v3401_v43  ;;  %v6630_v57 = vld [vmem:[#allocation27_spill] sm:$0xff] }
  0xe4   :  { %6616 = vst [vmem:[#allocation22_spill] sm:$0xff] %v4083_v13  ;;  %159 = vperm.xlu0 %3064, %v3068_v23   ;;  %v937_v14 = vmul.f32 %v809_v35, %v809_v35  ;;  %v3069_v13 = vld [vmem:[%s6321_s0 + $0x88] sm:$0xff]  ;;  %v779_v17 = vsub.f32 %v640_v4, %v3405_v46  ;;  %v780_v21 = vsub.f32 %v640_v4, %v3407_v34  ;;  %v6632_v23 = vld [vmem:[#allocation28_spill] sm:$0xff] }
  0xe5   :  { %6619 = vst [vmem:[#allocation23_spill] sm:$0xff] %v4087_v51  ;;  %1203 = vperm.xlu2 %3061, %v3069_v13   ;;  %v781_v44 = vsub.f32 %v640_v4, %v3412_v54  ;;  %v6634_v35 = vld [vmem:[#allocation30_spill] sm:$0xff]  ;;  %v906_v39 = vmul.f32 %v778_v19, %v778_v19  ;;  %v6637_v13 = vld [vmem:[#allocation31_spill] sm:$0xff]  ;;  %v4150_v0 = vmul.f32 %v328_v36, %v328_v36  ;;  %v6648_v36 = vld [vmem:[#allocation44_spill] sm:$0xff] }
  0xe6   :  { %6622 = vst [vmem:[#allocation14_spill] sm:$0xff] %v4091_v55  ;;  %v6635_v51 = vsub.f32 0.0, %v6634_v35  ;;  %v6638_v18 = vsub.f32 0.0, %v6637_v13  ;;  %v907_v5 = vmul.f32 %v779_v17, %v779_v17  ;;  %v908_v41 = vmul.f32 %v780_v21, %v780_v21  ;;  %v6645_v19 = vld [vmem:[#allocation43_spill] sm:$0xff]  ;;  %v3071_v35 = vld [vmem:[%s6321_s0 + $0xc0] sm:$0xff] }
  0xe7   :  { %6625 = vst [vmem:[#allocation15_spill] sm:$0xff] %v4095_v31  ;;  %v6633_v31 = vsub.f32 0.0, %v6632_v23  ;;  %v909_v4 = vmul.f32 %v781_v44, %v781_v44  ;;  %v4175_v44 = vmul.f32 %v859_v7, %v859_v7  ;;  %v652_v23 = vpop.permute.xlu1 %651  ;;  %v4187_v7 = vpop.permute.xlu0 %1195 }
  0xe8   :  { %6628 = vst [vmem:[#allocation16_spill] sm:$0xff] %v4105_v56  ;;  %v4144_v1 = vsub.f32 %v6635_v51, %v936_v22  ;;  %v4148_v16 = vsub.f32 %v6638_v18, %v937_v14  ;;  %v4160_v51 = vmul.f32 %v858_v37, %v858_v37  ;;  %v6643_v22 = vsub.f32 0.0, %v3611_v28  ;;  %v3070_v28 = vld [vmem:[%s6321_s0 + $0x98] sm:$0xff] }
  0xe9   :  { %6629 = vst [vmem:[#allocation17_spill] sm:$0xff] %v4122_v6  ;;  %v6631_v6 = vsub.f32 0.0, %v6630_v57  ;;  %v4140_v55 = vsub.f32 %v6633_v31, %v935_v15  ;;  %v861_v31 = vsub.f32 %v3815_v8, %v3412_v54  ;;  %v6646_v14 = vsub.f32 0.0, %v6645_v19  ;;  %1211 = vperm.xlu1 %3063, %v3070_v28  }
  0xea   :  { %6636 = vst [vmem:[#allocation27_spill] sm:$0xff] %v4144_v1  ;;  %v4164_v18 = vsub.f32 %v6643_v22, %v907_v5  ;;  %v819_v5 = vsub.f32 %v680_v38, %v3405_v46  ;;  %v820_v37 = vsub.f32 %v680_v38, %v3407_v34  ;;  %v821_v57 = vsub.f32 %v680_v38, %v3412_v54 }
  0xeb   :  { %v4136_v56 = vsub.f32 %v6631_v6, %v934_v10  ;;  %6639 = vst [vmem:[#allocation28_spill] sm:$0xff] %v4148_v16  ;;  %v4152_v6 = vmul.f32 %v329_v24, %v329_v24  ;;  %v6640_v10 = vsub.f32 0.0, %v3604_v11  ;;  %v4168_v17 = vsub.f32 %v6646_v14, %v908_v41 }
  0xec   :  { %6642 = vst [vmem:[#allocation31_spill] sm:$0xff] %v4160_v51  ;;  %v6649_v24 = vsub.f32 0.0, %v6648_v36  ;;  %v4177_v11 = vmul.f32 %v860_v9, %v860_v9  ;;  %174 = vperm.xlu0 %3064, %v3071_v35   ;;  %v790_v13 = vsub.f32 %v652_v23, %v3401_v43  ;;  %v947_v22 = vmul.f32 %v819_v5, %v819_v5 }
  0xed   :  { %v4158_v15 = vsub.f32 %v6640_v10, %v906_v39  ;;  %6644 = vst [vmem:[#allocation100_spill] sm:$0xff] %v4164_v18  ;;  %v818_v39 = vsub.f32 %v680_v38, %v3401_v43  ;;  %v792_v10 = vsub.f32 %v652_v23, %v3407_v34  ;;  %v948_v19 = vmul.f32 %v820_v37, %v820_v37  ;;  %v3072_v38 = vld [vmem:[%s6321_s0 + $0xa0] sm:$0xff] }
  0xee   :  { %6647 = vst [vmem:[#allocation43_spill] sm:$0xff] %v4168_v17  ;;  %v4172_v21 = vsub.f32 %v6649_v24, %v909_v4  ;;  %v791_v4 = vsub.f32 %v652_v23, %v3405_v46  ;;  %v949_v14 = vmul.f32 %v821_v57, %v821_v57  ;;  %1215 = vperm.xlu2 %3061, %v3072_v38   ;;  %v692_v24 = vpop.permute.xlu2 %691  ;;  %v6660_v37 = vld [vmem:[#allocation37_spill] sm:$0xff] }
  0xef   :  { %6641 = vst [vmem:[#allocation30_spill] sm:$0xff] %v4158_v15  ;;  %v946_v9 = vmul.f32 %v818_v39, %v818_v39  ;;  %v793_v36 = vsub.f32 %v652_v23, %v3412_v54  ;;  %v6654_v39 = vld [vmem:[#allocation35_spill] sm:$0xff]  ;;  %v918_v41 = vmul.f32 %v790_v13, %v790_v13  ;;  %v6661_v57 = vsub.f32 0.0, %v6660_v37 }
  0xf0   :  { %6650 = vst [vmem:[#allocation44_spill] sm:$0xff] %v4172_v21  ;;  %v6655_v28 = vsub.f32 0.0, %v6654_v39  ;;  %v919_v8 = vmul.f32 %v791_v4, %v791_v4  ;;  %v6663_v21 = vld [vmem:[#allocation39_spill] sm:$0xff]  ;;  %v6668_v4 = vld [vmem:[#allocation53_spill] sm:$0xff] }
  0xf1   :  { %6651 = vst [vmem:[#allocation101_spill] sm:$0xff] %v4175_v44  ;;  %v4209_v51 = vsub.f32 %v6661_v57, %v948_v19  ;;  %v6664_v38 = vsub.f32 0.0, %v6663_v21  ;;  %v921_v23 = vmul.f32 %v793_v36, %v793_v36  ;;  %v4229_v21 = vmul.f32 %v861_v31, %v861_v31  ;;  %v6676_v37 = vld [vmem:[#allocation55_spill] sm:$0xff] }
  0xf2   :  { %6652 = vst [vmem:[#allocation102_spill] sm:$0xff] %v4177_v11  ;;  %v4201_v35 = vsub.f32 %v6655_v28, %v946_v9  ;;  %v6657_v11 = vld [vmem:[#allocation36_spill] sm:$0xff]  ;;  %v6666_v9 = vsub.f32 0.0, %v3674_v59  ;;  %v6677_v59 = vsub.f32 0.0, %v6676_v37  ;;  %v830_v57 = vsub.f32 %v692_v24, %v3401_v43  ;;  %v3073_v31 = vld [vmem:[%s6321_s0 + $0xb0] sm:$0xff] }
  0xf3   :  { %6653 = vst [vmem:[#allocation103_spill] sm:$0xff] %v4187_v7  ;;  %v920_v7 = vmul.f32 %v792_v10, %v792_v10  ;;  %v6658_v44 = vsub.f32 0.0, %v6657_v11  ;;  %v4213_v17 = vsub.f32 %v6664_v38, %v949_v14  ;;  %v6669_v10 = vsub.f32 0.0, %v6668_v4  ;;  %1223 = vperm.xlu1 %3063, %v3073_v31   ;;  %v3074_v31 = vld [vmem:[%s6321_s0 + $0xd8] sm:$0xff] }
  0xf4   :  { %6656 = vst [vmem:[#allocation35_spill] sm:$0xff] %v4201_v35  ;;  %v4218_v13 = vsub.f32 %v6666_v9, %v918_v41  ;;  %v6675_v14 = vperm.slane %v6584_v3, 2  ;;  %v4237_v41 = vsub.f32 %v6677_v59, %v921_v23  ;;  %v832_v38 = vsub.f32 %v692_v24, %v3407_v34  ;;  %189 = vperm.xlu0 %3064, %v3074_v31   ;;  %v6683_v31 = vld [vmem:[#allocation46_spill] sm:$0xff] }
  0xf5   :  { %v4205_v5 = vsub.f32 %v6658_v44, %v947_v22  ;;  %6662 = vst [vmem:[#allocation37_spill] sm:$0xff] %v4209_v51  ;;  %v4222_v11 = vsub.f32 %v6669_v10, %v919_v8  ;;  %v6671_v44 = vld [vmem:[#allocation54_spill] sm:$0xff]  ;;  %v338_v8 = vsub.f32 %v3866_v20, %v3368_v47  ;;  %v339_v9 = vsub.f32 %v3866_v20, %v3370_v48  ;;  %v6689_v51 = vld [vmem:[#allocation49_spill] sm:$0xff] }
  0xf6   :  { %6665 = vst [vmem:[#allocation39_spill] sm:$0xff] %v4213_v17  ;;  %v6672_v22 = vsub.f32 0.0, %v6671_v44  ;;  %v4233_v36 = vperm.slane %v6675_v14, 2  ;;  %v340_v23 = vsub.f32 %v3866_v20, %v3372_v49  ;;  %v341_v4 = vsub.f32 %v3866_v20, %v3374_v50  ;;  %v664_v44 = vpop.permute.xlu1 %663  ;;  %v3075_v20 = vld [vmem:[%s6321_s0 + $0xb8] sm:$0xff] }
  0xf7   :  { %6659 = vst [vmem:[#allocation36_spill] sm:$0xff] %v4205_v5  ;;  %v833_v10 = vsub.f32 %v692_v24, %v3412_v54  ;;  %v958_v14 = vmul.f32 %v830_v57, %v830_v57  ;;  %v960_v59 = vmul.f32 %v832_v38, %v832_v38  ;;  %v802_v19 = vsub.f32 %v664_v44, %v3401_v43  ;;  %v6680_v38 = vld [vmem:[#allocation45_spill] sm:$0xff] }
  0xf8   :  { %6667 = vst [vmem:[#allocation104_spill] sm:$0xff] %v4218_v13  ;;  %v4226_v28 = vsub.f32 %v6672_v22, %v920_v7  ;;  %v831_v7 = vsub.f32 %v692_v24, %v3405_v46  ;;  %v4254_v22 = vpop.permute.xlu0 %1207  ;;  %1227 = vperm.xlu2 %3061, %v3075_v20   ;;  %v803_v24 = vsub.f32 %v664_v44, %v3405_v46  ;;  %v6690_v5 = vsub.f32 0.0, %v6689_v51 }
  0xf9   :  { %6670 = vst [vmem:[#allocation53_spill] sm:$0xff] %v4222_v11  ;;  %v961_v39 = vmul.f32 %v833_v10, %v833_v10  ;;  %v805_v57 = vsub.f32 %v664_v44, %v3412_v54  ;;  %v6686_v10 = vld [vmem:[#allocation48_spill] sm:$0xff]  ;;  %v930_v20 = vmul.f32 %v802_v19, %v802_v19 }
  0xfa   :  { %6673 = vst [vmem:[#allocation54_spill] sm:$0xff] %v4226_v28  ;;  %v959_v37 = vmul.f32 %v831_v7, %v831_v7  ;;  %v704_v7 = vpop.permute.xlu2 %703  ;;  %v6684_v28 = vsub.f32 0.0, %v6683_v31  ;;  %v6687_v13 = vsub.f32 0.0, %v6686_v10  ;;  %v931_v18 = vmul.f32 %v803_v24, %v803_v24  ;;  %v6695_v19 = vld [vmem:[#allocation64_spill] sm:$0xff] }
  0xfb   :  { %6674 = vst [vmem:[#allocation105_spill] sm:$0xff] %v4229_v21  ;;  %v6681_v21 = vsub.f32 0.0, %v6680_v38  ;;  %v4280_v35 = vsub.f32 %v6690_v5, %v961_v39  ;;  %v933_v15 = vmul.f32 %v805_v57, %v805_v57  ;;  %v6692_v38 = vperm.slane %v6584_v3, 6 }
  0xfc   :  { %6678 = vst [vmem:[#allocation55_spill] sm:$0xff] %v4237_v41  ;;  %v4272_v11 = vsub.f32 %v6684_v28, %v959_v37  ;;  %v4276_v17 = vsub.f32 %v6687_v13, %v960_v59  ;;  %v6694_v37 = vperm.slane %v6586_v32, 6  ;;  %v6696_v59 = vsub.f32 0.0, %v6695_v19 }
  0xfd   :  { %6679 = vst [vmem:[#allocation106_spill] sm:$0xff] %v4254_v22  ;;  %v804_v22 = vsub.f32 %v664_v44, %v3407_v34  ;;  %v4268_v41 = vsub.f32 %v6681_v21, %v958_v14  ;;  %v4284_v21 = vperm.slane %v6692_v38, 2  ;;  %v6693_v14 = vperm.slane %v6586_v32, 2 }
  0xfe   :  { %6685 = vst [vmem:[#allocation46_spill] sm:$0xff] %v4272_v11  ;;  %v4292_v13 = vperm.slane %v6694_v37, 2  ;;  %v4296_v51 = vsub.f32 %v6696_v59, %v930_v20  ;;  %v4298_v5 = vmul.f32 %v338_v8, %v338_v8  ;;  %v6698_v39 = vsub.f32 0.0, %v3741_v12  ;;  %v3076_v12 = vld [vmem:[%s6321_s0 + $0xc8] sm:$0xff] }
  0xff   :  { %6682 = vst [vmem:[#allocation45_spill] sm:$0xff] %v4268_v41  ;;  %v932_v44 = vmul.f32 %v804_v22, %v804_v22  ;;  %v4288_v28 = vperm.slane %v6693_v14, 2  ;;  %v6700_v3 = vsub.f32 0.0, %v3748_v29  ;;  %v6702_v57 = vsub.f32 0.0, %v3750_v45  ;;  %1235 = vperm.xlu1 %3063, %v3076_v12  }
 0x100   :  { %6688 = vst [vmem:[#allocation48_spill] sm:$0xff] %v4276_v17  ;;  %v4302_v22 = vsub.f32 %v6698_v39, %v931_v18  ;;  %v4312_v32 = vmul.f32 %v339_v9, %v339_v9  ;;  %v4314_v10 = vmul.f32 %v340_v23, %v340_v23  ;;  %v4316_v20 = vmul.f32 %v341_v4, %v341_v4  ;;  %v676_v9 = vpop.permute.xlu1 %675  ;;  %v3077_v4 = vld [vmem:[%s6321_s0 + $0xf0] sm:$0xff]  ;;  %v4335_v37 = vpop.permute.xlu0 %1219 }
 0x101   :  { %6691 = vst [vmem:[#allocation49_spill] sm:$0xff] %v4280_v35  ;;  %v4306_v24 = vsub.f32 %v6700_v3, %v932_v44  ;;  %v4310_v31 = vsub.f32 %v6702_v57, %v933_v15  ;;  %v842_v8 = vsub.f32 %v704_v7, %v3401_v43  ;;  %v4324_v29 = vsub.f32 %v3868_v33, %v3401_v43  ;;  %v6714_v17 = vld [vmem:[#allocation59_spill] sm:$0xff] }
 0x102   :  { %6697 = vst [vmem:[#allocation64_spill] sm:$0xff] %v4296_v51  ;;  %v843_v45 = vsub.f32 %v704_v7, %v3405_v46  ;;  %v844_v15 = vsub.f32 %v704_v7, %v3407_v34  ;;  %v845_v18 = vsub.f32 %v704_v7, %v3412_v54  ;;  %204 = vperm.xlu0 %3064, %v3077_v4   ;;  %v3078_v7 = vld [vmem:[%s6321_s0 + $0xd0] sm:$0xff]  ;;  %v716_v57 = vpop.permute.xlu2 %715  ;;  %v6708_v51 = vld [vmem:[#allocation57_spill] sm:$0xff] }
 0x103   :  { %6699 = vst [vmem:[#allocation107_spill] sm:$0xff] %v4302_v22  ;;  %v970_v23 = vmul.f32 %v842_v8, %v842_v8  ;;  %v814_v44 = vsub.f32 %v676_v9, %v3401_v43  ;;  %v815_v38 = vsub.f32 %v676_v9, %v3405_v46  ;;  %v816_v14 = vsub.f32 %v676_v9, %v3407_v34  ;;  %v6705_v8 = vld [vmem:[#allocation56_spill] sm:$0xff] }
 0x104   :  { %6701 = vst [vmem:[#allocation108_spill] sm:$0xff] %v4306_v24  ;;  %v971_v19 = vmul.f32 %v843_v45, %v843_v45  ;;  %v972_v59 = vmul.f32 %v844_v15, %v844_v15  ;;  %v973_v39 = vmul.f32 %v845_v18, %v845_v18  ;;  %1239 = vperm.xlu2 %3061, %v3078_v7   ;;  %v6706_v12 = vsub.f32 0.0, %v6705_v8  ;;  %v6711_v15 = vld [vmem:[#allocation58_spill] sm:$0xff] }
 0x105   :  { %6703 = vst [vmem:[#allocation109_spill] sm:$0xff] %v4310_v31  ;;  %v817_v3 = vsub.f32 %v676_v9, %v3412_v54  ;;  %v942_v31 = vmul.f32 %v814_v44, %v814_v44  ;;  %v943_v24 = vmul.f32 %v815_v38, %v815_v38  ;;  %v944_v22 = vmul.f32 %v816_v14, %v816_v14  ;;  %v6724_v8 = vld [vmem:[#allocation74_spill] sm:$0xff] }
 0x106   :  { %6704 = vst [vmem:[#allocation110_spill] sm:$0xff] %v4335_v37  ;;  %v4343_v4 = vsub.f32 %v6706_v12, %v970_v23  ;;  %v6709_v37 = vsub.f32 0.0, %v6708_v51  ;;  %v6712_v18 = vsub.f32 0.0, %v6711_v15  ;;  %v6715_v7 = vsub.f32 0.0, %v6714_v17 }
 0x107   :  { %v945_v9 = vmul.f32 %v817_v3, %v817_v3  ;;  %v4359_v23 = vsub.f32 %v3868_v33, %v3405_v46  ;;  %v6717_v44 = vsub.f32 0.0, %v3793_v62  ;;  %v6719_v51 = vsub.f32 0.0, %v3799_v40  ;;  %v1659_v40 = vld [vmem:[%s6323_s2 + $0x8] sm:$0xff] }
 0x108   :  { %6707 = vst [vmem:[#allocation56_spill] sm:$0xff] %v4343_v4  ;;  %v4347_v45 = vsub.f32 %v6709_v37, %v971_v19  ;;  %v4351_v35 = vsub.f32 %v6712_v18, %v972_v59  ;;  %v4355_v11 = vsub.f32 %v6715_v7, %v973_v39  ;;  %v6721_v37 = vld [vmem:[#allocation71_spill] sm:$0xff]  ;;  %v4377_v3 = vsub.f32 %v3868_v33, %v3407_v34  ;;  %v3079_v18 = vld [vmem:[%s6321_s0 + $0xe0] sm:$0xff]  ;;  %v4402_v17 = vpop.permute.xlu0 %1231 }
 0x109   :  { %v4363_v38 = vsub.f32 %v6717_v44, %v942_v31  ;;  %v4367_v14 = vsub.f32 %v6719_v51, %v943_v24  ;;  %v6722_v19 = vsub.f32 0.0, %v6721_v37  ;;  %v6725_v62 = vsub.f32 0.0, %v6724_v8  ;;  %1247 = vperm.xlu1 %3063, %v3079_v18   ;;  %v688_v37 = vpop.permute.xlu1 %687  ;;  %6727 = vst [vmem:[#allocation113_spill] sm:$0xff] %v4402_v17 }
 0x10a   :  { %6710 = vst [vmem:[#allocation57_spill] sm:$0xff] %v4347_v45  ;;  %v854_v24 = vsub.f32 %v716_v57, %v3401_v43  ;;  %v855_v12 = vsub.f32 %v716_v57, %v3405_v46  ;;  %v856_v15 = vsub.f32 %v716_v57, %v3407_v34  ;;  %v351_v7 = vsub.f32 %v3933_v42, %v3370_v48  ;;  %v6734_v45 = vld [vmem:[#allocation68_spill] sm:$0xff] }
 0x10b   :  { %6713 = vst [vmem:[#allocation58_spill] sm:$0xff] %v4351_v35  ;;  %v4371_v59 = vsub.f32 %v6722_v19, %v944_v22  ;;  %v4381_v31 = vsub.f32 %v6725_v62, %v945_v9  ;;  %v350_v22 = vsub.f32 %v3933_v42, %v3368_v47  ;;  %v352_v9 = vsub.f32 %v3933_v42, %v3372_v49 }
 0x10c   :  { %6716 = vst [vmem:[#allocation59_spill] sm:$0xff] %v4355_v11  ;;  %v353_v44 = vsub.f32 %v3933_v42, %v3374_v50  ;;  %v857_v51 = vsub.f32 %v716_v57, %v3412_v54  ;;  %v982_v19 = vmul.f32 %v854_v24, %v854_v24  ;;  %v983_v8 = vmul.f32 %v855_v12, %v855_v12  ;;  %v728_v24 = vpop.permute.xlu2 %727  ;;  %v6728_v12 = vld [vmem:[#allocation65_spill] sm:$0xff] }
 0x10d   :  { %6718 = vst [vmem:[#allocation111_spill] sm:$0xff] %v4363_v38  ;;  %v984_v62 = vmul.f32 %v856_v15, %v856_v15  ;;  %1695 = vperm.xlu0 %3064, %v1659_v40   ;;  %v826_v39 = vsub.f32 %v688_v37, %v3401_v43  ;;  %v828_v42 = vsub.f32 %v688_v37, %v3407_v34  ;;  %v6729_v15 = vsub.f32 0.0, %v6728_v12 }
 0x10e   :  { %6720 = vst [vmem:[#allocation112_spill] sm:$0xff] %v4367_v14  ;;  %v985_v18 = vmul.f32 %v857_v51, %v857_v51  ;;  %v829_v57 = vsub.f32 %v688_v37, %v3412_v54  ;;  %v6730_v14 = vld [vmem:[#allocation66_spill] sm:$0xff]  ;;  %v6732_v51 = vld [vmem:[#allocation67_spill] sm:$0xff]  ;;  %v6735_v4 = vsub.f32 0.0, %v6734_v45  ;;  %v6738_v45 = vsub.f32 0.0, %v3876_v63 }
 0x10f   :  { %6723 = vst [vmem:[#allocation71_spill] sm:$0xff] %v4371_v59  ;;  %v827_v59 = vsub.f32 %v688_v37, %v3405_v46  ;;  %v4412_v40 = vsub.f32 %v6729_v15, %v982_v19  ;;  %v6731_v38 = vsub.f32 0.0, %v6730_v14  ;;  %v6733_v11 = vsub.f32 0.0, %v6732_v51 }
 0x110   :  { %6726 = vst [vmem:[#allocation74_spill] sm:$0xff] %v4381_v31  ;;  %v3080_v31 = vld [vmem:[%s6321_s0 + $0xe8] sm:$0xff]  ;;  %v4424_v41 = vsub.f32 %v6735_v4, %v985_v18  ;;  %v956_v37 = vmul.f32 %v828_v42, %v828_v42  ;;  %v957_v1 = vmul.f32 %v829_v57, %v829_v57  ;;  %v6736_v14 = vsub.f32 0.0, %v3874_v30 }
 0x111   :  { %1251 = vperm.xlu2 %3061, %v3080_v31   ;;  %v4416_v17 = vsub.f32 %v6731_v38, %v983_v8  ;;  %v4420_v35 = vsub.f32 %v6733_v11, %v984_v62  ;;  %v954_v31 = vmul.f32 %v826_v39, %v826_v39  ;;  %v955_v16 = vmul.f32 %v827_v59, %v827_v59 }
 0x112   :  { %v873_v38 = vsub.f32 %v3868_v33, %v3412_v54  ;;  %v4434_v11 = vmul.f32 %v350_v22, %v350_v22  ;;  %v6740_v59 = vsub.f32 0.0, %v3900_v25  ;;  %v6742_v62 = vsub.f32 0.0, %v3902_v58  ;;  %v1664_v33 = vld [vmem:[%s6323_s2 + $0x30] sm:$0xff]  ;;  %v3081_v25 = vld [vmem:[%s6321_s0 + $0xf8] sm:$0xff] }
 0x113   :  { %v4432_v8 = vsub.f32 %v6736_v14, %v954_v31  ;;  %v4438_v4 = vsub.f32 %v6738_v45, %v955_v16  ;;  %v4451_v30 = vmul.f32 %v351_v7, %v351_v7  ;;  %v4453_v22 = vmul.f32 %v352_v9, %v352_v9  ;;  %1259 = vperm.xlu1 %3063, %v3081_v25   ;;  %v700_v9 = vpop.permute.xlu1 %699 }
 0x114   :  { %v4442_v39 = vsub.f32 %v6740_v59, %v956_v37  ;;  %v4446_v18 = vsub.f32 %v6742_v62, %v957_v1  ;;  %v4455_v42 = vmul.f32 %v353_v44, %v353_v44  ;;  %v866_v63 = vsub.f32 %v728_v24, %v3401_v43  ;;  %v1658_v44 = vld [vmem:[%s6323_s2] sm:$0xff]  ;;  %v4472_v37 = vpop.permute.xlu0 %1243 }
 0x115   :  { %6737 = vst [vmem:[#allocation65_spill] sm:$0xff] %v4432_v8  ;;  %v1278_v58 = vsub.f32 %v3937_v52, %v4233_v36  ;;  %v867_v16 = vsub.f32 %v728_v24, %v3405_v46  ;;  %v868_v1 = vsub.f32 %v728_v24, %v3407_v34  ;;  %v869_v7 = vsub.f32 %v728_v24, %v3412_v54 }
 0x116   :  { %6739 = vst [vmem:[#allocation66_spill] sm:$0xff] %v4438_v4  ;;  %v994_v57 = vmul.f32 %v866_v63, %v866_v63  ;;  %1710 = vperm.xlu0 %3064, %v1664_v33   ;;  %v838_v15 = vsub.f32 %v700_v9, %v3401_v43  ;;  %v839_v51 = vsub.f32 %v700_v9, %v3405_v46  ;;  %v6745_v62 = vmov 0  }
 0x117   :  { %6741 = vst [vmem:[#allocation67_spill] sm:$0xff] %v4442_v39  ;;  %v840_v31 = vsub.f32 %v700_v9, %v3407_v34  ;;  %v995_v14 = vmul.f32 %v867_v16, %v867_v16  ;;  %v996_v45 = vmul.f32 %v868_v1, %v868_v1  ;;  %v997_v59 = vmul.f32 %v869_v7, %v869_v7  ;;  %v6753_v7 = vld [vmem:[#allocation78_spill] sm:$0xff] }
 0x118   :  { %6743 = vst [vmem:[#allocation68_spill] sm:$0xff] %v4446_v18  ;;  %v841_v24 = vsub.f32 %v700_v9, %v3412_v54  ;;  %v6746_v25 = vsub.f32 0.0, %v3845_v61  ;;  %v966_v33 = vmul.f32 %v838_v15, %v838_v15  ;;  %v967_v63 = vmul.f32 %v839_v51, %v839_v51  ;;  %v4492_v61 = vpop.permute.xlu2 %1135  ;;  %v6758_v51 = vld [vmem:[#allocation85_spill] sm:$0xff] }
 0x119   :  { %6744 = vst [vmem:[#allocation114_spill] sm:$0xff] %v4472_v37  ;;  %3065 = vset.pattern.permute.xlu2 %v6745_v62  ;;  %v968_v12 = vmul.f32 %v840_v31, %v840_v31  ;;  %v6748_v18 = vsub.f32 0.0, %v3847_v2  ;;  %v6750_v37 = vld [vmem:[#allocation77_spill] sm:$0xff]  ;;  %v6754_v4 = vsub.f32 0.0, %v6753_v7  ;;  %v6759_v31 = vsub.f32 0.0, %v6758_v51 }
 0x11a   :  { %v4478_v19 = vsub.f32 %v6746_v25, %v994_v57  ;;  %1692 = vperm.xlu2 %3065, %v1658_v44   ;;  %v6751_v16 = vsub.f32 0.0, %v6750_v37  ;;  %v969_v9 = vmul.f32 %v841_v24, %v841_v24  ;;  %v4496_v57 = vmul.f32 %v4324_v29, %v4324_v29  ;;  %v6769_v24 = vld [vmem:[#allocation9_spill] sm:$0xff] }
 0x11b   :  { %v4482_v39 = vsub.f32 %v6748_v18, %v995_v14  ;;  %v4490_v8 = vsub.f32 %v6754_v4, %v997_v59  ;;  %v6756_v44 = vsub.f32 0.0, %v3935_v26  ;;  %v6757_v18 = vsub.f32 0.0, %v3939_v27  ;;  %v1660_v4 = vld [vmem:[%s6323_s2 + $0x10] sm:$0xff]  ;;  %v6761_v27 = vld [vmem:[#allocation86_spill] sm:$0xff]  ;;  %3066 = vset.pattern.permute.xlu1 %v6745_v62  ;;  %v712_v7 = vpop.permute.xlu1 %711 }
 0x11c   :  { %6747 = vst [vmem:[#allocation115_spill] sm:$0xff] %v4478_v19  ;;  %v4486_v1 = vsub.f32 %v6751_v16, %v996_v45  ;;  %v4508_v37 = vsub.f32 %v6759_v31, %v968_v12  ;;  %v4515_v29 = vmul.f32 %v4359_v23, %v4359_v23  ;;  %v4519_v26 = vmul.f32 %v4377_v3, %v4377_v3  ;;  %v1667_v12 = vld [vmem:[%s6323_s2 + $0x48] sm:$0xff] }
 0x11d   :  { %6749 = vst [vmem:[#allocation116_spill] sm:$0xff] %v4482_v39  ;;  %v4500_v2 = vsub.f32 %v6756_v44, %v966_v33  ;;  %v4504_v15 = vsub.f32 %v6757_v18, %v967_v63  ;;  %v4521_v14 = vmul.f32 %v873_v38, %v873_v38  ;;  %v6762_v45 = vsub.f32 0.0, %v6761_v27  ;;  %1698 = vperm.xlu1 %3066, %v1660_v4   ;;  %v6764_v44 = vld [vmem:[#allocation7_spill] sm:$0xff] }
 0x11e   :  { %6752 = vst [vmem:[#allocation77_spill] sm:$0xff] %v4486_v1  ;;  %v1279_v23 = vsub.f32 %v3937_v52, %v4284_v21  ;;  %v1280_v25 = vsub.f32 %v3937_v52, %v4288_v28  ;;  %v1281_v3 = vsub.f32 %v3937_v52, %v4292_v13  ;;  %v4541_v16 = vmul.f32 %v1278_v58, %v1278_v58  ;;  %v4553_v58 = vpop.permute.xlu0 %1255 }
 0x11f   :  { %6755 = vst [vmem:[#allocation78_spill] sm:$0xff] %v4490_v8  ;;  %v4525_v59 = vsub.f32 %v6762_v45, %v969_v9  ;;  %v1661_v9 = vld [vmem:[%s6323_s2 + $0x18] sm:$0xff]  ;;  %v1298_v18 = vsub.f32 %v6764_v44, %v4233_v36  ;;  %v1299_v52 = vsub.f32 %v6764_v44, %v4284_v21  ;;  %v1300_v62 = vsub.f32 %v6764_v44, %v4288_v28 }
 0x120   :  { %6760 = vst [vmem:[#allocation85_spill] sm:$0xff] %v4521_v14  ;;  %1719 = vperm.xlu0 %3064, %v1667_v12   ;;  %v850_v51 = vsub.f32 %v712_v7, %v3401_v43  ;;  %v1301_v31 = vsub.f32 %v6764_v44, %v4292_v13  ;;  %v851_v4 = vsub.f32 %v712_v7, %v3405_v46  ;;  %v1148_v19 = vpop.permute.xlu2 %1147 }
 0x121   :  { %6763 = vst [vmem:[#allocation86_spill] sm:$0xff] %v4541_v16  ;;  %v852_v27 = vsub.f32 %v712_v7, %v3407_v34  ;;  %v853_v45 = vsub.f32 %v712_v7, %v3412_v54  ;;  %v4560_v63 = vmul.f32 %v1279_v23, %v1279_v23  ;;  %v4562_v33 = vmul.f32 %v1280_v25, %v1280_v25 }
 0x122   :  { %6765 = vst [vmem:[#allocation7_spill] sm:$0xff] %v4553_v58  ;;  %v4564_v38 = vmul.f32 %v1281_v3, %v1281_v3  ;;  %v978_v12 = vmul.f32 %v850_v51, %v850_v51  ;;  %1701 = vperm.xlu2 %3065, %v1661_v9   ;;  %v1310_v8 = vsub.f32 %v6769_v24, %v4233_v36  ;;  %v6773_v23 = vsub.f32 0.0, %v4115_v60  ;;  %v1662_v3 = vld [vmem:[%s6323_s2 + $0x20] sm:$0xff] }
 0x123   :  { %6766 = vst [vmem:[#allocation117_spill] sm:$0xff] %v4560_v63  ;;  %v979_v1 = vmul.f32 %v851_v4, %v851_v4  ;;  %v980_v39 = vmul.f32 %v852_v27, %v852_v27  ;;  %v981_v44 = vmul.f32 %v853_v45, %v853_v45  ;;  %v4568_v58 = vmul.f32 %v1298_v18, %v1298_v18  ;;  %v1670_v60 = vld [vmem:[%s6323_s2 + $0x60] sm:$0xff]  ;;  %v6794_v63 = vld [vmem:[#allocation87_spill] sm:$0xff] }
 0x124   :  { %6767 = vst [vmem:[#allocation118_spill] sm:$0xff] %v4562_v33  ;;  %v4570_v16 = vmul.f32 %v1299_v52, %v1299_v52  ;;  %v4572_v7 = vmul.f32 %v1300_v62, %v1300_v62  ;;  %v4576_v25 = vsub.f32 %v6773_v23, %v978_v12  ;;  %v4581_v9 = vmul.f32 %v1301_v31, %v1301_v31 }
 0x125   :  { %6768 = vst [vmem:[#allocation119_spill] sm:$0xff] %v4564_v38  ;;  %v6775_v51 = vsub.f32 0.0, %v4117_v53  ;;  %v6776_v18 = vsub.f32 0.0, %v4150_v0  ;;  %v6777_v62 = vsub.f32 0.0, %v4152_v6  ;;  %v1286_v45 = vsub.f32 %v1148_v19, %v4233_v36  ;;  %1704 = vperm.xlu1 %3066, %v1662_v3  }
 0x126   :  { %6770 = vst [vmem:[#allocation9_spill] sm:$0xff] %v4568_v58  ;;  %v1287_v31 = vsub.f32 %v1148_v19, %v4284_v21  ;;  %v1288_v53 = vsub.f32 %v1148_v19, %v4288_v28  ;;  %v4604_v0 = vsub.f32 %v6769_v24, %v4284_v21  ;;  %v4608_v6 = vsub.f32 %v6769_v24, %v4288_v28 }
 0x127   :  { %6771 = vst [vmem:[#allocation120_spill] sm:$0xff] %v4570_v16  ;;  %v4585_v4 = vsub.f32 %v6775_v51, %v979_v1  ;;  %v4589_v52 = vsub.f32 %v6776_v18, %v980_v39  ;;  %v4593_v27 = vsub.f32 %v6777_v62, %v981_v44  ;;  %v1289_v1 = vsub.f32 %v1148_v19, %v4292_v13  ;;  %v724_v44 = vpop.permute.xlu1 %723  ;;  %v1663_v19 = vld [vmem:[%s6323_s2 + $0x28] sm:$0xff] }
 0x128   :  { %6772 = vst [vmem:[#allocation121_spill] sm:$0xff] %v4572_v7  ;;  %v4612_v39 = vsub.f32 %v6769_v24, %v4292_v13  ;;  %v4614_v12 = vmul.f32 %v1310_v8, %v1310_v8  ;;  %v1414_v23 = vmul.f32 %v1286_v45, %v1286_v45  ;;  %v1415_v51 = vmul.f32 %v1287_v31, %v1287_v31  ;;  %v6783_v16 = vld [vmem:[#allocation82_spill] sm:$0xff]  ;;  %v6785_v31 = vld [vmem:[#allocation84_spill] sm:$0xff] }
 0x129   :  { %6774 = vst [vmem:[#allocation122_spill] sm:$0xff] %v4581_v9  ;;  %v1416_v18 = vmul.f32 %v1288_v53, %v1288_v53  ;;  %v1417_v62 = vmul.f32 %v1289_v1, %v1289_v1  ;;  %1728 = vperm.xlu0 %3064, %v1670_v60   ;;  %v862_v9 = vsub.f32 %v724_v44, %v3401_v43  ;;  %v55_v60 = vpop.permute.xlu0 %54 }
 0x12a   :  { %6778 = vst [vmem:[#allocation123_spill] sm:$0xff] %v4604_v0  ;;  %v863_v7 = vsub.f32 %v724_v44, %v3405_v46  ;;  %v864_v24 = vsub.f32 %v724_v44, %v3407_v34  ;;  %v865_v8 = vsub.f32 %v724_v44, %v3412_v54  ;;  %v4627_v58 = vsub.f32 %v6783_v16, %v1415_v51  ;;  %v1156_v51 = vpop.permute.xlu2 %1155 }
 0x12b   :  { %6779 = vst [vmem:[#allocation124_spill] sm:$0xff] %v4608_v6  ;;  %v4633_v53 = vsub.f32 %v6785_v31, %v1417_v62  ;;  %1707 = vperm.xlu2 %3065, %v1663_v19   ;;  %v990_v1 = vmul.f32 %v862_v9, %v862_v9  ;;  %v226_v44 = vsub.f32 %v55_v60, %v3368_v47  ;;  %v6786_v19 = vsub.f32 0.0, %v4298_v5 }
 0x12c   :  { %6780 = vst [vmem:[#allocation125_spill] sm:$0xff] %v4612_v39  ;;  %v6784_v39 = vld [vmem:[#allocation83_spill] sm:$0xff]  ;;  %v991_v6 = vmul.f32 %v863_v7, %v863_v7  ;;  %v992_v38 = vmul.f32 %v864_v24, %v864_v24  ;;  %v993_v33 = vmul.f32 %v865_v8, %v865_v8  ;;  %v229_v16 = vsub.f32 %v55_v60, %v3374_v50 }
 0x12d   :  { %6781 = vst [vmem:[#allocation126_spill] sm:$0xff] %v4614_v12  ;;  %v6782_v12 = vld [vmem:[#allocation81_spill] sm:$0xff]  ;;  %v4630_v45 = vsub.f32 %v6784_v39, %v1416_v18  ;;  %v1665_v39 = vld [vmem:[%s6323_s2 + $0x38] sm:$0xff]  ;;  %v4644_v18 = vsub.f32 %v6786_v19, %v990_v1  ;;  %v6788_v7 = vsub.f32 0.0, %v4312_v32  ;;  %v6790_v62 = vsub.f32 0.0, %v4314_v10 }
 0x12e   :  { %v4624_v3 = vsub.f32 %v6782_v12, %v1414_v23  ;;  %v227_v12 = vsub.f32 %v55_v60, %v3370_v48  ;;  %v228_v23 = vsub.f32 %v55_v60, %v3372_v49  ;;  %v6792_v8 = vsub.f32 0.0, %v4316_v20  ;;  %v1673_v60 = vld [vmem:[%s6323_s2 + $0x78] sm:$0xff]  ;;  %1713 = vperm.xlu1 %3066, %v1665_v39  }
 0x12f   :  { %6787 = vst [vmem:[#allocation81_spill] sm:$0xff] %v4644_v18  ;;  %v4648_v9 = vsub.f32 %v6788_v7, %v991_v6  ;;  %v4652_v24 = vsub.f32 %v6790_v62, %v992_v38  ;;  %v4661_v0 = vmul.f32 %v226_v44, %v226_v44  ;;  %v4667_v32 = vmul.f32 %v229_v16, %v229_v16  ;;  %v1666_v6 = vld [vmem:[%s6323_s2 + $0x40] sm:$0xff] }
 0x130   :  { %v4656_v31 = vsub.f32 %v6792_v8, %v993_v33  ;;  %v4663_v5 = vmul.f32 %v227_v12, %v227_v12  ;;  %v4665_v1 = vmul.f32 %v228_v23, %v228_v23  ;;  %v1294_v10 = vsub.f32 %v1156_v51, %v4233_v36 }
 0x131   :  { %6789 = vst [vmem:[#allocation82_spill] sm:$0xff] %v4648_v9  ;;  %v1295_v38 = vsub.f32 %v1156_v51, %v4284_v21  ;;  %v1296_v20 = vsub.f32 %v1156_v51, %v4288_v28  ;;  %v1297_v33 = vsub.f32 %v1156_v51, %v4292_v13  ;;  %v4678_v44 = vsub.f32 %v4492_v61, %v4233_v36  ;;  %v736_v51 = vpop.permute.xlu1 %735  ;;  %v60_v18 = vpop.permute.xlu0 %59 }
 0x132   :  { %6791 = vst [vmem:[#allocation83_spill] sm:$0xff] %v4652_v24  ;;  %v4682_v12 = vsub.f32 %v4492_v61, %v4284_v21  ;;  %v4686_v23 = vsub.f32 %v4492_v61, %v4288_v28  ;;  %v4690_v16 = vsub.f32 %v4492_v61, %v4292_v13  ;;  %1737 = vperm.xlu0 %3064, %v1673_v60   ;;  %v6796_v61 = vld [vmem:[#allocation88_spill] sm:$0xff]  ;;  %vm1931_vm14 = vcmp.ge.f32.partialorder %v4624_v3, -1.0 }
 0x133   :  { %6793 = vst [vmem:[#allocation84_spill] sm:$0xff] %v4656_v31  ;;  %v1422_v39 = vmul.f32 %v1294_v10, %v1294_v10  ;;  %v1423_v19 = vmul.f32 %v1295_v38, %v1295_v38  ;;  %v1424_v7 = vmul.f32 %v1296_v20, %v1296_v20  ;;  %v1425_v62 = vmul.f32 %v1297_v33, %v1297_v33  ;;  %v6798_v10 = vld [vmem:[#allocation89_spill] sm:$0xff]  ;;  %v6800_v20 = vld [vmem:[#allocation90_spill] sm:$0xff] }
 0x134   :  { %1716 = vperm.xlu2 %3065, %v1666_v6   ;;  %v874_v31 = vsub.f32 %v736_v51, %v3401_v43  ;;  %v875_v24 = vsub.f32 %v736_v51, %v3405_v46  ;;  %v876_v9 = vsub.f32 %v736_v51, %v3407_v34  ;;  %v877_v6 = vsub.f32 %v736_v51, %v3412_v54  ;;  %v1676_v43 = vld [vmem:[%s6323_s2 + $0x90] sm:$0xff]  ;;  %v1168_v51 = vpop.permute.xlu2 %1167 }
 0x135   :  { %v4697_v14 = vsub.f32 %v6794_v63, %v1422_v39  ;;  %v4700_v60 = vsub.f32 %v6796_v61, %v1423_v19  ;;  %v4703_v38 = vsub.f32 %v6798_v10, %v1424_v7  ;;  %v4706_v33 = vsub.f32 %v6800_v20, %v1425_v62  ;;  %v1668_v63 = vld [vmem:[%s6323_s2 + $0x50] sm:$0xff] }
 0x136   :  { %v230_v39 = vsub.f32 %v60_v18, %v3368_v47  ;;  %v231_v19 = vsub.f32 %v60_v18, %v3370_v48  ;;  %v232_v7 = vsub.f32 %v60_v18, %v3372_v49  ;;  %v233_v62 = vsub.f32 %v60_v18, %v3374_v50  ;;  %1722 = vperm.xlu1 %3066, %v1668_v63  }
 0x137   :  { %6795 = vst [vmem:[#allocation87_spill] sm:$0xff] %v4697_v14  ;;  %v1002_v46 = vmul.f32 %v874_v31, %v874_v31  ;;  %v1003_v34 = vmul.f32 %v875_v24, %v875_v24  ;;  %v1004_v61 = vmul.f32 %v876_v9, %v876_v9  ;;  %v1005_v54 = vmul.f32 %v877_v6, %v877_v6 }
 0x138   :  { %6797 = vst [vmem:[#allocation88_spill] sm:$0xff] %v4700_v60  ;;  %v358_v10 = vmul.f32 %v230_v39, %v230_v39  ;;  %v359_v20 = vmul.f32 %v231_v19, %v231_v19  ;;  %v360_v8 = vmul.f32 %v232_v7, %v232_v7  ;;  %v6802_v18 = vsub.f32 0.0, %v4434_v11 }
 0x139   :  { %6799 = vst [vmem:[#allocation89_spill] sm:$0xff] %v4703_v38  ;;  %v1669_v38 = vld [vmem:[%s6323_s2 + $0x58] sm:$0xff]  ;;  %v6804_v14 = vsub.f32 0.0, %v4451_v30  ;;  %v6806_v9 = vsub.f32 0.0, %v4453_v22  ;;  %v6808_v6 = vsub.f32 0.0, %v4455_v42  ;;  %v1306_v11 = vsub.f32 %v1168_v51, %v4233_v36  ;;  %v1144_v22 = vpop.permute.xlu1 %1143 }
 0x13a   :  { %6801 = vst [vmem:[#allocation90_spill] sm:$0xff] %v4706_v33  ;;  %v361_v33 = vmul.f32 %v233_v62, %v233_v62  ;;  %v4727_v60 = vsub.f32 %v6802_v18, %v1002_v46  ;;  %1746 = vperm.xlu0 %3064, %v1676_v43   ;;  %v486_v63 = vsub.f32 0.0, %v358_v10  ;;  %v487_v19 = vsub.f32 0.0, %v359_v20  ;;  %v6811_v42 = vld [vmem:[#allocation32_spill] sm:$0xff]  ;;  %v6813_v43 = vld [vmem:[#allocation33_spill] sm:$0xff]  ;;  %v85_v20 = vpop.permute.xlu0 %84 }
 0x13b   :  { %v4731_v31 = vsub.f32 %v6804_v14, %v1003_v34  ;;  %v4735_v24 = vsub.f32 %v6806_v9, %v1004_v61  ;;  %v4739_v39 = vsub.f32 %v6808_v6, %v1005_v54  ;;  %v488_v7 = vsub.f32 0.0, %v360_v8  ;;  %v6810_v34 = vld [vmem:[#allocation29_spill] sm:$0xff]  ;;  %v6815_v8 = vld [vmem:[#allocation34_spill] sm:$0xff] }
 0x13c   :  { %6803 = vst [vmem:[#allocation127_spill] sm:$0xff] %v4727_v60  ;;  %v489_v62 = vsub.f32 0.0, %v361_v33  ;;  %v1307_v46 = vsub.f32 %v1168_v51, %v4284_v21  ;;  %v1308_v30 = vsub.f32 %v1168_v51, %v4288_v28  ;;  %v1309_v14 = vsub.f32 %v1168_v51, %v4292_v13  ;;  %1725 = vperm.xlu2 %3065, %v1669_v38   ;;  %v1671_v38 = vld [vmem:[%s6323_s2 + $0x68] sm:$0xff] }
 0x13d   :  { %6805 = vst [vmem:[#allocation128_spill] sm:$0xff] %v4731_v31  ;;  %v4746_v61 = vsub.f32 %v486_v63, %v6810_v34  ;;  %v4749_v54 = vsub.f32 %v487_v19, %v6811_v42  ;;  %v4752_v10 = vsub.f32 %v488_v7, %v6813_v43  ;;  %v1434_v18 = vmul.f32 %v1306_v11, %v1306_v11  ;;  %v6817_v11 = vld [vmem:[#allocation10_spill] sm:$0xff]  ;;  %v6823_v43 = vld [vmem:[#allocation19_spill] sm:$0xff] }
 0x13e   :  { %6807 = vst [vmem:[#allocation129_spill] sm:$0xff] %v4735_v24  ;;  %v4755_v33 = vsub.f32 %v489_v62, %v6815_v8  ;;  %v1435_v9 = vmul.f32 %v1307_v46, %v1307_v46  ;;  %v1436_v6 = vmul.f32 %v1308_v30, %v1308_v30  ;;  %v1282_v51 = vsub.f32 %v1144_v22, %v4233_v36  ;;  %v1679_v62 = vld [vmem:[%s6323_s2 + $0xa8] sm:$0xff] }
 0x13f   :  { %6809 = vst [vmem:[#allocation130_spill] sm:$0xff] %v4739_v39  ;;  %v1437_v39 = vmul.f32 %v1309_v14, %v1309_v14  ;;  %v1283_v63 = vsub.f32 %v1144_v22, %v4284_v21  ;;  %v1284_v19 = vsub.f32 %v1144_v22, %v4288_v28  ;;  %v1285_v7 = vsub.f32 %v1144_v22, %v4292_v13  ;;  %v6819_v30 = vld [vmem:[#allocation6_spill] sm:$0xff] }
 0x140   :  { %6812 = vst [vmem:[#allocation29_spill] sm:$0xff] %v4749_v54  ;;  %v4768_v46 = vsub.f32 %v6817_v11, %v1434_v18  ;;  %v4771_v14 = vsub.f32 %v6819_v30, %v1435_v9  ;;  %v6821_v34 = vld [vmem:[#allocation18_spill] sm:$0xff]  ;;  %v1410_v24 = vmul.f32 %v1282_v51, %v1282_v51  ;;  %1731 = vperm.xlu1 %3066, %v1671_v38   ;;  %v1180_v30 = vpop.permute.xlu2 %1179  ;;  %vm1932_vm15 = vcmp.ge.f32.partialorder %v4627_v58, -1.0 }
 0x141   :  { %6814 = vst [vmem:[#allocation32_spill] sm:$0xff] %v4752_v10  ;;  %v4774_v42 = vsub.f32 %v6821_v34, %v1436_v6  ;;  %v4777_v8 = vsub.f32 %v6823_v43, %v1437_v39  ;;  %v1411_v31 = vmul.f32 %v1283_v63, %v1283_v63  ;;  %v1412_v60 = vmul.f32 %v1284_v19, %v1284_v19  ;;  %v6825_v39 = vld [vmem:[#allocation13_spill] sm:$0xff]  ;;  %v6829_v38 = vld [vmem:[#allocation98_spill] sm:$0xff]  ;;  %v6844_v10 = vld [vmem:[#allocation20_spill] sm:$0xff] }
 0x142   :  { %6816 = vst [vmem:[#allocation33_spill] sm:$0xff] %v4755_v33  ;;  %v1413_v22 = vmul.f32 %v1285_v7, %v1285_v7  ;;  %v1672_v33 = vld [vmem:[%s6323_s2 + $0x70] sm:$0xff]  ;;  %v250_v18 = vsub.f32 %v85_v20, %v3368_v47  ;;  %v251_v9 = vsub.f32 %v85_v20, %v3370_v48  ;;  %v252_v11 = vsub.f32 %v85_v20, %v3372_v49  ;;  %v6827_v63 = vld [vmem:[#allocation25_spill] sm:$0xff]  ;;  %v6831_v34 = vld [vmem:[#allocation26_spill] sm:$0xff] }
 0x143   :  { %6818 = vst [vmem:[#allocation34_spill] sm:$0xff] %v4768_v46  ;;  %v253_v6 = vsub.f32 %v85_v20, %v3374_v50  ;;  %1755 = vperm.xlu0 %3064, %v1679_v62   ;;  %v4787_v51 = vsub.f32 %v6825_v39, %v1410_v24  ;;  %v4790_v19 = vsub.f32 %v6827_v63, %v1411_v31 }
 0x144   :  { %6820 = vst [vmem:[#allocation10_spill] sm:$0xff] %v4771_v14  ;;  %v4793_v7 = vsub.f32 %v6829_v38, %v1412_v60  ;;  %v4796_v43 = vsub.f32 %v6831_v34, %v1413_v22  ;;  %v380_v14 = vmul.f32 %v252_v11, %v252_v11  ;;  %1734 = vperm.xlu2 %3065, %v1672_v33   ;;  %v1674_v22 = vld [vmem:[%s6323_s2 + $0x80] sm:$0xff] }
 0x145   :  { %6822 = vst [vmem:[#allocation6_spill] sm:$0xff] %v4774_v42  ;;  %v379_v42 = vmul.f32 %v251_v9, %v251_v9  ;;  %v381_v46 = vmul.f32 %v253_v6, %v253_v6  ;;  %v1318_v20 = vsub.f32 %v1180_v30, %v4233_v36  ;;  %v1319_v62 = vsub.f32 %v1180_v30, %v4284_v21  ;;  %v100_v6 = vpop.permute.xlu0 %99  ;;  %v1682_v34 = vld [vmem:[%s6323_s2 + $0xc0] sm:$0xff] }
 0x146   :  { %6824 = vst [vmem:[#allocation18_spill] sm:$0xff] %v4777_v8  ;;  %v378_v8 = vmul.f32 %v250_v18, %v250_v18  ;;  %v1320_v24 = vsub.f32 %v1180_v30, %v4288_v28  ;;  %v1321_v31 = vsub.f32 %v1180_v30, %v4292_v13  ;;  %v508_v60 = vsub.f32 0.0, %v380_v14 }
 0x147   :  { %6826 = vst [vmem:[#allocation19_spill] sm:$0xff] %v4787_v51  ;;  %v507_v63 = vsub.f32 0.0, %v379_v42  ;;  %v509_v38 = vsub.f32 0.0, %v381_v46  ;;  %v1446_v18 = vmul.f32 %v1318_v20, %v1318_v20  ;;  %v1447_v9 = vmul.f32 %v1319_v62, %v1319_v62  ;;  %v6834_v42 = vld [vmem:[#allocation40_spill] sm:$0xff]  ;;  %v6836_v46 = vld [vmem:[#allocation41_spill] sm:$0xff]  ;;  %v6840_v20 = vld [vmem:[#allocation11_spill] sm:$0xff] }
 0x148   :  { %6828 = vst [vmem:[#allocation13_spill] sm:$0xff] %v4790_v19  ;;  %v506_v39 = vsub.f32 0.0, %v378_v8  ;;  %v1448_v33 = vmul.f32 %v1320_v24, %v1320_v24  ;;  %v1449_v11 = vmul.f32 %v1321_v31, %v1321_v31  ;;  %v4815_v8 = vsub.f32 %v508_v60, %v6836_v46  ;;  %v6838_v19 = vld [vmem:[#allocation42_spill] sm:$0xff]  ;;  %v6842_v24 = vld [vmem:[#allocation8_spill] sm:$0xff]  ;;  %1740 = vperm.xlu1 %3066, %v1674_v22  }
 0x149   :  { %6830 = vst [vmem:[#allocation25_spill] sm:$0xff] %v4793_v7  ;;  %v1152_v7 = vpop.permute.xlu1 %1151  ;;  %v4812_v14 = vsub.f32 %v507_v63, %v6834_v42  ;;  %v4818_v51 = vsub.f32 %v509_v38, %v6838_v19  ;;  %v4821_v62 = vsub.f32 %v6840_v20, %v1446_v18  ;;  %v4824_v31 = vsub.f32 %v6842_v24, %v1447_v9  ;;  %v1675_v63 = vld [vmem:[%s6323_s2 + $0x88] sm:$0xff]  ;;  %v1192_v24 = vpop.permute.xlu2 %1191 }
 0x14a   :  { %6832 = vst [vmem:[#allocation98_spill] sm:$0xff] %v4796_v43  ;;  %v6833_v43 = vld [vmem:[#allocation38_spill] sm:$0xff]  ;;  %v4827_v54 = vsub.f32 %v6844_v10, %v1448_v33  ;;  %v1290_v19 = vsub.f32 %v1152_v7, %v4233_v36  ;;  %v1291_v60 = vsub.f32 %v1152_v7, %v4284_v21  ;;  %v1292_v38 = vsub.f32 %v1152_v7, %v4288_v28 }
 0x14b   :  { %v4809_v30 = vsub.f32 %v506_v39, %v6833_v43  ;;  %6835 = vst [vmem:[#allocation26_spill] sm:$0xff] %v4812_v14  ;;  %v6846_v43 = vld [vmem:[#allocation21_spill] sm:$0xff]  ;;  %v1293_v18 = vsub.f32 %v1152_v7, %v4292_v13  ;;  %1764 = vperm.xlu0 %3064, %v1682_v34   ;;  %v262_v10 = vsub.f32 %v100_v6, %v3368_v47  ;;  %v6848_v7 = vld [vmem:[#allocation23_spill] sm:$0xff] }
 0x14c   :  { %6837 = vst [vmem:[#allocation38_spill] sm:$0xff] %v4815_v8  ;;  %v4830_v39 = vsub.f32 %v6846_v43, %v1449_v11  ;;  %v263_v9 = vsub.f32 %v100_v6, %v3370_v48  ;;  %v264_v33 = vsub.f32 %v100_v6, %v3372_v49  ;;  %v265_v22 = vsub.f32 %v100_v6, %v3374_v50  ;;  %v6852_v8 = vld [vmem:[#allocation15_spill] sm:$0xff]  ;;  %v6854_v6 = vld [vmem:[#allocation16_spill] sm:$0xff] }
 0x14d   :  { %6839 = vst [vmem:[#allocation40_spill] sm:$0xff] %v4818_v51  ;;  %v1418_v11 = vmul.f32 %v1290_v19, %v1290_v19  ;;  %v1419_v42 = vmul.f32 %v1291_v60, %v1291_v60  ;;  %v1420_v46 = vmul.f32 %v1292_v38, %v1292_v38  ;;  %v1421_v20 = vmul.f32 %v1293_v18, %v1293_v18 }
 0x14e   :  { %6841 = vst [vmem:[#allocation41_spill] sm:$0xff] %v4821_v62  ;;  %1743 = vperm.xlu2 %3065, %v1675_v63   ;;  %v390_v43 = vmul.f32 %v262_v10, %v262_v10  ;;  %v6850_v62 = vld [vmem:[#allocation14_spill] sm:$0xff]  ;;  %v1677_v63 = vld [vmem:[%s6323_s2 + $0x98] sm:$0xff] }
 0x14f   :  { %6843 = vst [vmem:[#allocation42_spill] sm:$0xff] %v4824_v31  ;;  %v393_v31 = vmul.f32 %v265_v22, %v265_v22  ;;  %v4844_v34 = vsub.f32 %v6848_v7, %v1418_v11  ;;  %v4847_v51 = vsub.f32 %v6850_v62, %v1419_v42  ;;  %v4850_v14 = vsub.f32 %v6852_v8, %v1420_v46  ;;  %v6856_v42 = vld [vmem:[#allocation47_spill] sm:$0xff] }
 0x150   :  { %6845 = vst [vmem:[#allocation11_spill] sm:$0xff] %v4827_v54  ;;  %v392_v54 = vmul.f32 %v264_v33, %v264_v33  ;;  %v4853_v19 = vsub.f32 %v6854_v6, %v1421_v20  ;;  %v518_v60 = vsub.f32 0.0, %v390_v43  ;;  %v1330_v62 = vsub.f32 %v1192_v24, %v4233_v36  ;;  %v6857_v20 = vld [vmem:[#allocation50_spill] sm:$0xff]  ;;  %v6861_v43 = vld [vmem:[#allocation52_spill] sm:$0xff]  ;;  %v115_v6 = vpop.permute.xlu0 %114  ;;  %1749 = vperm.xlu1 %3066, %v1677_v63  }
 0x151   :  { %6847 = vst [vmem:[#allocation8_spill] sm:$0xff] %v4830_v39  ;;  %v391_v39 = vmul.f32 %v263_v9, %v263_v9  ;;  %v521_v10 = vsub.f32 0.0, %v393_v31  ;;  %v1685_v9 = vld [vmem:[%s6323_s2 + $0xd8] sm:$0xff]  ;;  %v1331_v8 = vsub.f32 %v1192_v24, %v4284_v21  ;;  %v1332_v33 = vsub.f32 %v1192_v24, %v4288_v28  ;;  %v1164_v11 = vpop.permute.xlu1 %1163 }
 0x152   :  { %6849 = vst [vmem:[#allocation20_spill] sm:$0xff] %v4844_v34  ;;  %v520_v18 = vsub.f32 0.0, %v392_v54  ;;  %v1333_v22 = vsub.f32 %v1192_v24, %v4292_v13  ;;  %v4866_v46 = vsub.f32 %v518_v60, %v6856_v42  ;;  %v6859_v54 = vld [vmem:[#allocation51_spill] sm:$0xff]  ;;  %v1458_v24 = vmul.f32 %v1330_v62, %v1330_v62 }
 0x153   :  { %6851 = vst [vmem:[#allocation21_spill] sm:$0xff] %v4847_v51  ;;  %v519_v38 = vsub.f32 0.0, %v391_v39  ;;  %v4875_v7 = vsub.f32 %v521_v10, %v6861_v43  ;;  %v1460_v51 = vmul.f32 %v1332_v33, %v1332_v33  ;;  %1773 = vperm.xlu0 %3064, %v1685_v9   ;;  %v1303_v42 = vsub.f32 %v1164_v11, %v4284_v21 }
 0x154   :  { %6853 = vst [vmem:[#allocation23_spill] sm:$0xff] %v4850_v14  ;;  %v4872_v31 = vsub.f32 %v520_v18, %v6859_v54  ;;  %v1459_v14 = vmul.f32 %v1331_v8, %v1331_v8  ;;  %v1461_v60 = vmul.f32 %v1333_v22, %v1333_v22  ;;  %v1304_v18 = vsub.f32 %v1164_v11, %v4288_v28  ;;  %v6865_v54 = vld [vmem:[#allocation27_spill] sm:$0xff]  ;;  %v6867_v8 = vld [vmem:[#allocation28_spill] sm:$0xff] }
 0x155   :  { %6855 = vst [vmem:[#allocation14_spill] sm:$0xff] %v4853_v19  ;;  %v4869_v39 = vsub.f32 %v519_v38, %v6857_v20  ;;  %v1678_v19 = vld [vmem:[%s6323_s2 + $0xa0] sm:$0xff]  ;;  %v1302_v38 = vsub.f32 %v1164_v11, %v4233_v36  ;;  %v1305_v10 = vsub.f32 %v1164_v11, %v4292_v13  ;;  %v4885_v20 = vsub.f32 %v4136_v56, %v1458_v24  ;;  %v6869_v24 = vld [vmem:[#allocation30_spill] sm:$0xff] }
 0x156   :  { %6860 = vst [vmem:[#allocation16_spill] sm:$0xff] %v4872_v31  ;;  %v4888_v63 = vsub.f32 %v4140_v55, %v1459_v14  ;;  %v4891_v62 = vsub.f32 %v6865_v54, %v1460_v51  ;;  %v4894_v33 = vsub.f32 %v6867_v8, %v1461_v60  ;;  %1752 = vperm.xlu2 %3065, %v1678_v19   ;;  %v1204_v14 = vpop.permute.xlu2 %1203  ;;  %v1680_v51 = vld [vmem:[%s6323_s2 + $0xb0] sm:$0xff]  ;;  %v6871_v19 = vld [vmem:[#allocation100_spill] sm:$0xff]  ;;  %v6880_v31 = vld [vmem:[#allocation62_spill] sm:$0xff] }
 0x157   :  { %6858 = vst [vmem:[#allocation15_spill] sm:$0xff] %v4869_v39  ;;  %v1430_v9 = vmul.f32 %v1302_v38, %v1302_v38  ;;  %v1431_v22 = vmul.f32 %v1303_v42, %v1303_v42  ;;  %v1432_v43 = vmul.f32 %v1304_v18, %v1304_v18  ;;  %v1433_v34 = vmul.f32 %v1305_v10, %v1305_v10  ;;  %v6873_v42 = vld [vmem:[#allocation43_spill] sm:$0xff]  ;;  %v6875_v10 = vld [vmem:[#allocation44_spill] sm:$0xff] }
 0x158   :  { %6862 = vst [vmem:[#allocation47_spill] sm:$0xff] %v4875_v7  ;;  %v274_v7 = vsub.f32 %v115_v6, %v3368_v47  ;;  %v275_v11 = vsub.f32 %v115_v6, %v3370_v48  ;;  %v276_v56 = vsub.f32 %v115_v6, %v3372_v49  ;;  %v277_v55 = vsub.f32 %v115_v6, %v3374_v50  ;;  %v1688_v6 = vld [vmem:[%s6323_s2 + $0xf0] sm:$0xff] }
 0x159   :  { %6863 = vst [vmem:[#allocation50_spill] sm:$0xff] %v4885_v20  ;;  %v4904_v60 = vsub.f32 %v6869_v24, %v1430_v9  ;;  %v4907_v38 = vsub.f32 %v6871_v19, %v1431_v22  ;;  %v4910_v18 = vsub.f32 %v6873_v42, %v1432_v43  ;;  %v4913_v54 = vsub.f32 %v6875_v10, %v1433_v34  ;;  %v1681_v34 = vld [vmem:[%s6323_s2 + $0xb8] sm:$0xff] }
 0x15a   :  { %6864 = vst [vmem:[#allocation51_spill] sm:$0xff] %v4888_v63  ;;  %v402_v8 = vmul.f32 %v274_v7, %v274_v7  ;;  %v405_v63 = vmul.f32 %v277_v55, %v277_v55  ;;  %v1342_v9 = vsub.f32 %v1204_v14, %v4233_v36  ;;  %v1343_v24 = vsub.f32 %v1204_v14, %v4284_v21 }
 0x15b   :  { %6866 = vst [vmem:[#allocation52_spill] sm:$0xff] %v4891_v62  ;;  %v404_v62 = vmul.f32 %v276_v56, %v276_v56  ;;  %v1344_v22 = vsub.f32 %v1204_v14, %v4288_v28  ;;  %v1345_v43 = vsub.f32 %v1204_v14, %v4292_v13  ;;  %1758 = vperm.xlu1 %3066, %v1680_v51   ;;  %v6878_v14 = vld [vmem:[#allocation61_spill] sm:$0xff] }
 0x15c   :  { %6868 = vst [vmem:[#allocation27_spill] sm:$0xff] %v4894_v33  ;;  %v403_v33 = vmul.f32 %v275_v11, %v275_v11  ;;  %v530_v19 = vsub.f32 0.0, %v402_v8  ;;  %v533_v7 = vsub.f32 0.0, %v405_v63  ;;  %v1176_v11 = vpop.permute.xlu1 %1175  ;;  %1782 = vperm.xlu0 %3064, %v1688_v6   ;;  %v1470_v56 = vmul.f32 %v1342_v9, %v1342_v9  ;;  %v6882_v8 = vld [vmem:[#allocation63_spill] sm:$0xff]  ;;  %v6886_v6 = vld [vmem:[#allocation36_spill] sm:$0xff] }
 0x15d   :  { %6870 = vst [vmem:[#allocation28_spill] sm:$0xff] %v4904_v60  ;;  %v532_v10 = vsub.f32 0.0, %v404_v62  ;;  %v1471_v55 = vmul.f32 %v1343_v24, %v1343_v24  ;;  %v6877_v60 = vld [vmem:[#allocation60_spill] sm:$0xff]  ;;  %v6884_v63 = vld [vmem:[#allocation35_spill] sm:$0xff]  ;;  %v6888_v24 = vld [vmem:[#allocation37_spill] sm:$0xff] }
 0x15e   :  { %6872 = vst [vmem:[#allocation30_spill] sm:$0xff] %v4907_v38  ;;  %v531_v42 = vsub.f32 0.0, %v403_v33  ;;  %v130_v38 = vpop.permute.xlu0 %129  ;;  %v4926_v20 = vsub.f32 %v530_v19, %v6877_v60  ;;  %v4935_v33 = vsub.f32 %v533_v7, %v6882_v8  ;;  %1761 = vperm.xlu2 %3065, %v1681_v34   ;;  %v4938_v62 = vsub.f32 %v6884_v63, %v1470_v56  ;;  %v6890_v60 = vld [vmem:[#allocation39_spill] sm:$0xff] }
 0x15f   :  { %6874 = vst [vmem:[#allocation100_spill] sm:$0xff] %v4910_v18  ;;  %v1473_v18 = vmul.f32 %v1345_v43, %v1345_v43  ;;  %v4932_v39 = vsub.f32 %v532_v10, %v6880_v31  ;;  %v4941_v9 = vsub.f32 %v6886_v6, %v1471_v55  ;;  %v1314_v19 = vsub.f32 %v1176_v11, %v4233_v36  ;;  %v1683_v10 = vld [vmem:[%s6323_s2 + $0xc8] sm:$0xff]  ;;  %v1216_v6 = vpop.permute.xlu2 %1215 }
 0x160   :  { %6876 = vst [vmem:[#allocation43_spill] sm:$0xff] %v4913_v54  ;;  %v1472_v54 = vmul.f32 %v1344_v22, %v1344_v22  ;;  %v4929_v51 = vsub.f32 %v531_v42, %v6878_v14  ;;  %v1315_v31 = vsub.f32 %v1176_v11, %v4284_v21  ;;  %v1316_v42 = vsub.f32 %v1176_v11, %v4288_v28 }
 0x161   :  { %6881 = vst [vmem:[#allocation60_spill] sm:$0xff] %v4932_v39  ;;  %v4947_v43 = vsub.f32 %v6890_v60, %v1473_v18  ;;  %v1317_v34 = vsub.f32 %v1176_v11, %v4292_v13  ;;  %v286_v7 = vsub.f32 %v130_v38, %v3368_v47  ;;  %v288_v56 = vsub.f32 %v130_v38, %v3372_v49 }
 0x162   :  { %6879 = vst [vmem:[#allocation44_spill] sm:$0xff] %v4929_v51  ;;  %v4944_v22 = vsub.f32 %v6888_v24, %v1472_v54  ;;  %v287_v54 = vsub.f32 %v130_v38, %v3370_v48  ;;  %v289_v18 = vsub.f32 %v130_v38, %v3374_v50  ;;  %v1442_v55 = vmul.f32 %v1314_v19, %v1314_v19  ;;  %v6896_v38 = vld [vmem:[#allocation54_spill] sm:$0xff] }
 0x163   :  { %6883 = vst [vmem:[#allocation61_spill] sm:$0xff] %v4935_v33  ;;  %v1443_v14 = vmul.f32 %v1315_v31, %v1315_v31  ;;  %v1444_v8 = vmul.f32 %v1316_v42, %v1316_v42  ;;  %v1445_v63 = vmul.f32 %v1317_v34, %v1317_v34  ;;  %v414_v24 = vmul.f32 %v286_v7, %v286_v7  ;;  %v6894_v33 = vld [vmem:[#allocation53_spill] sm:$0xff]  ;;  %v6898_v31 = vld [vmem:[#allocation55_spill] sm:$0xff] }
 0x164   :  { %6885 = vst [vmem:[#allocation62_spill] sm:$0xff] %v4938_v62  ;;  %v415_v60 = vmul.f32 %v287_v54, %v287_v54  ;;  %v416_v11 = vmul.f32 %v288_v56, %v288_v56  ;;  %1767 = vperm.xlu1 %3066, %v1683_v10   ;;  %v1354_v56 = vsub.f32 %v1216_v6, %v4233_v36 }
 0x165   :  { %6887 = vst [vmem:[#allocation63_spill] sm:$0xff] %v4941_v9  ;;  %v6892_v9 = vld [vmem:[#allocation104_spill] sm:$0xff]  ;;  %v4967_v39 = vsub.f32 %v6894_v33, %v1443_v14  ;;  %v4970_v19 = vsub.f32 %v6896_v38, %v1444_v8  ;;  %v4973_v42 = vsub.f32 %v6898_v31, %v1445_v63  ;;  %v542_v34 = vsub.f32 0.0, %v414_v24  ;;  %v1188_v33 = vpop.permute.xlu1 %1187  ;;  %v6900_v14 = vld [vmem:[#allocation69_spill] sm:$0xff]  ;;  %v6902_v38 = vld [vmem:[#allocation70_spill] sm:$0xff] }
 0x166   :  { %6889 = vst [vmem:[#allocation35_spill] sm:$0xff] %v4944_v22  ;;  %v1684_v22 = vld [vmem:[%s6323_s2 + $0xd0] sm:$0xff]  ;;  %v4964_v62 = vsub.f32 %v6892_v9, %v1442_v55  ;;  %v543_v7 = vsub.f32 0.0, %v415_v60  ;;  %v544_v54 = vsub.f32 0.0, %v416_v11  ;;  %v1356_v9 = vsub.f32 %v1216_v6, %v4288_v28  ;;  %v6904_v24 = vld [vmem:[#allocation72_spill] sm:$0xff]  ;;  %v145_v31 = vpop.permute.xlu0 %144 }
 0x167   :  { %6891 = vst [vmem:[#allocation36_spill] sm:$0xff] %v4947_v43  ;;  %v417_v43 = vmul.f32 %v289_v18, %v289_v18  ;;  %v1355_v18 = vsub.f32 %v1216_v6, %v4284_v21  ;;  %v1357_v55 = vsub.f32 %v1216_v6, %v4292_v13  ;;  %1770 = vperm.xlu2 %3065, %v1684_v22   ;;  %v1686_v22 = vld [vmem:[%s6323_s2 + $0xe0] sm:$0xff] }
 0x168   :  { %6893 = vst [vmem:[#allocation37_spill] sm:$0xff] %v4964_v62  ;;  %v4980_v8 = vsub.f32 %v542_v34, %v6900_v14  ;;  %v4983_v63 = vsub.f32 %v543_v7, %v6902_v38  ;;  %v4986_v60 = vsub.f32 %v544_v54, %v6904_v24  ;;  %v1326_v6 = vsub.f32 %v1188_v33, %v4233_v36  ;;  %v6908_v14 = vld [vmem:[#allocation45_spill] sm:$0xff]  ;;  %v6910_v38 = vld [vmem:[#allocation46_spill] sm:$0xff] }
 0x169   :  { %6895 = vst [vmem:[#allocation39_spill] sm:$0xff] %v4967_v39  ;;  %v545_v10 = vsub.f32 0.0, %v417_v43  ;;  %v6906_v43 = vld [vmem:[#allocation73_spill] sm:$0xff]  ;;  %v1484_v39 = vmul.f32 %v1356_v9, %v1356_v9  ;;  %v1485_v62 = vmul.f32 %v1357_v55, %v1357_v55  ;;  %v1327_v34 = vsub.f32 %v1188_v33, %v4284_v21 }
 0x16a   :  { %6897 = vst [vmem:[#allocation104_spill] sm:$0xff] %v4970_v19  ;;  %v1483_v19 = vmul.f32 %v1355_v18, %v1355_v18  ;;  %v1328_v7 = vsub.f32 %v1188_v33, %v4288_v28  ;;  %v1329_v54 = vsub.f32 %v1188_v33, %v4292_v13  ;;  %v6912_v18 = vld [vmem:[#allocation48_spill] sm:$0xff]  ;;  %v6914_v55 = vld [vmem:[#allocation49_spill] sm:$0xff]  ;;  %v1687_v33 = vld [vmem:[%s6323_s2 + $0xe8] sm:$0xff] }
 0x16b   :  { %6899 = vst [vmem:[#allocation53_spill] sm:$0xff] %v4973_v42  ;;  %v4989_v11 = vsub.f32 %v545_v10, %v6906_v43  ;;  %v1482_v42 = vmul.f32 %v1354_v56, %v1354_v56  ;;  %v5005_v9 = vsub.f32 %v6912_v18, %v1484_v39  ;;  %v5008_v24 = vsub.f32 %v6914_v55, %v1485_v62  ;;  %v6916_v62 = vld [vmem:[#allocation64_spill] sm:$0xff] }
 0x16c   :  { %6901 = vst [vmem:[#allocation54_spill] sm:$0xff] %v4980_v8  ;;  %v5002_v56 = vsub.f32 %v6910_v38, %v1483_v19  ;;  %v1454_v43 = vmul.f32 %v1326_v6, %v1326_v6  ;;  %1776 = vperm.xlu1 %3066, %v1686_v22   ;;  %v299_v19 = vsub.f32 %v145_v31, %v3370_v48  ;;  %v1228_v38 = vpop.permute.xlu2 %1227  ;;  %v6918_v6 = vld [vmem:[#allocation107_spill] sm:$0xff]  ;;  %v6920_v22 = vld [vmem:[#allocation108_spill] sm:$0xff] }
 0x16d   :  { %6903 = vst [vmem:[#allocation55_spill] sm:$0xff] %v4983_v63  ;;  %v4999_v10 = vsub.f32 %v6908_v14, %v1482_v42  ;;  %v1457_v63 = vmul.f32 %v1329_v54, %v1329_v54  ;;  %v298_v42 = vsub.f32 %v145_v31, %v3368_v47  ;;  %v300_v14 = vsub.f32 %v145_v31, %v3372_v49  ;;  %v6922_v54 = vld [vmem:[#allocation109_spill] sm:$0xff] }
 0x16e   :  { %6905 = vst [vmem:[#allocation69_spill] sm:$0xff] %v4986_v60  ;;  %v1456_v60 = vmul.f32 %v1328_v7, %v1328_v7  ;;  %v301_v39 = vsub.f32 %v145_v31, %v3374_v50  ;;  %v5018_v18 = vsub.f32 %v6916_v62, %v1454_v43  ;;  %v1366_v31 = vsub.f32 %v1228_v38, %v4233_v36 }
 0x16f   :  { %6907 = vst [vmem:[#allocation70_spill] sm:$0xff] %v4989_v11  ;;  %v1455_v11 = vmul.f32 %v1327_v34, %v1327_v34  ;;  %v5027_v55 = vsub.f32 %v6922_v54, %v1457_v63  ;;  %1779 = vperm.xlu2 %3065, %v1687_v33   ;;  %v1367_v8 = vsub.f32 %v1228_v38, %v4284_v21  ;;  %v1689_v63 = vld [vmem:[%s6323_s2 + $0xf8] sm:$0xff]  ;;  %v6924_v54 = vld [vmem:[#allocation75_spill] sm:$0xff] }
 0x170   :  { %6909 = vst [vmem:[#allocation72_spill] sm:$0xff] %v4999_v10  ;;  %v5024_v7 = vsub.f32 %v6920_v22, %v1456_v60  ;;  %v429_v10 = vmul.f32 %v301_v39, %v301_v39  ;;  %v1368_v43 = vsub.f32 %v1228_v38, %v4288_v28  ;;  %v160_v39 = vpop.permute.xlu0 %159 }
 0x171   :  { %6911 = vst [vmem:[#allocation73_spill] sm:$0xff] %v5002_v56  ;;  %v5021_v34 = vsub.f32 %v6918_v6, %v1455_v11  ;;  %v428_v56 = vmul.f32 %v300_v14, %v300_v14  ;;  %v1369_v11 = vsub.f32 %v1228_v38, %v4292_v13  ;;  %v6932_v38 = vld [vmem:[#allocation56_spill] sm:$0xff] }
 0x172   :  { %6913 = vst [vmem:[#allocation45_spill] sm:$0xff] %v5005_v9  ;;  %v427_v9 = vmul.f32 %v299_v19, %v299_v19  ;;  %v557_v22 = vsub.f32 0.0, %v429_v10  ;;  %v1495_v19 = vmul.f32 %v1367_v8, %v1367_v8  ;;  %v1496_v33 = vmul.f32 %v1368_v43, %v1368_v43  ;;  %v6930_v10 = vld [vmem:[#allocation80_spill] sm:$0xff]  ;;  %v6936_v43 = vld [vmem:[#allocation58_spill] sm:$0xff] }
 0x173   :  { %6915 = vst [vmem:[#allocation46_spill] sm:$0xff] %v5008_v24  ;;  %v426_v24 = vmul.f32 %v298_v42, %v298_v42  ;;  %v556_v60 = vsub.f32 0.0, %v428_v56  ;;  %v1494_v42 = vmul.f32 %v1366_v31, %v1366_v31  ;;  %v1497_v14 = vmul.f32 %v1369_v11, %v1369_v11  ;;  %v6934_v31 = vld [vmem:[#allocation57_spill] sm:$0xff] }
 0x174   :  { %6917 = vst [vmem:[#allocation48_spill] sm:$0xff] %v5018_v18  ;;  %v555_v6 = vsub.f32 0.0, %v427_v9  ;;  %v5046_v56 = vsub.f32 %v557_v22, %v6930_v10  ;;  %v5052_v8 = vsub.f32 %v6934_v31, %v1495_v19  ;;  %v5055_v11 = vsub.f32 %v6936_v43, %v1496_v33  ;;  %1785 = vperm.xlu1 %3066, %v1689_v63  }
 0x175   :  { %6919 = vst [vmem:[#allocation49_spill] sm:$0xff] %v5021_v34  ;;  %v554_v62 = vsub.f32 0.0, %v426_v24  ;;  %v6926_v34 = vld [vmem:[#allocation76_spill] sm:$0xff]  ;;  %v6928_v24 = vld [vmem:[#allocation79_spill] sm:$0xff]  ;;  %v5049_v51 = vsub.f32 %v6932_v38, %v1494_v42  ;;  %v310_v42 = vsub.f32 %v160_v39, %v3368_v47  ;;  %v311_v19 = vsub.f32 %v160_v39, %v3370_v48 }
 0x176   :  { %6921 = vst [vmem:[#allocation64_spill] sm:$0xff] %v5024_v7  ;;  %v1200_v7 = vpop.permute.xlu1 %1199  ;;  %v5040_v18 = vsub.f32 %v555_v6, %v6926_v34  ;;  %v5043_v9 = vsub.f32 %v556_v60, %v6928_v24  ;;  %v312_v24 = vsub.f32 %v160_v39, %v3372_v49  ;;  %v313_v33 = vsub.f32 %v160_v39, %v3374_v50 }
 0x177   :  { %6923 = vst [vmem:[#allocation107_spill] sm:$0xff] %v5027_v55  ;;  %v5037_v55 = vsub.f32 %v554_v62, %v6924_v54  ;;  %v6938_v62 = vld [vmem:[#allocation59_spill] sm:$0xff]  ;;  %v1338_v34 = vsub.f32 %v1200_v7, %v4233_v36  ;;  %v1339_v6 = vsub.f32 %v1200_v7, %v4284_v21  ;;  %v1340_v60 = vsub.f32 %v1200_v7, %v4288_v28 }
 0x178   :  { %6927 = vst [vmem:[#allocation109_spill] sm:$0xff] %v5040_v18  ;;  %v5058_v54 = vsub.f32 %v6938_v62, %v1497_v14  ;;  %v1341_v22 = vsub.f32 %v1200_v7, %v4292_v13  ;;  %v438_v31 = vmul.f32 %v310_v42, %v310_v42  ;;  %v439_v43 = vmul.f32 %v311_v19, %v311_v19  ;;  %v6942_v7 = vld [vmem:[#allocation112_spill] sm:$0xff] }
 0x179   :  { %6925 = vst [vmem:[#allocation108_spill] sm:$0xff] %v5037_v55  ;;  %v1466_v10 = vmul.f32 %v1338_v34, %v1338_v34  ;;  %v1467_v14 = vmul.f32 %v1339_v6, %v1339_v6  ;;  %v1468_v38 = vmul.f32 %v1340_v60, %v1340_v60  ;;  %v440_v62 = vmul.f32 %v312_v24, %v312_v24  ;;  %v6946_v55 = vld [vmem:[#allocation74_spill] sm:$0xff] }
 0x17a   :  { %6929 = vst [vmem:[#allocation75_spill] sm:$0xff] %v5043_v9  ;;  %v1469_v63 = vmul.f32 %v1341_v22, %v1341_v22  ;;  %v6944_v9 = vld [vmem:[#allocation71_spill] sm:$0xff]  ;;  %v566_v34 = vsub.f32 0.0, %v438_v31  ;;  %v567_v6 = vsub.f32 0.0, %v439_v43  ;;  %v6951_v31 = vld [vmem:[#allocation93_spill] sm:$0xff]  ;;  %v175_v43 = vpop.permute.xlu0 %174 }
 0x17b   :  { %6931 = vst [vmem:[#allocation76_spill] sm:$0xff] %v5046_v56  ;;  %v5072_v56 = vsub.f32 %v6942_v7, %v1467_v14  ;;  %v5075_v18 = vsub.f32 %v6944_v9, %v1468_v38  ;;  %v568_v60 = vsub.f32 0.0, %v440_v62  ;;  %v6949_v9 = vld [vmem:[#allocation91_spill] sm:$0xff] }
 0x17c   :  { %6933 = vst [vmem:[#allocation79_spill] sm:$0xff] %v5049_v51  ;;  %v5078_v39 = vsub.f32 %v6946_v55, %v1469_v63  ;;  %v5088_v38 = vsub.f32 %v567_v6, %v6949_v9  ;;  %v6950_v55 = vld [vmem:[#allocation92_spill] sm:$0xff] }
 0x17d   :  { %6935 = vst [vmem:[#allocation80_spill] sm:$0xff] %v5052_v8  ;;  %v6940_v8 = vld [vmem:[#allocation111_spill] sm:$0xff]  ;;  %v5091_v63 = vsub.f32 %v568_v60, %v6950_v55  ;;  %v322_v55 = vsub.f32 %v175_v43, %v3368_v47 }
 0x17e   :  { %6937 = vst [vmem:[#allocation56_spill] sm:$0xff] %v5055_v11  ;;  %v1240_v11 = vpop.permute.xlu2 %1239  ;;  %v5069_v51 = vsub.f32 %v6940_v8, %v1466_v10  ;;  %v6948_v10 = vld [vmem:[#allocation5_spill] sm:$0xff] }
 0x17f   :  { %6939 = vst [vmem:[#allocation57_spill] sm:$0xff] %v5058_v54  ;;  %v441_v54 = vmul.f32 %v313_v33, %v313_v33  ;;  %v1378_v42 = vsub.f32 %v1240_v11, %v4233_v36  ;;  %v1379_v19 = vsub.f32 %v1240_v11, %v4284_v21  ;;  %v1380_v8 = vsub.f32 %v1240_v11, %v4288_v28  ;;  %v1212_v33 = vpop.permute.xlu1 %1211 }
 0x180   :  { %6941 = vst [vmem:[#allocation58_spill] sm:$0xff] %v5069_v51  ;;  %v1381_v24 = vsub.f32 %v1240_v11, %v4292_v13  ;;  %v5085_v14 = vsub.f32 %v566_v34, %v6948_v10  ;;  %v1350_v11 = vsub.f32 %v1212_v33, %v4233_v36  ;;  %v1352_v34 = vsub.f32 %v1212_v33, %v4288_v28 }
 0x181   :  { %6943 = vst [vmem:[#allocation59_spill] sm:$0xff] %v5072_v56  ;;  %v569_v22 = vsub.f32 0.0, %v441_v54  ;;  %v1506_v62 = vmul.f32 %v1378_v42, %v1378_v42  ;;  %v1507_v7 = vmul.f32 %v1379_v19, %v1379_v19  ;;  %v1351_v56 = vsub.f32 %v1212_v33, %v4284_v21 }
 0x182   :  { %6945 = vst [vmem:[#allocation111_spill] sm:$0xff] %v5075_v18  ;;  %v1509_v18 = vmul.f32 %v1381_v24, %v1381_v24  ;;  %v1353_v6 = vsub.f32 %v1212_v33, %v4292_v13  ;;  %v1478_v19 = vmul.f32 %v1350_v11, %v1350_v11  ;;  %v1480_v24 = vmul.f32 %v1352_v34, %v1352_v34 }
 0x183   :  { %6947 = vst [vmem:[#allocation112_spill] sm:$0xff] %v5078_v39  ;;  %v5094_v54 = vsub.f32 %v569_v22, %v6951_v31  ;;  %v1508_v39 = vmul.f32 %v1380_v8, %v1380_v8  ;;  %v5101_v10 = vsub.f32 %v4412_v40, %v1506_v62  ;;  %v5104_v60 = vsub.f32 %v4416_v17, %v1507_v7  ;;  %v6956_v17 = vld [vmem:[#allocation65_spill] sm:$0xff] }
 0x184   :  { %v5110_v42 = vsub.f32 %v4424_v41, %v1509_v18  ;;  %v1479_v8 = vmul.f32 %v1351_v56, %v1351_v56  ;;  %v1481_v9 = vmul.f32 %v1353_v6, %v1353_v6  ;;  %v323_v33 = vsub.f32 %v175_v43, %v3370_v48  ;;  %v6960_v41 = vld [vmem:[#allocation67_spill] sm:$0xff]  ;;  %v6962_v56 = vld [vmem:[#allocation68_spill] sm:$0xff] }
 0x185   :  { %6952 = vst [vmem:[#allocation71_spill] sm:$0xff] %v5101_v10  ;;  %v5107_v22 = vsub.f32 %v4420_v35, %v1508_v39  ;;  %v324_v40 = vsub.f32 %v175_v43, %v3372_v49  ;;  %v325_v31 = vsub.f32 %v175_v43, %v3374_v50  ;;  %v5117_v62 = vsub.f32 %v6956_v17, %v1478_v19  ;;  %v6958_v35 = vld [vmem:[#allocation66_spill] sm:$0xff] }
 0x186   :  { %6953 = vst [vmem:[#allocation74_spill] sm:$0xff] %v5104_v60  ;;  %v5120_v39 = vsub.f32 %v6958_v35, %v1479_v8  ;;  %v5123_v18 = vsub.f32 %v6960_v41, %v1480_v24  ;;  %v5126_v7 = vsub.f32 %v6962_v56, %v1481_v9  ;;  %v450_v11 = vmul.f32 %v322_v55, %v322_v55  ;;  %v5136_v24 = vpop.permute.xlu2 %1251  ;;  %v6967_v41 = vld [vmem:[#allocation24_spill] sm:$0xff] }
 0x187   :  { %6954 = vst [vmem:[#allocation5_spill] sm:$0xff] %v5107_v22  ;;  %v451_v34 = vmul.f32 %v323_v33, %v323_v33  ;;  %v452_v6 = vmul.f32 %v324_v40, %v324_v40  ;;  %v1402_v22 = vmul.f32 %v4678_v44, %v4678_v44  ;;  %v1403_v43 = vmul.f32 %v4682_v12, %v4682_v12  ;;  %v1224_v40 = vpop.permute.xlu1 %1223 }
 0x188   :  { %6955 = vst [vmem:[#allocation91_spill] sm:$0xff] %v5110_v42  ;;  %v453_v42 = vmul.f32 %v325_v31, %v325_v31  ;;  %v1404_v19 = vmul.f32 %v4686_v23, %v4686_v23  ;;  %v1405_v8 = vmul.f32 %v4690_v16, %v4690_v16  ;;  %v578_v9 = vsub.f32 0.0, %v450_v11  ;;  %v6965_v31 = vld [vmem:[#allocation12_spill] sm:$0xff]  ;;  %v6971_v16 = vld [vmem:[#allocation22_spill] sm:$0xff] }
 0x189   :  { %6957 = vst [vmem:[#allocation92_spill] sm:$0xff] %v5117_v62  ;;  %v579_v17 = vsub.f32 0.0, %v451_v34  ;;  %v580_v55 = vsub.f32 0.0, %v452_v6  ;;  %v6966_v35 = vsub.f32 0.0, %v4661_v0  ;;  %v6968_v12 = vsub.f32 0.0, %v4663_v5  ;;  %v190_v34 = vpop.permute.xlu0 %189  ;;  %v6973_v6 = vld [vmem:[#allocation94_spill] sm:$0xff] }
 0x18a   :  { %6959 = vst [vmem:[#allocation93_spill] sm:$0xff] %v5120_v39  ;;  %v581_v33 = vsub.f32 0.0, %v453_v42  ;;  %v6970_v23 = vsub.f32 0.0, %v4665_v1  ;;  %v6972_v39 = vsub.f32 0.0, %v4667_v32  ;;  %v5151_v42 = vsub.f32 %v578_v9, %v6973_v6  ;;  %v6974_v62 = vld [vmem:[#allocation95_spill] sm:$0xff]  ;;  %v6975_v0 = vld [vmem:[#allocation96_spill] sm:$0xff] }
 0x18b   :  { %6961 = vst [vmem:[#allocation65_spill] sm:$0xff] %v5123_v18  ;;  %v1006_v44 = vsub.f32 %v6966_v35, %v6965_v31  ;;  %v1007_v56 = vsub.f32 %v6968_v12, %v6967_v41  ;;  %v5154_v60 = vsub.f32 %v579_v17, %v6974_v62  ;;  %v5157_v31 = vsub.f32 %v580_v55, %v6975_v0  ;;  %v6976_v5 = vld [vmem:[#allocation97_spill] sm:$0xff] }
 0x18c   :  { %6963 = vst [vmem:[#allocation66_spill] sm:$0xff] %v5126_v7  ;;  %v6969_v7 = vld [vmem:[#allocation99_spill] sm:$0xff]  ;;  %v1009_v11 = vsub.f32 %v6972_v39, %v6971_v16  ;;  %v5160_v35 = vsub.f32 %v581_v33, %v6976_v5  ;;  %v1362_v1 = vsub.f32 %v1224_v40, %v4233_v36  ;;  %v1364_v32 = vsub.f32 %v1224_v40, %v4288_v28 }
 0x18d   :  { %6964 = vst [vmem:[#allocation67_spill] sm:$0xff] %v5136_v24  ;;  %v1008_v18 = vsub.f32 %v6970_v23, %v6969_v7  ;;  %v1363_v7 = vsub.f32 %v1224_v40, %v4284_v21  ;;  %v1365_v39 = vsub.f32 %v1224_v40, %v4292_v13  ;;  %v334_v9 = vsub.f32 %v190_v34, %v3368_v47 }
 0x18e   :  { %v335_v41 = vsub.f32 %v190_v34, %v3370_v48  ;;  %v336_v62 = vsub.f32 %v190_v34, %v3372_v49  ;;  %v337_v17 = vsub.f32 %v190_v34, %v3374_v50  ;;  %v1490_v55 = vmul.f32 %v1362_v1, %v1362_v1 }
 0x18f   :  { %v1491_v12 = vmul.f32 %v1363_v7, %v1363_v7  ;;  %v1492_v33 = vmul.f32 %v1364_v32, %v1364_v32  ;;  %v1493_v23 = vmul.f32 %v1365_v39, %v1365_v39  ;;  %v462_v16 = vmul.f32 %v334_v9, %v334_v9  ;;  %v1690_v39 = vld [vmem:[%s6324_s3] sm:$0xf]  ;;  %s3111_s3 = smov [#allocation2]  }
 0x190   :  { %v463_v6 = vmul.f32 %v335_v41, %v335_v41  ;;  %v464_v0 = vmul.f32 %v336_v62, %v336_v62  ;;  %v465_v5 = vmul.f32 %v337_v17, %v337_v17  ;;  %v5171_v10 = vsub.f32 %v4500_v2, %v1490_v55  ;;  %v6978_v17 = vld [vmem:[#allocation31_spill] sm:$0xff]  ;;  %s3036_s15 = sshll.u32 %s3111_s3, 4  ;;  %s3037_s15 = int_to_ptr.vmem [resolvable:$true] %s3036_s15 }
 0x191   :  { %v5174_v40 = vsub.f32 %v4504_v15, %v1491_v12  ;;  %v5177_v51 = vsub.f32 %v4508_v37, %v1492_v33  ;;  %v5180_v24 = vsub.f32 %v4525_v59, %v1493_v23  ;;  %v590_v34 = vsub.f32 0.0, %v462_v16  ;;  %v1693_v15 = vpop.permute.xlu2 %1692  ;;  %v6979_v37 = vld [vmem:[#allocation101_spill] sm:$0xff]  ;;  %v6980_v59 = vld [vmem:[#allocation102_spill] sm:$0xff] }
 0x192   :  { %v591_v1 = vsub.f32 0.0, %v463_v6  ;;  %v592_v7 = vsub.f32 0.0, %v464_v0  ;;  %v593_v32 = vsub.f32 0.0, %v465_v5  ;;  %v1530_v9 = vsub.f32 %v1006_v44, %v1402_v22  ;;  %v6981_v23 = vld [vmem:[#allocation105_spill] sm:$0xff] }
 0x193   :  { %6977 = vst [vmem:[#allocation68_spill] sm:$0xff] %v5180_v24  ;;  %v1531_v2 = vsub.f32 %v1007_v56, %v1403_v43  ;;  %v1532_v41 = vsub.f32 %v1008_v18, %v1404_v19  ;;  %v1533_v62 = vsub.f32 %v1009_v11, %v1405_v8  ;;  %v5186_v55 = vsub.f32 %v590_v34, %v6978_v17  ;;  %v1236_v43 = vpop.permute.xlu1 %1235  ;;  %v205_v19 = vpop.permute.xlu0 %204 }
 0x194   :  { %v5189_v12 = vsub.f32 %v591_v1, %v6979_v37  ;;  %v5192_v33 = vsub.f32 %v592_v7, %v6980_v59  ;;  %v5195_v16 = vsub.f32 %v593_v32, %v6981_v23  ;;  %v5197_v6 = vperm.slane %v1690_v39, 0 }
 0x195   :  { %v5199_v0 = vperm.slane %v1690_v39, 1  ;;  %v5201_v22 = vperm.slane %v1690_v39, 2  ;;  %v5203_v18 = vperm.slane %v1690_v39, 3  ;;  %vm1919_vm0 = vcmp.ge.f32.partialorder %v1530_v9, -1.0 }
 0x196   :  { %vm1920_vm1 = vcmp.ge.f32.partialorder %v1531_v2, -1.0  ;;  %vm1921_vm2 = vcmp.ge.f32.partialorder %v1532_v41, -1.0  ;;  %vm1922_vm3 = vcmp.ge.f32.partialorder %v1533_v62, -1.0  ;;  %v2185_v8 = vlaneseq }
 0x197   :  { %vm1791_vm4 = vcmp.eq.s32.totalorder %v1693_v15, %v5197_v6  ;;  %vm1792_vm5 = vcmp.eq.s32.totalorder %v1693_v15, %v5199_v0  ;;  %vm1793_vm6 = vcmp.eq.s32.totalorder %v1693_v15, %v5201_v22  ;;  %vm1794_vm7 = vcmp.eq.s32.totalorder %v1693_v15, %v5203_v18 }
 0x198   :  { %vm5209_vm8 = vmand %vm1791_vm4, %vm1919_vm0  ;;  %v1374_v56 = vsub.f32 %v1236_v43, %v4233_v36  ;;  %v1375_v11 = vsub.f32 %v1236_v43, %v4284_v21  ;;  %v1376_v5 = vsub.f32 %v1236_v43, %v4288_v28  ;;  %v5216_v34 = vshrl.u32 %v2185_v8, 7 }
 0x199   :  { %v5218_v1 = vand.u32 127, %v2185_v8  ;;  %vm2048_vm9 = vmand %vm1792_vm5, %vm1920_vm1  ;;  %v1377_v7 = vsub.f32 %v1236_v43, %v4292_v13  ;;  %v346_v32 = vsub.f32 %v205_v19, %v3368_v47  ;;  %v347_v43 = vsub.f32 %v205_v19, %v3370_v48 }
 0x19a   :  { %vm2049_vm10 = vmand %vm1793_vm6, %vm1921_vm2  ;;  %v2518_v39 = vsel %vm2048_vm9, %v1531_v2, -inf  ;;  %v1502_v17 = vmul.f32 %v1374_v56, %v1374_v56  ;;  %v1503_v37 = vmul.f32 %v1375_v11, %v1375_v11  ;;  %v1504_v59 = vmul.f32 %v1376_v5, %v1376_v5 }
 0x19b   :  { %vm2261_vm11 = vcmp.ne.s32.totalorder %v5216_v34, %v5218_v1  ;;  %vm2050_vm12 = vmand %vm1794_vm7, %vm1922_vm3  ;;  %v2519_v23 = vsel %vm2049_vm10, %v1532_v41, -inf  ;;  %2646 = vst [vmem:[#allocation2 + $0x8] sm:$0xff] %v2518_v39  ;;  %v1505_v8 = vmul.f32 %v1377_v7, %v1377_v7  ;;  %v348_v48 = vsub.f32 %v205_v19, %v3372_v49 }
 0x19c   :  { %vm2389_vm13 = vmand %vm5209_vm8, %vm2261_vm11  ;;  %v2520_v47 = vsel %vm2050_vm12, %v1533_v62, -inf  ;;  %2647 = vst [vmem:[#allocation2 + $0x10] sm:$0xff] %v2519_v23  ;;  %v5233_v2 = vsub.f32 %v4576_v25, %v1502_v17  ;;  %v5236_v56 = vsub.f32 %v4585_v4, %v1503_v37  ;;  %v5239_v11 = vsub.f32 %v4589_v52, %v1504_v59  ;;  %v1702_v62 = vpop.permute.xlu2 %1701  ;;  %v6990_v59 = vld [vmem:[#allocation85_spill] sm:$0xff] }
 0x19d   :  { %v2517_v15 = vsel %vm2389_vm13, %v1530_v9, -inf  ;;  %2648 = vst [vmem:[#allocation2 + $0x18] sm:$0xff] %v2520_v47  ;;  %v5242_v41 = vsub.f32 %v4593_v27, %v1505_v8  ;;  %v349_v44 = vsub.f32 %v205_v19, %v3374_v50  ;;  %v474_v5 = vmul.f32 %v346_v32, %v346_v32  ;;  %v1248_v50 = vpop.permute.xlu1 %1247  ;;  %v6998_v32 = vld [vmem:[#allocation32_spill] sm:$0xff] }
 0x19e   :  { %6984 = vst [vmem:[#allocation12_spill] sm:$0xff] %v5233_v2  ;;  %v475_v25 = vmul.f32 %v347_v43, %v347_v43  ;;  %v476_v4 = vmul.f32 %v348_v48, %v348_v48  ;;  %vm1933_vm0 = vcmp.ge.f32.partialorder %v4630_v45, -1.0  ;;  %vm1934_vm1 = vcmp.ge.f32.partialorder %v4633_v53, -1.0  ;;  %v7081_v2 = vld [vmem:[#allocation76_spill] sm:$0xff] }
 0x19f   :  { %6985 = vst [vmem:[#allocation24_spill] sm:$0xff] %v5236_v56  ;;  %v477_v52 = vmul.f32 %v349_v44, %v349_v44  ;;  %v602_v27 = vsub.f32 0.0, %v474_v5  ;;  %v2189_v49 = vadd.s32 24, %v5216_v34  ;;  %vm1803_vm2 = vcmp.eq.s32.totalorder %v1702_v62, %v5197_v6  ;;  %v6991_v44 = vld [vmem:[#allocation86_spill] sm:$0xff]  ;;  %v6993_v5 = vld [vmem:[#allocation29_spill] sm:$0xff] }
 0x1a0   :  { %6986 = vst [vmem:[#allocation99_spill] sm:$0xff] %v5239_v11  ;;  %v603_v9 = vsub.f32 0.0, %v475_v25  ;;  %v604_v19 = vsub.f32 0.0, %v476_v4  ;;  %vm1804_vm3 = vcmp.eq.s32.totalorder %v1702_v62, %v5199_v0  ;;  %vm1805_vm4 = vcmp.eq.s32.totalorder %v1702_v62, %v5201_v22  ;;  %vm5256_vm5 = vmand %vm1803_vm2, %vm1931_vm14 }
 0x1a1   :  { %6987 = vst [vmem:[#allocation22_spill] sm:$0xff] %v5242_v41  ;;  %v605_v7 = vsub.f32 0.0, %v477_v52  ;;  %v5261_v39 = vsub.f32 %v602_v27, %v4496_v57  ;;  %vm2273_vm6 = vcmp.ne.s32.totalorder %v2189_v49, %v5218_v1  ;;  %vm1806_vm7 = vcmp.eq.s32.totalorder %v1702_v62, %v5203_v18  ;;  %vm2060_vm8 = vmand %vm1804_vm3, %vm1932_vm15  ;;  %v6992_v62 = vld [vmem:[#allocation117_spill] sm:$0xff]  ;;  %v6994_v49 = vld [vmem:[#allocation123_spill] sm:$0xff] }
 0x1a2   :  { %2645 = vst [vmem:[#allocation2] sm:$0xff] %v2517_v15  ;;  %v5264_v17 = vsub.f32 %v603_v9, %v4515_v29  ;;  %v5271_v37 = vsub.f32 %v604_v19, %v4519_v26  ;;  %vm2061_vm9 = vmand %vm1805_vm4, %vm1933_vm0  ;;  %v2530_v57 = vsel %vm2060_vm8, %v4627_v58, -inf  ;;  %v1386_v29 = vsub.f32 %v1248_v50, %v4233_v36  ;;  %v1696_v15 = vpop.permute.xlu0 %1695  ;;  %v7025_v41 = vld [vmem:[#allocation103_spill] sm:$0xff] }
 0x1a3   :  { %v5274_v23 = vsub.f32 %v605_v7, %v6990_v59  ;;  %vm2062_vm10 = vmand %vm1806_vm7, %vm1934_vm1  ;;  %v2531_v8 = vsel %vm2061_vm9, %v4630_v45, -inf  ;;  %2658 = vst [vmem:[#allocation2 + $0x68] sm:$0xff] %v2530_v57  ;;  %v1387_v43 = vsub.f32 %v1248_v50, %v4284_v21  ;;  %v1388_v26 = vsub.f32 %v1248_v50, %v4288_v28  ;;  %v6997_v7 = vld [vmem:[#allocation118_spill] sm:$0xff]  ;;  %v6999_v59 = vld [vmem:[#allocation119_spill] sm:$0xff] }
 0x1a4   :  { %v1389_v47 = vsub.f32 %v1248_v50, %v4292_v13  ;;  %vm2401_vm11 = vmand %vm5256_vm5, %vm2273_vm6  ;;  %v2532_v58 = vsel %vm2062_vm10, %v4633_v53, -inf  ;;  %2659 = vst [vmem:[#allocation2 + $0x70] sm:$0xff] %v2531_v8  ;;  %v1514_v48 = vmul.f32 %v1386_v29, %v1386_v29  ;;  %v1534_v45 = vsub.f32 %v4746_v61, %v6991_v44  ;;  %v6995_v53 = vld [vmem:[#allocation81_spill] sm:$0xff]  ;;  %v7001_v8 = vld [vmem:[#allocation124_spill] sm:$0xff] }
 0x1a5   :  { %v1535_v25 = vsub.f32 %v6993_v5, %v6992_v62  ;;  %v2529_v4 = vsel %vm2401_vm11, %v4624_v3, -inf  ;;  %2660 = vst [vmem:[#allocation2 + $0x78] sm:$0xff] %v2532_v58  ;;  %v1515_v52 = vmul.f32 %v1387_v43, %v1387_v43  ;;  %v1516_v27 = vmul.f32 %v1388_v26, %v1388_v26  ;;  %v7000_v57 = vld [vmem:[#allocation33_spill] sm:$0xff]  ;;  %v7002_v43 = vld [vmem:[#allocation82_spill] sm:$0xff]  ;;  %v7006_v44 = vld [vmem:[#allocation84_spill] sm:$0xff] }
 0x1a6   :  { %v1517_v9 = vmul.f32 %v1389_v47, %v1389_v47  ;;  %v5298_v50 = vmul.f32 %v6994_v49, %v6994_v49  ;;  %2657 = vst [vmem:[#allocation2 + $0x60] sm:$0xff] %v2529_v4  ;;  %v5301_v19 = vsub.f32 %v6995_v53, %v1514_v48  ;;  %v1536_v61 = vsub.f32 %v6998_v32, %v6997_v7  ;;  %v7004_v47 = vld [vmem:[#allocation83_spill] sm:$0xff]  ;;  %v7008_v48 = vld [vmem:[#allocation17_spill] sm:$0xff]  ;;  %v1708_v49 = vpop.permute.xlu2 %1707 }
 0x1a7   :  { %v1537_v29 = vsub.f32 %v7000_v57, %v6999_v59  ;;  %v5309_v3 = vmul.f32 %v7001_v8, %v7001_v8  ;;  %v5312_v26 = vsub.f32 %v7002_v43, %v1515_v52  ;;  %v5315_v58 = vsub.f32 %v7004_v47, %v1516_v27  ;;  %v7011_v27 = vld [vmem:[#allocation125_spill] sm:$0xff]  ;;  %v7012_v43 = vld [vmem:[#allocation87_spill] sm:$0xff]  ;;  %v7019_v52 = vld [vmem:[#allocation26_spill] sm:$0xff] }
 0x1a8   :  { %6996 = vst [vmem:[#allocation94_spill] sm:$0xff] %v5301_v19  ;;  %v5318_v62 = vsub.f32 %v7006_v44, %v1517_v9  ;;  %v1322_v5 = vsub.f32 %v7008_v48, %v4233_v36  ;;  %vm1923_vm12 = vcmp.ge.f32.partialorder %v1534_v45, -1.0  ;;  %v2187_v4 = vadd.s32 8, %v5216_v34 }
 0x1a9   :  { %7003 = vst [vmem:[#allocation95_spill] sm:$0xff] %v5312_v26  ;;  %vm1795_vm13 = vcmp.eq.s32.totalorder %v1696_v15, %v5197_v6  ;;  %vm1924_vm14 = vcmp.ge.f32.partialorder %v1535_v25, -1.0  ;;  %vm1796_vm15 = vcmp.eq.s32.totalorder %v1696_v15, %v5199_v0  ;;  %vm1797_vm0 = vcmp.eq.s32.totalorder %v1696_v15, %v5201_v22 }
 0x1aa   :  { %7005 = vst [vmem:[#allocation96_spill] sm:$0xff] %v5315_v58  ;;  %vm1798_vm1 = vcmp.eq.s32.totalorder %v1696_v15, %v5203_v18  ;;  %vm5327_vm2 = vmand %vm1795_vm13, %vm1923_vm12  ;;  %v5333_v9 = vmul.f32 %v7011_v27, %v7011_v27  ;;  %v1323_v53 = vsub.f32 %v7008_v48, %v4284_v21  ;;  %vm1925_vm3 = vcmp.ge.f32.partialorder %v1536_v61, -1.0  ;;  %v1711_v47 = vpop.permute.xlu0 %1710  ;;  %v7022_v58 = vld [vmem:[#allocation90_spill] sm:$0xff] }
 0x1ab   :  { %7007 = vst [vmem:[#allocation97_spill] sm:$0xff] %v5318_v62  ;;  %vm2265_vm4 = vcmp.ne.s32.totalorder %v2187_v4, %v5218_v1  ;;  %vm2052_vm5 = vmand %vm1796_vm15, %vm1924_vm14  ;;  %vm1926_vm6 = vcmp.ge.f32.partialorder %v1537_v29, -1.0  ;;  %v2191_v15 = vadd.s32 40, %v5216_v34  ;;  %vm1811_vm8 = vcmp.eq.s32.totalorder %v1708_v49, %v5197_v6  ;;  %v7017_v4 = vld [vmem:[#allocation89_spill] sm:$0xff] }
 0x1ac   :  { %vm2053_vm7 = vmand %vm1797_vm0, %vm1925_vm3  ;;  %v2522_v7 = vsel %vm2052_vm5, %v1535_v25, -inf  ;;  %v1324_v32 = vsub.f32 %v7008_v48, %v4288_v28  ;;  %v5344_v59 = vsub.f32 %v7008_v48, %v4292_v13  ;;  %vm1812_vm10 = vcmp.eq.s32.totalorder %v1708_v49, %v5199_v0  ;;  %v7013_v48 = vld [vmem:[#allocation88_spill] sm:$0xff] }
 0x1ad   :  { %vm2054_vm9 = vmand %vm1798_vm1, %vm1926_vm6  ;;  %v2523_v57 = vsel %vm2053_vm7, %v1536_v61, -inf  ;;  %2650 = vst [vmem:[#allocation2 + $0x28] sm:$0xff] %v2522_v7  ;;  %v5347_v8 = vmul.f32 %v1322_v5, %v1322_v5  ;;  %vm1939_vm12 = vcmp.ge.f32.partialorder %v7012_v43, -1.0  ;;  %vm1813_vm13 = vcmp.eq.s32.totalorder %v1708_v49, %v5201_v22  ;;  %v7016_v5 = vld [vmem:[#allocation9_spill] sm:$0xff] }
 0x1ae   :  { %vm2393_vm11 = vmand %vm5327_vm2, %vm2265_vm4  ;;  %v2524_v25 = vsel %vm2054_vm9, %v1537_v29, -inf  ;;  %2651 = vst [vmem:[#allocation2 + $0x30] sm:$0xff] %v2523_v57  ;;  %vm1940_vm14 = vcmp.ge.f32.partialorder %v7013_v48, -1.0  ;;  %vm1814_vm15 = vcmp.eq.s32.totalorder %v1708_v49, %v5203_v18  ;;  %v5363_v29 = vsub.f32 %v4809_v30, %v7016_v5  ;;  %v7020_v7 = vld [vmem:[#allocation121_spill] sm:$0xff]  ;;  %v7021_v57 = vld [vmem:[#allocation38_spill] sm:$0xff]  ;;  %v1717_v49 = vpop.permute.xlu2 %1716 }
 0x1af   :  { %v2521_v44 = vsel %vm2393_vm11, %v1534_v45, -inf  ;;  %2652 = vst [vmem:[#allocation2 + $0x38] sm:$0xff] %v2524_v25  ;;  %vm5357_vm0 = vmand %vm1811_vm8, %vm1939_vm12  ;;  %vm1941_vm1 = vcmp.ge.f32.partialorder %v7017_v4, -1.0  ;;  %vm2281_vm2 = vcmp.ne.s32.totalorder %v2191_v15, %v5218_v1  ;;  %v7018_v45 = vld [vmem:[#allocation120_spill] sm:$0xff]  ;;  %v1556_v25 = vsub.f32 %v7021_v57, %v7020_v7  ;;  %v5398_v7 = vpop.permute.xlu1 %1259 }
 0x1b0   :  { %2649 = vst [vmem:[#allocation2 + $0x20] sm:$0xff] %v2521_v44  ;;  %vm2068_vm3 = vmand %vm1812_vm10, %vm1940_vm14  ;;  %v1555_v27 = vsub.f32 %v7019_v52, %v7018_v45  ;;  %v5373_v62 = vmul.f32 %v1323_v53, %v1323_v53  ;;  %vm1942_vm4 = vcmp.ge.f32.partialorder %v7022_v58, -1.0  ;;  %v7023_v44 = vld [vmem:[#allocation122_spill] sm:$0xff]  ;;  %v7024_v5 = vld [vmem:[#allocation40_spill] sm:$0xff]  ;;  %v5381_v19 = vmul.f32 %v1324_v32, %v1324_v32 }
 0x1b1   :  { %vm2069_vm5 = vmand %vm1813_vm13, %vm1941_vm1  ;;  %v2538_v30 = vsel %vm2068_vm3, %v7013_v48, -inf  ;;  %v1557_v26 = vsub.f32 %v7024_v5, %v7023_v44  ;;  %v1334_v45 = vsub.f32 %v7025_v41, %v4233_v36  ;;  %v2192_v52 = vadd.s32 48, %v5216_v34  ;;  %v7031_v44 = vld [vmem:[#allocation126_spill] sm:$0xff] }
 0x1b2   :  { %vm2070_vm6 = vmand %vm1814_vm15, %vm1942_vm4  ;;  %v2539_v53 = vsel %vm2069_vm5, %v7017_v4, -inf  ;;  %2666 = vst [vmem:[#allocation2 + $0xa8] sm:$0xff] %v2538_v30  ;;  %vm1943_vm8 = vcmp.ge.f32.partialorder %v5363_v29, -1.0  ;;  %vm1815_vm9 = vcmp.eq.s32.totalorder %v1711_v47, %v5197_v6  ;;  %vm1816_vm10 = vcmp.eq.s32.totalorder %v1711_v47, %v5199_v0  ;;  %v7030_v30 = vld [vmem:[#allocation34_spill] sm:$0xff] }
 0x1b3   :  { %vm5393_vm7 = vmand %vm5357_vm0, %vm2281_vm2  ;;  %v2540_v32 = vsel %vm2070_vm6, %v7022_v58, -inf  ;;  %2667 = vst [vmem:[#allocation2 + $0xb0] sm:$0xff] %v2539_v53  ;;  %vm1944_vm11 = vcmp.ge.f32.partialorder %v1555_v27, -1.0  ;;  %vm1817_vm12 = vcmp.eq.s32.totalorder %v1711_v47, %v5201_v22  ;;  %vm1818_vm13 = vcmp.eq.s32.totalorder %v1711_v47, %v5203_v18  ;;  %v7038_v58 = vld [vmem:[#allocation6_spill] sm:$0xff] }
 0x1b4   :  { %v2537_v15 = vsel %vm5393_vm7, %v7012_v43, -inf  ;;  %2668 = vst [vmem:[#allocation2 + $0xb8] sm:$0xff] %v2540_v32  ;;  %vm5408_vm14 = vmand %vm1815_vm9, %vm1943_vm8  ;;  %v1335_v61 = vsub.f32 %v7025_v41, %v4284_v21  ;;  %v1336_v4 = vsub.f32 %v7025_v41, %v4288_v28  ;;  %vm1945_vm15 = vcmp.ge.f32.partialorder %v1556_v25, -1.0  ;;  %v1720_v32 = vpop.permute.xlu0 %1719 }
 0x1b5   :  { %2665 = vst [vmem:[#allocation2 + $0xa0] sm:$0xff] %v2537_v15  ;;  %vm2285_vm0 = vcmp.ne.s32.totalorder %v2192_v52, %v5218_v1  ;;  %vm2072_vm1 = vmand %vm1816_vm10, %vm1944_vm11  ;;  %vm1946_vm2 = vcmp.ge.f32.partialorder %v1557_v26, -1.0  ;;  %v2194_v47 = vadd.s32 64, %v5216_v34  ;;  %vm1823_vm4 = vcmp.eq.s32.totalorder %v1717_v49, %v5197_v6 }
 0x1b6   :  { %vm2073_vm3 = vmand %vm1817_vm12, %vm1945_vm15  ;;  %v2542_v43 = vsel %vm2072_vm1, %v1555_v27, -inf  ;;  %vm1951_vm6 = vcmp.ge.f32.partialorder %v7030_v30, -1.0  ;;  %vm1824_vm7 = vcmp.eq.s32.totalorder %v1717_v49, %v5199_v0  ;;  %v5423_v5 = vsub.f32 %v4866_v46, %v7031_v44  ;;  %v7032_v27 = vld [vmem:[#allocation15_spill] sm:$0xff] }
 0x1b7   :  { %vm2074_vm5 = vmand %vm1818_vm13, %vm1946_vm2  ;;  %v2543_v57 = vsel %vm2073_vm3, %v1556_v25, -inf  ;;  %2670 = vst [vmem:[#allocation2 + $0xc8] sm:$0xff] %v2542_v43  ;;  %vm1825_vm9 = vcmp.eq.s32.totalorder %v1717_v49, %v5201_v22  ;;  %v1567_v52 = vsub.f32 %v7032_v27, %v5298_v50  ;;  %v7033_v25 = vld [vmem:[#allocation16_spill] sm:$0xff]  ;;  %v7034_v43 = vld [vmem:[#allocation10_spill] sm:$0xff]  ;;  %vm1826_vm11 = vcmp.eq.s32.totalorder %v1717_v49, %v5203_v18 }
 0x1b8   :  { %vm2413_vm8 = vmand %vm5408_vm14, %vm2285_vm0  ;;  %v2544_v53 = vsel %vm2074_vm5, %v1557_v26, -inf  ;;  %2671 = vst [vmem:[#allocation2 + $0xd0] sm:$0xff] %v2543_v57  ;;  %v1568_v48 = vsub.f32 %v7033_v25, %v5309_v3  ;;  %vm1952_vm10 = vcmp.ge.f32.partialorder %v7034_v43, -1.0  ;;  %v7037_v26 = vld [vmem:[#allocation47_spill] sm:$0xff]  ;;  %v1453_v3 = vmul.f32 %v5344_v59, %v5344_v59  ;;  %v7039_v57 = vld [vmem:[#allocation18_spill] sm:$0xff] }
 0x1b9   :  { %v2541_v15 = vsel %vm2413_vm8, %v5363_v29, -inf  ;;  %2672 = vst [vmem:[#allocation2 + $0xd8] sm:$0xff] %v2544_v53  ;;  %vm5437_vm12 = vmand %vm1823_vm4, %vm1951_vm6  ;;  %v1569_v50 = vsub.f32 %v7037_v26, %v5333_v9  ;;  %v1337_v29 = vsub.f32 %v7025_v41, %v4292_v13  ;;  %vm1953_vm13 = vcmp.ge.f32.partialorder %v7038_v58, -1.0  ;;  %v7040_v49 = vld [vmem:[#allocation106_spill] sm:$0xff] }
 0x1ba   :  { %2669 = vst [vmem:[#allocation2 + $0xc0] sm:$0xff] %v2541_v15  ;;  %vm2293_vm14 = vcmp.ne.s32.totalorder %v2194_v47, %v5218_v1  ;;  %vm2080_vm15 = vmand %vm1824_vm7, %vm1952_vm10  ;;  %vm1954_vm0 = vcmp.ge.f32.partialorder %v7039_v57, -1.0  ;;  %v2195_v59 = vadd.s32 72, %v5216_v34  ;;  %vm1827_vm2 = vcmp.eq.s32.totalorder %v1720_v32, %v5197_v6 }
 0x1bb   :  { %vm2081_vm1 = vmand %vm1825_vm9, %vm1953_vm13  ;;  %v2550_v9 = vsel %vm2080_vm15, %v7034_v43, -inf  ;;  %v5457_v41 = vmul.f32 %v1334_v45, %v1334_v45  ;;  %v5459_v44 = vmul.f32 %v1335_v61, %v1335_v61  ;;  %vm1828_vm4 = vcmp.eq.s32.totalorder %v1720_v32, %v5199_v0  ;;  %v1699_v45 = vpop.permute.xlu1 %1698 }
 0x1bc   :  { %vm2082_vm3 = vmand %vm1826_vm11, %vm1954_vm0  ;;  %v2551_v47 = vsel %vm2081_vm1, %v7038_v58, -inf  ;;  %2678 = vst [vmem:[#allocation2 + $0x108] sm:$0xff] %v2550_v9  ;;  %v5465_v53 = vmul.f32 %v1336_v4, %v1336_v4  ;;  %vm1955_vm6 = vcmp.ge.f32.partialorder %v5423_v5, -1.0  ;;  %vm1829_vm7 = vcmp.eq.s32.totalorder %v1720_v32, %v5201_v22  ;;  %v7043_v58 = vld [vmem:[#allocation19_spill] sm:$0xff]  ;;  %v7049_v4 = vld [vmem:[#allocation61_spill] sm:$0xff] }
 0x1bd   :  { %vm2421_vm5 = vmand %vm5437_vm12, %vm2293_vm14  ;;  %v2552_v27 = vsel %vm2082_vm3, %v7039_v57, -inf  ;;  %2679 = vst [vmem:[#allocation2 + $0x110] sm:$0xff] %v2551_v47  ;;  %v1346_v61 = vsub.f32 %v7040_v49, %v4233_v36  ;;  %vm1956_vm8 = vcmp.ge.f32.partialorder %v1567_v52, -1.0  ;;  %vm1830_vm9 = vcmp.eq.s32.totalorder %v1720_v32, %v5203_v18  ;;  %v7044_v57 = vld [vmem:[#allocation13_spill] sm:$0xff] }
 0x1be   :  { %v2549_v25 = vsel %vm2421_vm5, %v7030_v30, -inf  ;;  %2680 = vst [vmem:[#allocation2 + $0x118] sm:$0xff] %v2552_v27  ;;  %vm5478_vm10 = vmand %vm1827_vm2, %vm1955_vm6  ;;  %v1347_v15 = vsub.f32 %v7040_v49, %v4284_v21  ;;  %v1348_v43 = vsub.f32 %v7040_v49, %v4288_v28  ;;  %vm1957_vm11 = vcmp.ge.f32.partialorder %v1568_v48, -1.0  ;;  %v7048_v27 = vld [vmem:[#allocation60_spill] sm:$0xff] }
 0x1bf   :  { %2677 = vst [vmem:[#allocation2 + $0x100] sm:$0xff] %v2549_v25  ;;  %vm2297_vm12 = vcmp.ne.s32.totalorder %v2195_v59, %v5218_v1  ;;  %vm2084_vm13 = vmand %vm1828_vm4, %vm1956_vm8  ;;  %vm1958_vm14 = vcmp.ge.f32.partialorder %v1569_v50, -1.0  ;;  %v2188_v46 = vadd.s32 16, %v5216_v34  ;;  %vm1799_vm0 = vcmp.eq.s32.totalorder %v1699_v45, %v5197_v6  ;;  %v7056_v59 = vld [vmem:[#allocation110_spill] sm:$0xff] }
 0x1c0   :  { %vm2085_vm15 = vmand %vm1829_vm7, %vm1957_vm11  ;;  %v2554_v30 = vsel %vm2084_vm13, %v1567_v52, -inf  ;;  %vm1927_vm2 = vcmp.ge.f32.partialorder %v7043_v58, -1.0  ;;  %vm1928_vm3 = vcmp.ge.f32.partialorder %v7044_v57, -1.0  ;;  %vm1800_vm5 = vcmp.eq.s32.totalorder %v1699_v45, %v5199_v0  ;;  %v1726_v52 = vpop.permute.xlu2 %1725 }
 0x1c1   :  { %vm2086_vm1 = vmand %vm1830_vm9, %vm1958_vm14  ;;  %v2555_v26 = vsel %vm2085_vm15, %v1568_v48, -inf  ;;  %2682 = vst [vmem:[#allocation2 + $0x128] sm:$0xff] %v2554_v30  ;;  %vm1801_vm6 = vcmp.eq.s32.totalorder %v1699_v45, %v5201_v22  ;;  %vm1802_vm7 = vcmp.eq.s32.totalorder %v1699_v45, %v5203_v18  ;;  %v5502_v48 = vsub.f32 %v4926_v20, %v5347_v8  ;;  %v7050_v30 = vld [vmem:[#allocation25_spill] sm:$0xff] }
 0x1c2   :  { %vm2425_vm4 = vmand %vm5478_vm10, %vm2297_vm12  ;;  %v2556_v9 = vsel %vm2086_vm1, %v1569_v50, -inf  ;;  %2683 = vst [vmem:[#allocation2 + $0x130] sm:$0xff] %v2555_v26  ;;  %v7047_v50 = vld [vmem:[#allocation44_spill] sm:$0xff]  ;;  %v5517_v25 = vsub.f32 %v7048_v27, %v5381_v19  ;;  %v5520_v20 = vsub.f32 %v7049_v4, %v1453_v3  ;;  %v5522_v8 = vmul.f32 %v1337_v29, %v1337_v29  ;;  %v7051_v19 = vld [vmem:[#allocation98_spill] sm:$0xff] }
 0x1c3   :  { %v2553_v32 = vsel %vm2425_vm4, %v5423_v5, -inf  ;;  %2684 = vst [vmem:[#allocation2 + $0x138] sm:$0xff] %v2556_v9  ;;  %vm5507_vm8 = vmand %vm1799_vm0, %vm1927_vm2  ;;  %v5513_v47 = vsub.f32 %v7047_v50, %v5373_v62  ;;  %v1349_v5 = vsub.f32 %v7040_v49, %v4292_v13  ;;  %vm1929_vm9 = vcmp.ge.f32.partialorder %v7050_v30, -1.0  ;;  %v7057_v4 = vld [vmem:[#allocation11_spill] sm:$0xff] }
 0x1c4   :  { %2681 = vst [vmem:[#allocation2 + $0x120] sm:$0xff] %v2553_v32  ;;  %vm2269_vm10 = vcmp.ne.s32.totalorder %v2188_v46, %v5218_v1  ;;  %vm2056_vm11 = vmand %vm1800_vm5, %vm1928_vm3  ;;  %vm1930_vm12 = vcmp.ge.f32.partialorder %v7051_v19, -1.0  ;;  %v2197_v3 = vadd.s32 88, %v5216_v34  ;;  %vm1835_vm14 = vcmp.eq.s32.totalorder %v1726_v52, %v5197_v6  ;;  %v7053_v32 = vld [vmem:[#allocation42_spill] sm:$0xff] }
 0x1c5   :  { %vm2057_vm13 = vmand %vm1801_vm6, %vm1929_vm9  ;;  %v2526_v62 = vsel %vm2056_vm11, %v7044_v57, -inf  ;;  %v5538_v29 = vmul.f32 %v1346_v61, %v1346_v61  ;;  %v5540_v49 = vmul.f32 %v1347_v15, %v1347_v15  ;;  %vm1836_vm0 = vcmp.eq.s32.totalorder %v1726_v52, %v5199_v0  ;;  %v7052_v61 = vld [vmem:[#allocation41_spill] sm:$0xff]  ;;  %v1729_v15 = vpop.permute.xlu0 %1728 }
 0x1c6   :  { %vm2058_vm15 = vmand %vm1802_vm7, %vm1930_vm12  ;;  %v2527_v46 = vsel %vm2057_vm13, %v7050_v30, -inf  ;;  %2654 = vst [vmem:[#allocation2 + $0x48] sm:$0xff] %v2526_v62  ;;  %v5546_v26 = vmul.f32 %v1348_v43, %v1348_v43  ;;  %vm1963_vm2 = vcmp.ge.f32.partialorder %v7052_v61, -1.0  ;;  %vm1837_vm3 = vcmp.eq.s32.totalorder %v1726_v52, %v5201_v22 }
 0x1c7   :  { %vm2397_vm1 = vmand %vm5507_vm8, %vm2269_vm10  ;;  %v2528_v57 = vsel %vm2058_vm15, %v7051_v19, -inf  ;;  %2655 = vst [vmem:[#allocation2 + $0x50] sm:$0xff] %v2527_v46  ;;  %v5553_v45 = vmul.f32 %v1349_v5, %v1349_v5  ;;  %vm1964_vm5 = vcmp.ge.f32.partialorder %v7053_v32, -1.0  ;;  %vm1838_vm4 = vcmp.eq.s32.totalorder %v1726_v52, %v5203_v18 }
 0x1c8   :  { %v2525_v9 = vsel %vm2397_vm1, %v7043_v58, -inf  ;;  %2656 = vst [vmem:[#allocation2 + $0x58] sm:$0xff] %v2528_v57  ;;  %vm5560_vm6 = vmand %vm1835_vm14, %vm1963_vm2  ;;  %v1358_v50 = vsub.f32 %v7056_v59, %v4233_v36  ;;  %v1359_v27 = vsub.f32 %v7056_v59, %v4284_v21  ;;  %vm1965_vm7 = vcmp.ge.f32.partialorder %v7057_v4, -1.0  ;;  %v7058_v58 = vld [vmem:[#allocation8_spill] sm:$0xff]  ;;  %v1705_v57 = vpop.permute.xlu1 %1704 }
 0x1c9   :  { %2653 = vst [vmem:[#allocation2 + $0x40] sm:$0xff] %v2525_v9  ;;  %vm2305_vm8 = vcmp.ne.s32.totalorder %v2197_v3, %v5218_v1  ;;  %vm2092_vm9 = vmand %vm1836_vm0, %vm1964_vm5  ;;  %vm1966_vm10 = vcmp.ge.f32.partialorder %v7058_v58, -1.0  ;;  %v2198_v30 = vadd.s32 96, %v5216_v34  ;;  %vm1839_vm12 = vcmp.eq.s32.totalorder %v1729_v15, %v5197_v6 }
 0x1ca   :  { %vm2093_vm11 = vmand %vm1837_vm3, %vm1965_vm7  ;;  %v2562_v5 = vsel %vm2092_vm9, %v7053_v32, -inf  ;;  %v1360_v19 = vsub.f32 %v7056_v59, %v4288_v28  ;;  %v1361_v62 = vsub.f32 %v7056_v59, %v4292_v13  ;;  %vm1840_vm14 = vcmp.eq.s32.totalorder %v1729_v15, %v5199_v0  ;;  %v7061_v32 = vld [vmem:[#allocation54_spill] sm:$0xff]  ;;  %v7062_v59 = vld [vmem:[#allocation55_spill] sm:$0xff] }
 0x1cb   :  { %vm2094_vm13 = vmand %vm1838_vm4, %vm1966_vm10  ;;  %v2563_v3 = vsel %vm2093_vm11, %v7057_v4, -inf  ;;  %2690 = vst [vmem:[#allocation2 + $0x168] sm:$0xff] %v2562_v5  ;;  %vm1967_vm0 = vcmp.ge.f32.partialorder %v5502_v48, -1.0  ;;  %vm1968_vm1 = vcmp.ge.f32.partialorder %v5513_v47, -1.0  ;;  %vm1841_vm2 = vcmp.eq.s32.totalorder %v1729_v15, %v5201_v22  ;;  %v7064_v5 = vld [vmem:[#allocation70_spill] sm:$0xff] }
 0x1cc   :  { %vm2433_vm15 = vmand %vm5560_vm6, %vm2305_vm8  ;;  %v2564_v46 = vsel %vm2094_vm13, %v7058_v58, -inf  ;;  %2691 = vst [vmem:[#allocation2 + $0x170] sm:$0xff] %v2563_v3  ;;  %vm1842_vm3 = vcmp.eq.s32.totalorder %v1729_v15, %v5203_v18  ;;  %v5602_v43 = vsub.f32 %v7061_v32, %v5457_v41  ;;  %v5606_v4 = vsub.f32 %v7062_v59, %v5459_v44  ;;  %v1735_v15 = vpop.permute.xlu2 %1734  ;;  %v7070_v32 = vld [vmem:[#allocation23_spill] sm:$0xff] }
 0x1cd   :  { %v2561_v52 = vsel %vm2433_vm15, %v7052_v61, -inf  ;;  %2692 = vst [vmem:[#allocation2 + $0x178] sm:$0xff] %v2564_v46  ;;  %vm5596_vm5 = vmand %vm1839_vm12, %vm1967_vm0  ;;  %vm1969_vm4 = vcmp.ge.f32.partialorder %v5517_v25, -1.0  ;;  %vm2309_vm6 = vcmp.ne.s32.totalorder %v2198_v30, %v5218_v1  ;;  %v7063_v61 = vld [vmem:[#allocation69_spill] sm:$0xff]  ;;  %v5618_v41 = vsub.f32 %v7064_v5, %v5522_v8  ;;  %v7087_v30 = vld [vmem:[#allocation100_spill] sm:$0xff] }
 0x1ce   :  { %2689 = vst [vmem:[#allocation2 + $0x160] sm:$0xff] %v2561_v52  ;;  %vm2096_vm7 = vmand %vm1840_vm14, %vm1968_vm1  ;;  %v5614_v58 = vsub.f32 %v7063_v61, %v5465_v53  ;;  %vm1970_vm8 = vcmp.ge.f32.partialorder %v5520_v20, -1.0  ;;  %v2190_v3 = vadd.s32 32, %v5216_v34  ;;  %vm1807_vm10 = vcmp.eq.s32.totalorder %v1705_v57, %v5197_v6 }
 0x1cf   :  { %vm2097_vm9 = vmand %vm1841_vm2, %vm1969_vm4  ;;  %v2566_v44 = vsel %vm2096_vm7, %v5513_v47, -inf  ;;  %v5626_v46 = vmul.f32 %v1358_v50, %v1358_v50  ;;  %v5628_v52 = vmul.f32 %v1359_v27, %v1359_v27  ;;  %vm1808_vm12 = vcmp.eq.s32.totalorder %v1705_v57, %v5199_v0  ;;  %v7065_v50 = vld [vmem:[#allocation20_spill] sm:$0xff] }
 0x1d0   :  { %vm2098_vm11 = vmand %vm1842_vm3, %vm1970_vm8  ;;  %v2567_v53 = vsel %vm2097_vm9, %v5517_v25, -inf  ;;  %2694 = vst [vmem:[#allocation2 + $0x188] sm:$0xff] %v2566_v44  ;;  %v5634_v8 = vmul.f32 %v1360_v19, %v1360_v19  ;;  %vm1935_vm14 = vcmp.ge.f32.partialorder %v7065_v50, -1.0  ;;  %vm1809_vm15 = vcmp.eq.s32.totalorder %v1705_v57, %v5201_v22  ;;  %v7066_v19 = vld [vmem:[#allocation21_spill] sm:$0xff] }
 0x1d1   :  { %vm2437_vm13 = vmand %vm5596_vm5, %vm2309_vm6  ;;  %v2568_v47 = vsel %vm2098_vm11, %v5520_v20, -inf  ;;  %2695 = vst [vmem:[#allocation2 + $0x190] sm:$0xff] %v2567_v53  ;;  %v5643_v27 = vmul.f32 %v1361_v62, %v1361_v62  ;;  %vm1936_vm0 = vcmp.ge.f32.partialorder %v7066_v19, -1.0  ;;  %vm1810_vm1 = vcmp.eq.s32.totalorder %v1705_v57, %v5203_v18  ;;  %v7069_v20 = vld [vmem:[#allocation113_spill] sm:$0xff] }
 0x1d2   :  { %v2565_v25 = vsel %vm2437_vm13, %v5502_v48, -inf  ;;  %2696 = vst [vmem:[#allocation2 + $0x198] sm:$0xff] %v2568_v47  ;;  %vm5650_vm2 = vmand %vm1807_vm10, %vm1935_vm14  ;;  %v1370_v9 = vsub.f32 %v7069_v20, %v4233_v36  ;;  %v1371_v62 = vsub.f32 %v7069_v20, %v4284_v21  ;;  %vm1937_vm3 = vcmp.ge.f32.partialorder %v7070_v32, -1.0  ;;  %v7071_v48 = vld [vmem:[#allocation14_spill] sm:$0xff] }
 0x1d3   :  { %2693 = vst [vmem:[#allocation2 + $0x180] sm:$0xff] %v2565_v25  ;;  %vm2277_vm5 = vcmp.ne.s32.totalorder %v2190_v3, %v5218_v1  ;;  %vm2064_vm4 = vmand %vm1808_vm12, %vm1936_vm0  ;;  %vm1938_vm6 = vcmp.ge.f32.partialorder %v7071_v48, -1.0  ;;  %v2200_v61 = vadd.s32 112, %v5216_v34  ;;  %vm1847_vm8 = vcmp.eq.s32.totalorder %v1735_v15, %v5197_v6  ;;  %v7072_v47 = vld [vmem:[#allocation50_spill] sm:$0xff]  ;;  %v7073_v25 = vld [vmem:[#allocation51_spill] sm:$0xff] }
 0x1d4   :  { %vm2065_vm7 = vmand %vm1809_vm15, %vm1937_vm3  ;;  %v2534_v59 = vsel %vm2064_vm4, %v7066_v19, -inf  ;;  %v1372_v5 = vsub.f32 %v7069_v20, %v4288_v28  ;;  %v1373_v44 = vsub.f32 %v7069_v20, %v4292_v13  ;;  %vm1848_vm10 = vcmp.eq.s32.totalorder %v1735_v15, %v5199_v0  ;;  %v1738_v19 = vpop.permute.xlu0 %1737  ;;  %v7074_v20 = vld [vmem:[#allocation52_spill] sm:$0xff] }
 0x1d5   :  { %vm2066_vm9 = vmand %vm1810_vm1, %vm1938_vm6  ;;  %v2535_v3 = vsel %vm2065_vm7, %v7070_v32, -inf  ;;  %2662 = vst [vmem:[#allocation2 + $0x88] sm:$0xff] %v2534_v59  ;;  %vm1975_vm12 = vcmp.ge.f32.partialorder %v7072_v47, -1.0  ;;  %vm1976_vm13 = vcmp.ge.f32.partialorder %v7073_v25, -1.0  ;;  %vm1849_vm14 = vcmp.eq.s32.totalorder %v1735_v15, %v5201_v22  ;;  %v7075_v32 = vld [vmem:[#allocation27_spill] sm:$0xff]  ;;  %v7079_v59 = vld [vmem:[#allocation109_spill] sm:$0xff] }
 0x1d6   :  { %vm2405_vm11 = vmand %vm5650_vm2, %vm2277_vm5  ;;  %v2536_v53 = vsel %vm2066_vm9, %v7071_v48, -inf  ;;  %2663 = vst [vmem:[#allocation2 + $0x90] sm:$0xff] %v2535_v3  ;;  %vm1977_vm15 = vcmp.ge.f32.partialorder %v7074_v20, -1.0  ;;  %vm1978_vm0 = vcmp.ge.f32.partialorder %v7075_v32, -1.0  ;;  %vm1850_vm1 = vcmp.eq.s32.totalorder %v1735_v15, %v5203_v18 }
 0x1d7   :  { %v2533_v57 = vsel %vm2405_vm11, %v7065_v50, -inf  ;;  %2664 = vst [vmem:[#allocation2 + $0x98] sm:$0xff] %v2536_v53  ;;  %vm5688_vm2 = vmand %vm1847_vm8, %vm1975_vm12  ;;  %vm2317_vm3 = vcmp.ne.s32.totalorder %v2200_v61, %v5218_v1  ;;  %v7078_v50 = vld [vmem:[#allocation108_spill] sm:$0xff]  ;;  %v5701_v3 = vsub.f32 %v7079_v59, %v5540_v49  ;;  %v7080_v53 = vld [vmem:[#allocation75_spill] sm:$0xff]  ;;  %v2201_v56 = vadd.s32 120, %v5216_v34  ;;  %v1744_v59 = vpop.permute.xlu2 %1743 }
 0x1d8   :  { %2661 = vst [vmem:[#allocation2 + $0x80] sm:$0xff] %v2533_v57  ;;  %vm2104_vm5 = vmand %vm1848_vm10, %vm1976_vm13  ;;  %v5697_v48 = vsub.f32 %v7078_v50, %v5538_v29  ;;  %v5705_v11 = vsub.f32 %v7080_v53, %v5546_v26  ;;  %vm1851_vm6 = vcmp.eq.s32.totalorder %v1738_v19, %v5197_v6  ;;  %v5712_v24 = vsub.f32 %v7081_v2, %v5553_v45  ;;  %v1714_v45 = vpop.permute.xlu1 %1713  ;;  %v7084_v61 = vld [vmem:[#allocation114_spill] sm:$0xff]  ;;  %v7088_v53 = vld [vmem:[#allocation43_spill] sm:$0xff] }
 0x1d9   :  { %vm2105_vm4 = vmand %vm1849_vm14, %vm1977_vm15  ;;  %v2574_v57 = vsel %vm2104_vm5, %v7073_v25, -inf  ;;  %v5714_v29 = vmul.f32 %v1370_v9, %v1370_v9  ;;  %v5716_v50 = vmul.f32 %v1371_v62, %v1371_v62  ;;  %vm1852_vm8 = vcmp.eq.s32.totalorder %v1738_v19, %v5199_v0 }
 0x1da   :  { %vm2106_vm7 = vmand %vm1850_vm1, %vm1978_vm0  ;;  %v2575_v49 = vsel %vm2105_vm4, %v7074_v20, -inf  ;;  %2702 = vst [vmem:[#allocation2 + $0x1c8] sm:$0xff] %v2574_v57  ;;  %v5724_v26 = vmul.f32 %v1372_v5, %v1372_v5  ;;  %vm1979_vm10 = vcmp.ge.f32.partialorder %v5602_v43, -1.0  ;;  %vm1853_vm11 = vcmp.eq.s32.totalorder %v1738_v19, %v5201_v22 }
 0x1db   :  { %vm2445_vm9 = vmand %vm5688_vm2, %vm2317_vm3  ;;  %v2576_v2 = vsel %vm2106_vm7, %v7075_v32, -inf  ;;  %2703 = vst [vmem:[#allocation2 + $0x1d0] sm:$0xff] %v2575_v49  ;;  %v5733_v15 = vmul.f32 %v1373_v44, %v1373_v44  ;;  %vm1980_vm12 = vcmp.ge.f32.partialorder %v5606_v4, -1.0  ;;  %vm1854_vm13 = vcmp.eq.s32.totalorder %v1738_v19, %v5203_v18  ;;  %v7085_v32 = vld [vmem:[#allocation28_spill] sm:$0xff] }
 0x1dc   :  { %v2573_v9 = vsel %vm2445_vm9, %v7072_v47, -inf  ;;  %2704 = vst [vmem:[#allocation2 + $0x1d8] sm:$0xff] %v2576_v2  ;;  %vm5740_vm14 = vmand %vm1851_vm6, %vm1979_vm10  ;;  %v1382_v5 = vsub.f32 %v7084_v61, %v4233_v36  ;;  %vm1981_vm15 = vcmp.ge.f32.partialorder %v5614_v58, -1.0  ;;  %vm2321_vm0 = vcmp.ne.s32.totalorder %v2201_v56, %v5218_v1 }
 0x1dd   :  { %2701 = vst [vmem:[#allocation2 + $0x1c0] sm:$0xff] %v2573_v9  ;;  %vm2108_vm1 = vmand %vm1852_vm8, %vm1980_vm12  ;;  %v2193_v44 = vadd.s32 56, %v5216_v34  ;;  %v1383_v47 = vsub.f32 %v7084_v61, %v4284_v21  ;;  %vm1982_vm2 = vcmp.ge.f32.partialorder %v5618_v41, -1.0  ;;  %vm1819_vm5 = vcmp.eq.s32.totalorder %v1714_v45, %v5197_v6 }
 0x1de   :  { %vm2109_vm3 = vmand %vm1853_vm11, %vm1981_vm15  ;;  %v2578_v25 = vsel %vm2108_vm1, %v5606_v4, -inf  ;;  %v1384_v56 = vsub.f32 %v7084_v61, %v4288_v28  ;;  %vm1947_vm6 = vcmp.ge.f32.partialorder %v7085_v32, -1.0  ;;  %vm1820_vm7 = vcmp.eq.s32.totalorder %v1714_v45, %v5199_v0  ;;  %v7086_v4 = vld [vmem:[#allocation30_spill] sm:$0xff] }
 0x1df   :  { %vm2110_vm4 = vmand %vm1854_vm13, %vm1982_vm2  ;;  %v2579_v20 = vsel %vm2109_vm3, %v5614_v58, -inf  ;;  %2706 = vst [vmem:[#allocation2 + $0x1e8] sm:$0xff] %v2578_v25  ;;  %vm1948_vm9 = vcmp.ge.f32.partialorder %v7086_v4, -1.0  ;;  %vm1949_vm10 = vcmp.ge.f32.partialorder %v7087_v30, -1.0  ;;  %vm1821_vm11 = vcmp.eq.s32.totalorder %v1714_v45, %v5201_v22 }
 0x1e0   :  { %vm2449_vm8 = vmand %vm5740_vm14, %vm2321_vm0  ;;  %v2580_v19 = vsel %vm2110_vm4, %v5618_v41, -inf  ;;  %2707 = vst [vmem:[#allocation2 + $0x1f0] sm:$0xff] %v2579_v20  ;;  %vm1950_vm12 = vcmp.ge.f32.partialorder %v7088_v53, -1.0  ;;  %vm2289_vm13 = vcmp.ne.s32.totalorder %v2193_v44, %v5218_v1  ;;  %vm1822_vm15 = vcmp.eq.s32.totalorder %v1714_v45, %v5203_v18 }
 0x1e1   :  { %v2577_v58 = vsel %vm2449_vm8, %v5602_v43, -inf  ;;  %2708 = vst [vmem:[#allocation2 + $0x1f8] sm:$0xff] %v2580_v19  ;;  %vm5775_vm14 = vmand %vm1819_vm5, %vm1947_vm6  ;;  %v2203_v57 = vadd.s32 136, %v5216_v34  ;;  %v5783_v43 = vadd.s32 128, %v5218_v1  ;;  %v5787_v49 = vsub.f32 %v5085_v14, %v5626_v46 }
 0x1e2   :  { %2705 = vst [vmem:[#allocation2 + $0x1e0] sm:$0xff] %v2577_v58  ;;  %vm2076_vm0 = vmand %vm1820_vm7, %vm1948_vm9  ;;  %v5791_v2 = vsub.f32 %v5088_v38, %v5628_v52  ;;  %vm1859_vm2 = vcmp.eq.s32.totalorder %v1744_v59, %v5197_v6  ;;  %v5799_v62 = vsub.f32 %v5091_v63, %v5634_v8  ;;  %v5803_v25 = vsub.f32 %v5094_v54, %v5643_v27  ;;  %v7091_v52 = vld [vmem:[#allocation62_spill] sm:$0xff]  ;;  %v1747_v8 = vpop.permute.xlu0 %1746 }
 0x1e3   :  { %vm2077_vm1 = vmand %vm1821_vm11, %vm1949_vm10  ;;  %v2546_v9 = vsel %vm2076_vm0, %v7086_v4, -inf  ;;  %v1385_v14 = vsub.f32 %v7084_v61, %v4292_v13  ;;  %v5807_v38 = vmul.f32 %v1382_v5, %v1382_v5  ;;  %vm1860_vm5 = vcmp.eq.s32.totalorder %v1744_v59, %v5199_v0  ;;  %v7092_v61 = vld [vmem:[#allocation63_spill] sm:$0xff] }
 0x1e4   :  { %vm2078_vm3 = vmand %vm1822_vm15, %vm1950_vm12  ;;  %v2547_v46 = vsel %vm2077_vm1, %v7087_v30, -inf  ;;  %2674 = vst [vmem:[#allocation2 + $0xe8] sm:$0xff] %v2546_v9  ;;  %v5815_v63 = vmul.f32 %v1383_v47, %v1383_v47  ;;  %vm1987_vm6 = vcmp.ge.f32.partialorder %v7091_v52, -1.0  ;;  %vm1861_vm7 = vcmp.eq.s32.totalorder %v1744_v59, %v5201_v22  ;;  %v7093_v5 = vld [vmem:[#allocation7_spill] sm:$0xff]  ;;  %v1723_v9 = vpop.permute.xlu1 %1722 }
 0x1e5   :  { %vm2417_vm4 = vmand %vm5775_vm14, %vm2289_vm13  ;;  %v2548_v54 = vsel %vm2078_vm3, %v7088_v53, -inf  ;;  %2675 = vst [vmem:[#allocation2 + $0xf0] sm:$0xff] %v2547_v46  ;;  %v5824_v27 = vmul.f32 %v1384_v56, %v1384_v56  ;;  %vm1988_vm8 = vcmp.ge.f32.partialorder %v7092_v61, -1.0  ;;  %vm1862_vm9 = vcmp.eq.s32.totalorder %v1744_v59, %v5203_v18  ;;  %v7094_v47 = vld [vmem:[#allocation35_spill] sm:$0xff] }
 0x1e6   :  { %v2545_v45 = vsel %vm2417_vm4, %v7085_v32, -inf  ;;  %2676 = vst [vmem:[#allocation2 + $0xf8] sm:$0xff] %v2548_v54  ;;  %vm2115_vm10 = vmand %vm1859_vm2, %vm1987_vm6  ;;  %v1394_v44 = vsub.f32 %v7093_v5, %v4233_v36  ;;  %vm1989_vm11 = vcmp.ge.f32.partialorder %v7094_v47, -1.0  ;;  %vm2330_vm12 = vcmp.ne.s32.totalorder %v2203_v57, %v5783_v43  ;;  %v7095_v32 = vld [vmem:[#allocation36_spill] sm:$0xff] }
 0x1e7   :  { %2673 = vst [vmem:[#allocation2 + $0xe0] sm:$0xff] %v2545_v45  ;;  %vm2116_vm13 = vmand %vm1860_vm5, %vm1988_vm8  ;;  %v2585_v56 = vsel %vm2115_vm10, %v7091_v52, -inf  ;;  %v5838_v20 = vmul.f32 %v1385_v14, %v1385_v14  ;;  %vm1990_vm15 = vcmp.ge.f32.partialorder %v7095_v32, -1.0  ;;  %v2204_v19 = vadd.s32 144, %v5216_v34 }
 0x1e8   :  { %vm2117_vm14 = vmand %vm1861_vm7, %vm1989_vm11  ;;  %2713 = vst [vmem:[#allocation2 + $0x220] sm:$0xff] %v2585_v56  ;;  %vm1863_vm0 = vcmp.eq.s32.totalorder %v1747_v8, %v5197_v6  ;;  %v1395_v4 = vsub.f32 %v7093_v5, %v4284_v21  ;;  %v1396_v30 = vsub.f32 %v7093_v5, %v4288_v28  ;;  %vm1864_vm2 = vcmp.eq.s32.totalorder %v1747_v8, %v5199_v0 }
 0x1e9   :  { %vm2118_vm1 = vmand %vm1862_vm9, %vm1990_vm15  ;;  %v2587_v58 = vsel %vm2117_vm14, %v7094_v47, -inf  ;;  %v1397_v53 = vsub.f32 %v7093_v5, %v4292_v13  ;;  %vm1991_vm5 = vcmp.ge.f32.partialorder %v5697_v48, -1.0  ;;  %vm1865_vm4 = vcmp.eq.s32.totalorder %v1747_v8, %v5201_v22  ;;  %v7101_v5 = vld [vmem:[#allocation104_spill] sm:$0xff] }
 0x1ea   :  { %vm2458_vm3 = vmand %vm2116_vm13, %vm2330_vm12  ;;  %v2588_v41 = vsel %vm2118_vm1, %v7095_v32, -inf  ;;  %2715 = vst [vmem:[#allocation2 + $0x230] sm:$0xff] %v2587_v58  ;;  %v5860_v59 = vmul.f32 %v1394_v44, %v1394_v44  ;;  %vm1992_vm6 = vcmp.ge.f32.partialorder %v5701_v3, -1.0  ;;  %vm1866_vm7 = vcmp.eq.s32.totalorder %v1747_v8, %v5203_v18  ;;  %v7103_v58 = vld [vmem:[#allocation72_spill] sm:$0xff] }
 0x1eb   :  { %v2586_v14 = vsel %vm2458_vm3, %v7092_v61, -inf  ;;  %2716 = vst [vmem:[#allocation2 + $0x238] sm:$0xff] %v2588_v41  ;;  %vm2119_vm8 = vmand %vm1863_vm0, %vm1991_vm5  ;;  %vm1993_vm9 = vcmp.ge.f32.partialorder %v5705_v11, -1.0  ;;  %vm1994_vm10 = vcmp.ge.f32.partialorder %v5712_v24, -1.0  ;;  %vm2334_vm11 = vcmp.ne.s32.totalorder %v2204_v19, %v5783_v43 }
 0x1ec   :  { %2714 = vst [vmem:[#allocation2 + $0x228] sm:$0xff] %v2586_v14  ;;  %vm2120_vm12 = vmand %vm1864_vm2, %vm1992_vm6  ;;  %v2589_v57 = vsel %vm2119_vm8, %v5697_v48, -inf  ;;  %v2196_v46 = vadd.s32 80, %v5216_v34  ;;  %vm1831_vm15 = vcmp.eq.s32.totalorder %v1723_v9, %v5197_v6  ;;  %v5877_v54 = vsub.f32 %v5151_v42, %v5714_v29  ;;  %v7096_v42 = vld [vmem:[#allocation37_spill] sm:$0xff] }
 0x1ed   :  { %vm2121_vm13 = vmand %vm1865_vm4, %vm1993_vm9  ;;  %2717 = vst [vmem:[#allocation2 + $0x240] sm:$0xff] %v2589_v57  ;;  %v5881_v52 = vsub.f32 %v5154_v60, %v5716_v50  ;;  %vm1832_vm0 = vcmp.eq.s32.totalorder %v1723_v9, %v5199_v0  ;;  %v5887_v48 = vsub.f32 %v5157_v31, %v5724_v26  ;;  %v5891_v45 = vsub.f32 %v5160_v35, %v5733_v15  ;;  %v7097_v35 = vld [vmem:[#allocation39_spill] sm:$0xff]  ;;  %v7104_v14 = vld [vmem:[#allocation73_spill] sm:$0xff] }
 0x1ee   :  { %vm2122_vm14 = vmand %vm1866_vm7, %vm1994_vm10  ;;  %v2591_v8 = vsel %vm2121_vm13, %v5705_v11, -inf  ;;  %v5893_v61 = vmul.f32 %v1395_v4, %v1395_v4  ;;  %vm1959_vm2 = vcmp.ge.f32.partialorder %v7096_v42, -1.0  ;;  %vm1833_vm3 = vcmp.eq.s32.totalorder %v1723_v9, %v5201_v22  ;;  %v1753_v11 = vpop.permute.xlu2 %1752 }
 0x1ef   :  { %vm2462_vm1 = vmand %vm2120_vm12, %vm2334_vm11  ;;  %v2592_v60 = vsel %vm2122_vm14, %v5712_v24, -inf  ;;  %2719 = vst [vmem:[#allocation2 + $0x250] sm:$0xff] %v2591_v8  ;;  %v5900_v29 = vmul.f32 %v1396_v30, %v1396_v30  ;;  %vm1960_vm5 = vcmp.ge.f32.partialorder %v7097_v35, -1.0  ;;  %vm1834_vm4 = vcmp.eq.s32.totalorder %v1723_v9, %v5203_v18  ;;  %v7100_v24 = vld [vmem:[#allocation67_spill] sm:$0xff] }
 0x1f0   :  { %v2590_v31 = vsel %vm2462_vm1, %v5701_v3, -inf  ;;  %2720 = vst [vmem:[#allocation2 + $0x258] sm:$0xff] %v2592_v60  ;;  %vm5907_vm6 = vmand %vm1831_vm15, %vm1959_vm2  ;;  %v1390_v26 = vsub.f32 %v7100_v24, %v4233_v36  ;;  %v1391_v15 = vsub.f32 %v7100_v24, %v4284_v21  ;;  %vm1961_vm7 = vcmp.ge.f32.partialorder %v7101_v5, -1.0  ;;  %v7102_v3 = vld [vmem:[#allocation53_spill] sm:$0xff]  ;;  %v7106_v60 = vld [vmem:[#allocation46_spill] sm:$0xff] }
 0x1f1   :  { %2718 = vst [vmem:[#allocation2 + $0x248] sm:$0xff] %v2590_v31  ;;  %vm2301_vm8 = vcmp.ne.s32.totalorder %v2196_v46, %v5218_v1  ;;  %vm2088_vm9 = vmand %vm1832_vm0, %vm1960_vm5  ;;  %vm1962_vm10 = vcmp.ge.f32.partialorder %v7102_v3, -1.0  ;;  %v2206_v47 = vadd.s32 160, %v5216_v34  ;;  %vm1871_vm12 = vcmp.eq.s32.totalorder %v1753_v11, %v5197_v6  ;;  %v7105_v46 = vld [vmem:[#allocation45_spill] sm:$0xff] }
 0x1f2   :  { %vm2089_vm11 = vmand %vm1833_vm3, %vm1961_vm7  ;;  %v2558_v44 = vsel %vm2088_vm9, %v7097_v35, -inf  ;;  %v5925_v56 = vmul.f32 %v1397_v53, %v1397_v53  ;;  %v1392_v32 = vsub.f32 %v7100_v24, %v4288_v28  ;;  %vm1872_vm15 = vcmp.eq.s32.totalorder %v1753_v11, %v5199_v0  ;;  %v1756_v53 = vpop.permute.xlu0 %1755 }
 0x1f3   :  { %vm2090_vm13 = vmand %vm1834_vm4, %vm1962_vm10  ;;  %v2559_v19 = vsel %vm2089_vm11, %v7101_v5, -inf  ;;  %2686 = vst [vmem:[#allocation2 + $0x148] sm:$0xff] %v2558_v44  ;;  %v1393_v4 = vsub.f32 %v7100_v24, %v4292_v13  ;;  %vm1999_vm0 = vcmp.ge.f32.partialorder %v7103_v58, -1.0  ;;  %vm1873_vm1 = vcmp.eq.s32.totalorder %v1753_v11, %v5201_v22  ;;  %v7109_v44 = vld [vmem:[#allocation116_spill] sm:$0xff] }
 0x1f4   :  { %vm2429_vm14 = vmand %vm5907_vm6, %vm2301_vm8  ;;  %v2560_v30 = vsel %vm2090_vm13, %v7102_v3, -inf  ;;  %2687 = vst [vmem:[#allocation2 + $0x150] sm:$0xff] %v2559_v19  ;;  %v1518_v41 = vmul.f32 %v1390_v26, %v1390_v26  ;;  %vm2000_vm2 = vcmp.ge.f32.partialorder %v7104_v14, -1.0  ;;  %vm1874_vm3 = vcmp.eq.s32.totalorder %v1753_v11, %v5203_v18 }
 0x1f5   :  { %v2557_v9 = vsel %vm2429_vm14, %v7096_v42, -inf  ;;  %2688 = vst [vmem:[#allocation2 + $0x158] sm:$0xff] %v2560_v30  ;;  %vm2127_vm5 = vmand %vm1871_vm12, %vm1999_vm0  ;;  %v1519_v57 = vmul.f32 %v1391_v15, %v1391_v15  ;;  %vm2001_vm4 = vcmp.ge.f32.partialorder %v7105_v46, -1.0  ;;  %vm2342_vm6 = vcmp.ne.s32.totalorder %v2206_v47, %v5783_v43  ;;  %v7107_v15 = vld [vmem:[#allocation48_spill] sm:$0xff]  ;;  %v7111_v30 = vld [vmem:[#allocation49_spill] sm:$0xff] }
 0x1f6   :  { %2685 = vst [vmem:[#allocation2 + $0x140] sm:$0xff] %v2557_v9  ;;  %vm2128_vm7 = vmand %vm1872_vm15, %vm2000_vm2  ;;  %v2597_v8 = vsel %vm2127_vm5, %v7103_v58, -inf  ;;  %vm2002_vm8 = vcmp.ge.f32.partialorder %v7106_v60, -1.0  ;;  %v2207_v42 = vadd.s32 168, %v5216_v34  ;;  %vm1875_vm10 = vcmp.eq.s32.totalorder %v1756_v53, %v5197_v6  ;;  %v1762_v3 = vpop.permute.xlu2 %1761  ;;  %v7114_v58 = vld [vmem:[#allocation64_spill] sm:$0xff] }
 0x1f7   :  { %vm2129_vm9 = vmand %vm1873_vm1, %vm2001_vm4  ;;  %2725 = vst [vmem:[#allocation2 + $0x280] sm:$0xff] %v2597_v8  ;;  %v5957_v31 = vsub.f32 %v5186_v55, %v5807_v38  ;;  %vm1876_vm12 = vcmp.eq.s32.totalorder %v1756_v53, %v5199_v0  ;;  %v5963_v50 = vsub.f32 %v5189_v12, %v5815_v63  ;;  %v5967_v11 = vsub.f32 %v5192_v33, %v5824_v27  ;;  %v1732_v55 = vpop.permute.xlu1 %1731 }
 0x1f8   :  { %vm2130_vm11 = vmand %vm1874_vm3, %vm2002_vm8  ;;  %v2599_v35 = vsel %vm2129_vm9, %v7105_v46, -inf  ;;  %vm2003_vm15 = vcmp.ge.f32.partialorder %v5787_v49, -1.0  ;;  %vm1877_vm14 = vcmp.eq.s32.totalorder %v1756_v53, %v5201_v22  ;;  %v5974_v38 = vsub.f32 %v5195_v16, %v5838_v20 }
 0x1f9   :  { %vm2470_vm13 = vmand %vm2128_vm7, %vm2342_vm6  ;;  %v2600_v24 = vsel %vm2130_vm11, %v7106_v60, -inf  ;;  %2727 = vst [vmem:[#allocation2 + $0x290] sm:$0xff] %v2599_v35  ;;  %v1520_v26 = vmul.f32 %v1392_v32, %v1392_v32  ;;  %vm2004_vm0 = vcmp.ge.f32.partialorder %v5791_v2, -1.0  ;;  %vm1878_vm1 = vcmp.eq.s32.totalorder %v1756_v53, %v5203_v18  ;;  %v7110_v32 = vld [vmem:[#allocation77_spill] sm:$0xff]  ;;  %v7115_v53 = vld [vmem:[#allocation107_spill] sm:$0xff] }
 0x1fa   :  { %v2598_v12 = vsel %vm2470_vm13, %v7104_v14, -inf  ;;  %2728 = vst [vmem:[#allocation2 + $0x298] sm:$0xff] %v2600_v24  ;;  %vm2131_vm2 = vmand %vm1875_vm10, %vm2003_vm15  ;;  %v1521_v33 = vmul.f32 %v1393_v4, %v1393_v4  ;;  %vm2005_vm3 = vcmp.ge.f32.partialorder %v5799_v62, -1.0  ;;  %vm2346_vm5 = vcmp.ne.s32.totalorder %v2207_v42, %v5783_v43  ;;  %v1765_v60 = vpop.permute.xlu0 %1764  ;;  %v7121_v24 = vld [vmem:[#allocation56_spill] sm:$0xff] }
 0x1fb   :  { %2726 = vst [vmem:[#allocation2 + $0x288] sm:$0xff] %v2598_v12  ;;  %vm2132_vm4 = vmand %vm1876_vm12, %vm2004_vm0  ;;  %v2601_v16 = vsel %vm2131_vm2, %v5787_v49, -inf  ;;  %v5988_v63 = vsub.f32 %v5398_v7, %v4233_v36  ;;  %vm2006_vm6 = vcmp.ge.f32.partialorder %v5803_v25, -1.0  ;;  %v2199_v27 = vadd.s32 104, %v5216_v34  ;;  %v7108_v49 = vld [vmem:[#allocation115_spill] sm:$0xff] }
 0x1fc   :  { %vm2133_vm7 = vmand %vm1877_vm14, %vm2005_vm3  ;;  %2729 = vst [vmem:[#allocation2 + $0x2a0] sm:$0xff] %v2601_v16  ;;  %vm1843_vm8 = vcmp.eq.s32.totalorder %v1732_v55, %v5197_v6  ;;  %vm1971_vm10 = vcmp.ge.f32.partialorder %v7107_v15, -1.0  ;;  %vm1844_vm11 = vcmp.eq.s32.totalorder %v1732_v55, %v5199_v0  ;;  %v5999_v36 = vsub.f32 %v7108_v49, %v1518_v41 }
 0x1fd   :  { %vm2134_vm9 = vmand %vm1878_vm1, %vm2006_vm6  ;;  %v2603_v20 = vsel %vm2133_vm7, %v5799_v62, -inf  ;;  %vm1845_vm13 = vcmp.eq.s32.totalorder %v1732_v55, %v5201_v22  ;;  %v6004_v47 = vsub.f32 %v7109_v44, %v1519_v57  ;;  %v6007_v19 = vsub.f32 %v7110_v32, %v1520_v26 }
 0x1fe   :  { %vm2474_vm12 = vmand %vm2132_vm4, %vm2346_vm5  ;;  %v2604_v5 = vsel %vm2134_vm9, %v5803_v25, -inf  ;;  %2731 = vst [vmem:[#allocation2 + $0x2b0] sm:$0xff] %v2603_v20  ;;  %v1399_v62 = vsub.f32 %v5398_v7, %v4284_v21  ;;  %vm1972_vm15 = vcmp.ge.f32.partialorder %v7111_v30, -1.0  ;;  %vm1846_vm14 = vcmp.eq.s32.totalorder %v1732_v55, %v5203_v18  ;;  %v7116_v21 = vld [vmem:[#allocation78_spill] sm:$0xff] }
 0x1ff   :  { %v2602_v4 = vsel %vm2474_vm12, %v5791_v2, -inf  ;;  %2732 = vst [vmem:[#allocation2 + $0x2b8] sm:$0xff] %v2604_v5  ;;  %vm6018_vm0 = vmand %vm1843_vm8, %vm1971_vm10  ;;  %vm1973_vm1 = vcmp.ge.f32.partialorder %v7114_v58, -1.0  ;;  %vm1974_vm2 = vcmp.ge.f32.partialorder %v7115_v53, -1.0  ;;  %vm2313_vm3 = vcmp.ne.s32.totalorder %v2199_v27, %v5218_v1  ;;  %v6060_v42 = vpop.permute.xlu1 %1740  ;;  %v7124_v5 = vld [vmem:[#allocation128_spill] sm:$0xff] }
 0x200   :  { %2730 = vst [vmem:[#allocation2 + $0x2a8] sm:$0xff] %v2602_v4  ;;  %vm2100_vm5 = vmand %vm1844_vm11, %vm1972_vm15  ;;  %v6028_v2 = vsub.f32 %v7116_v21, %v1521_v33  ;;  %v2209_v9 = vadd.s32 184, %v5216_v34  ;;  %vm1883_vm6 = vcmp.eq.s32.totalorder %v1762_v3, %v5197_v6  ;;  %v6037_v14 = vsub.f32 %v5261_v39, %v5860_v59  ;;  %v7119_v59 = vld [vmem:[#allocation79_spill] sm:$0xff]  ;;  %v1771_v4 = vpop.permute.xlu2 %1770  ;;  %v7130_v21 = vld [vmem:[#allocation112_spill] sm:$0xff] }
 0x201   :  { %vm2101_vm4 = vmand %vm1845_vm13, %vm1973_vm1  ;;  %v2570_v41 = vsel %vm2100_vm5, %v7111_v30, -inf  ;;  %vm1884_vm8 = vcmp.eq.s32.totalorder %v1762_v3, %v5199_v0  ;;  %v6047_v46 = vsub.f32 %v5264_v17, %v5893_v61  ;;  %v6051_v8 = vsub.f32 %v5271_v37, %v5900_v29  ;;  %v7120_v29 = vld [vmem:[#allocation80_spill] sm:$0xff]  ;;  %v7127_v30 = vld [vmem:[#allocation130_spill] sm:$0xff] }
 0x202   :  { %vm6039_vm7 = vmand %vm1846_vm14, %vm1974_vm2  ;;  %v2571_v57 = vsel %vm2101_vm4, %v7114_v58, -inf  ;;  %2698 = vst [vmem:[#allocation2 + $0x1a8] sm:$0xff] %v2570_v41  ;;  %vm2011_vm10 = vcmp.ge.f32.partialorder %v7119_v59, -1.0  ;;  %vm1885_vm11 = vcmp.eq.s32.totalorder %v1762_v3, %v5201_v22  ;;  %v6064_v17 = vsub.f32 %v5274_v23, %v5925_v56  ;;  %v7122_v23 = vld [vmem:[#allocation57_spill] sm:$0xff] }
 0x203   :  { %vm2441_vm9 = vmand %vm6018_vm0, %vm2313_vm3  ;;  %v2572_v39 = vsel %vm6039_vm7, %v7115_v53, -inf  ;;  %2699 = vst [vmem:[#allocation2 + $0x1b0] sm:$0xff] %v2571_v57  ;;  %v1400_v37 = vsub.f32 %v5398_v7, %v4288_v28  ;;  %vm2012_vm12 = vcmp.ge.f32.partialorder %v7120_v29, -1.0  ;;  %vm1886_vm13 = vcmp.eq.s32.totalorder %v1762_v3, %v5203_v18  ;;  %v7125_v3 = vld [vmem:[#allocation129_spill] sm:$0xff]  ;;  %v7128_v53 = vld [vmem:[#allocation59_spill] sm:$0xff] }
 0x204   :  { %v2569_v61 = vsel %vm2441_vm9, %v7107_v15, -inf  ;;  %2700 = vst [vmem:[#allocation2 + $0x1b8] sm:$0xff] %v2572_v39  ;;  %vm2139_vm15 = vmand %vm1883_vm6, %vm2011_vm10  ;;  %v1401_v35 = vsub.f32 %v5398_v7, %v4292_v13  ;;  %vm2013_vm14 = vcmp.ge.f32.partialorder %v7121_v24, -1.0  ;;  %vm2354_vm0 = vcmp.ne.s32.totalorder %v2209_v9, %v5783_v43  ;;  %v7123_v15 = vld [vmem:[#allocation127_spill] sm:$0xff]  ;;  %v1774_v39 = vpop.permute.xlu0 %1773 }
 0x205   :  { %2697 = vst [vmem:[#allocation2 + $0x1a0] sm:$0xff] %v2569_v61  ;;  %vm2140_vm1 = vmand %vm1884_vm8, %vm2012_vm12  ;;  %v2609_v28 = vsel %vm2139_vm15, %v7119_v59, -inf  ;;  %vm2014_vm2 = vcmp.ge.f32.partialorder %v7122_v23, -1.0  ;;  %v2210_v56 = vadd.s32 192, %v5216_v34  ;;  %vm1887_vm5 = vcmp.eq.s32.totalorder %v1765_v60, %v5197_v6  ;;  %v7131_v57 = vld [vmem:[#allocation71_spill] sm:$0xff] }
 0x206   :  { %vm2141_vm3 = vmand %vm1885_vm11, %vm2013_vm14  ;;  %2737 = vst [vmem:[#allocation2 + $0x2e0] sm:$0xff] %v2609_v28  ;;  %v1526_v13 = vmul.f32 %v5988_v63, %v5988_v63  ;;  %v1527_v7 = vmul.f32 %v1399_v62, %v1399_v62  ;;  %vm1888_vm6 = vcmp.eq.s32.totalorder %v1765_v60, %v5199_v0  ;;  %v1528_v26 = vmul.f32 %v1400_v37, %v1400_v37  ;;  %v7126_v62 = vld [vmem:[#allocation58_spill] sm:$0xff]  ;;  %v7134_v61 = vld [vmem:[#allocation91_spill] sm:$0xff] }
 0x207   :  { %vm2142_vm4 = vmand %vm1886_vm13, %vm2014_vm2  ;;  %v2611_v55 = vsel %vm2141_vm3, %v7121_v24, -inf  ;;  %vm2015_vm8 = vcmp.ge.f32.partialorder %v5877_v54, -1.0  ;;  %vm1889_vm9 = vcmp.eq.s32.totalorder %v1765_v60, %v5201_v22  ;;  %v1529_v33 = vmul.f32 %v1401_v35, %v1401_v35 }
 0x208   :  { %vm2482_vm7 = vmand %vm2140_vm1, %vm2354_vm0  ;;  %v2612_v12 = vsel %vm2142_vm4, %v7122_v23, -inf  ;;  %2739 = vst [vmem:[#allocation2 + $0x2f0] sm:$0xff] %v2611_v55  ;;  %vm2016_vm10 = vcmp.ge.f32.partialorder %v5881_v52, -1.0  ;;  %vm1890_vm11 = vcmp.eq.s32.totalorder %v1765_v60, %v5203_v18  ;;  %vm2017_vm13 = vcmp.ge.f32.partialorder %v5887_v48, -1.0  ;;  %v7132_v60 = vld [vmem:[#allocation74_spill] sm:$0xff] }
 0x209   :  { %v2610_v16 = vsel %vm2482_vm7, %v7120_v29, -inf  ;;  %2740 = vst [vmem:[#allocation2 + $0x2f8] sm:$0xff] %v2612_v12  ;;  %vm2143_vm12 = vmand %vm1887_vm5, %vm2015_vm8  ;;  %vm2358_vm15 = vcmp.ne.s32.totalorder %v2210_v56, %v5783_v43  ;;  %vm2018_vm0 = vcmp.ge.f32.partialorder %v5891_v45, -1.0  ;;  %v2202_v27 = vadd.s32 128, %v5216_v34 }
 0x20a   :  { %2738 = vst [vmem:[#allocation2 + $0x2e8] sm:$0xff] %v2610_v16  ;;  %vm2144_vm14 = vmand %vm1888_vm6, %vm2016_vm10  ;;  %v2613_v63 = vsel %vm2143_vm12, %v5877_v54, -inf  ;;  %vm1855_vm2 = vcmp.eq.s32.totalorder %v6060_v42, %v5197_v6  ;;  %vm1856_vm3 = vcmp.eq.s32.totalorder %v6060_v42, %v5199_v0  ;;  %v6112_v49 = vsub.f32 %v7123_v15, %v1526_v13  ;;  %v7138_v16 = vld [vmem:[#allocation66_spill] sm:$0xff] }
 0x20b   :  { %vm2145_vm1 = vmand %vm1889_vm9, %vm2017_vm13  ;;  %2741 = vst [vmem:[#allocation2 + $0x300] sm:$0xff] %v2613_v63  ;;  %v6115_v54 = vsub.f32 %v7124_v5, %v1527_v7  ;;  %v6118_v44 = vsub.f32 %v7125_v3, %v1528_v26  ;;  %vm1983_vm6 = vcmp.ge.f32.partialorder %v7126_v62, -1.0  ;;  %vm1857_vm7 = vcmp.eq.s32.totalorder %v6060_v42, %v5201_v22  ;;  %v1780_v26 = vpop.permute.xlu2 %1779 }
 0x20c   :  { %vm2146_vm5 = vmand %vm1890_vm11, %vm2018_vm0  ;;  %v2615_v20 = vsel %vm2145_vm1, %v5887_v48, -inf  ;;  %v6124_v48 = vpop.permute.xlu1 %1749  ;;  %v6127_v25 = vsub.f32 %v7127_v30, %v1529_v33  ;;  %vm1984_vm8 = vcmp.ge.f32.partialorder %v7128_v53, -1.0  ;;  %vm1858_vm9 = vcmp.eq.s32.totalorder %v6060_v42, %v5203_v18  ;;  %v7133_v42 = vld [vmem:[#allocation5_spill] sm:$0xff] }
 0x20d   :  { %vm2486_vm4 = vmand %vm2144_vm14, %vm2358_vm15  ;;  %v2616_v32 = vsel %vm2146_vm5, %v5891_v45, -inf  ;;  %2743 = vst [vmem:[#allocation2 + $0x310] sm:$0xff] %v2615_v20  ;;  %v7129_v45 = vld [vmem:[#allocation111_spill] sm:$0xff]  ;;  %vm2326_vm12 = vcmp.ne.s32.totalorder %v2202_v27, %v5783_v43  ;;  %vm1986_vm15 = vcmp.ge.f32.partialorder %v7130_v21, -1.0  ;;  %v2212_v41 = vadd.s32 208, %v5216_v34  ;;  %v7136_v33 = vld [vmem:[#allocation93_spill] sm:$0xff]  ;;  %v1783_v20 = vpop.permute.xlu0 %1782 }
 0x20e   :  { %v2614_v58 = vsel %vm2486_vm4, %v5881_v52, -inf  ;;  %2744 = vst [vmem:[#allocation2 + $0x318] sm:$0xff] %v2616_v32  ;;  %vm2111_vm10 = vmand %vm1855_vm2, %vm1983_vm6  ;;  %vm1985_vm11 = vcmp.ge.f32.partialorder %v7129_v45, -1.0  ;;  %vm1895_vm0 = vcmp.eq.s32.totalorder %v1771_v4, %v5197_v6  ;;  %vm1896_vm2 = vcmp.eq.s32.totalorder %v1771_v4, %v5199_v0 }
 0x20f   :  { %2742 = vst [vmem:[#allocation2 + $0x308] sm:$0xff] %v2614_v58  ;;  %vm2112_vm13 = vmand %vm1856_vm3, %vm1984_vm8  ;;  %v2581_v52 = vsel %vm2111_vm10, %v7126_v62, -inf  ;;  %vm2023_vm3 = vcmp.ge.f32.partialorder %v7131_v57, -1.0  ;;  %vm1897_vm4 = vcmp.eq.s32.totalorder %v1771_v4, %v5201_v22  ;;  %vm2024_vm6 = vcmp.ge.f32.partialorder %v7132_v60, -1.0 }
 0x210   :  { %vm2113_vm14 = vmand %vm1857_vm7, %vm1985_vm11  ;;  %2709 = vst [vmem:[#allocation2 + $0x200] sm:$0xff] %v2581_v52  ;;  %vm1898_vm7 = vcmp.eq.s32.totalorder %v1771_v4, %v5203_v18  ;;  %vm2366_vm10 = vcmp.ne.s32.totalorder %v2212_v41, %v5783_v43  ;;  %v2213_v29 = vadd.s32 216, %v5216_v34  ;;  %v2205_v13 = vadd.s32 152, %v5216_v34  ;;  %v7141_v52 = vld [vmem:[#allocation24_spill] sm:$0xff]  ;;  %v7143_v41 = vld [vmem:[#allocation22_spill] sm:$0xff] }
 0x211   :  { %vm2114_vm1 = vmand %vm1858_vm9, %vm1986_vm15  ;;  %v2583_v9 = vsel %vm2113_vm14, %v7129_v45, -inf  ;;  %vm2025_vm9 = vcmp.ge.f32.partialorder %v7133_v42, -1.0  ;;  %vm1899_vm15 = vcmp.eq.s32.totalorder %v1774_v39, %v5197_v6  ;;  %v2216_v32 = vadd.s32 240, %v5216_v34 }
 0x212   :  { %vm2454_vm5 = vmand %vm2112_vm13, %vm2326_vm12  ;;  %v2584_v1 = vsel %vm2114_vm1, %v7130_v21, -inf  ;;  %2711 = vst [vmem:[#allocation2 + $0x210] sm:$0xff] %v2583_v9  ;;  %vm2026_vm12 = vcmp.ge.f32.partialorder %v7134_v61, -1.0 }
 0x213   :  { %v2582_v59 = vsel %vm2454_vm5, %v7128_v53, -inf  ;;  %2712 = vst [vmem:[#allocation2 + $0x218] sm:$0xff] %v2584_v1  ;;  %vm2151_vm8 = vmand %vm1895_vm0, %vm2023_vm3  ;;  %vm1900_vm0 = vcmp.eq.s32.totalorder %v1774_v39, %v5199_v0  ;;  %vm1901_vm5 = vcmp.eq.s32.totalorder %v1774_v39, %v5201_v22  ;;  %vm2028_vm3 = vcmp.ge.f32.partialorder %v5963_v50, -1.0 }
 0x214   :  { %2710 = vst [vmem:[#allocation2 + $0x208] sm:$0xff] %v2582_v59  ;;  %vm2152_vm11 = vmand %vm1896_vm2, %vm2024_vm6  ;;  %v2621_v37 = vsel %vm2151_vm8, %v7131_v57, -inf  ;;  %vm2027_vm2 = vcmp.ge.f32.partialorder %v5957_v31, -1.0  ;;  %v6169_v28 = vpop.permute.xlu1 %1758  ;;  %vm2370_vm8 = vcmp.ne.s32.totalorder %v2213_v29, %v5783_v43  ;;  %v7144_v57 = vld [vmem:[#allocation94_spill] sm:$0xff]  ;;  %v2217_v29 = vadd.s32 248, %v5216_v34 }
 0x215   :  { %vm2153_vm13 = vmand %vm1897_vm4, %vm2025_vm9  ;;  %2749 = vst [vmem:[#allocation2 + $0x340] sm:$0xff] %v2621_v37  ;;  %vm1902_vm4 = vcmp.eq.s32.totalorder %v1774_v39, %v5203_v18 }
 0x216   :  { %vm2154_vm14 = vmand %vm1898_vm7, %vm2026_vm12  ;;  %v2623_v35 = vsel %vm2153_vm13, %v7133_v42, -inf  ;;  %vm2029_vm7 = vcmp.ge.f32.partialorder %v5967_v11, -1.0  ;;  %vm1867_vm12 = vcmp.eq.s32.totalorder %v6124_v48, %v5197_v6  ;;  %v7146_v42 = vld [vmem:[#allocation96_spill] sm:$0xff] }
 0x217   :  { %vm2494_vm1 = vmand %vm2152_vm11, %vm2366_vm10  ;;  %v2624_v24 = vsel %vm2154_vm14, %v7134_v61, -inf  ;;  %2751 = vst [vmem:[#allocation2 + $0x350] sm:$0xff] %v2623_v35  ;;  %vm2030_vm10 = vcmp.ge.f32.partialorder %v5974_v38, -1.0  ;;  %v7147_v61 = vld [vmem:[#allocation97_spill] sm:$0xff] }
 0x218   :  { %v2622_v23 = vsel %vm2494_vm1, %v7132_v60, -inf  ;;  %2752 = vst [vmem:[#allocation2 + $0x358] sm:$0xff] %v2624_v24  ;;  %vm2155_vm6 = vmand %vm1899_vm15, %vm2027_vm2  ;;  %vm1868_vm15 = vcmp.eq.s32.totalorder %v6124_v48, %v5199_v0  ;;  %vm1869_vm1 = vcmp.eq.s32.totalorder %v6124_v48, %v5201_v22  ;;  %vm1996_vm2 = vcmp.ge.f32.partialorder %v7136_v33, -1.0  ;;  %v7145_v60 = vld [vmem:[#allocation95_spill] sm:$0xff] }
 0x219   :  { %2750 = vst [vmem:[#allocation2 + $0x348] sm:$0xff] %v2622_v23  ;;  %vm2156_vm9 = vmand %vm1900_vm0, %vm2028_vm3  ;;  %v2625_v56 = vsel %vm2155_vm6, %v5957_v31, -inf  ;;  %v7135_v31 = vld [vmem:[#allocation92_spill] sm:$0xff]  ;;  %vm2338_vm6 = vcmp.ne.s32.totalorder %v2205_v13, %v5783_v43 }
 0x21a   :  { %vm2157_vm11 = vmand %vm1901_vm5, %vm2029_vm7  ;;  %2753 = vst [vmem:[#allocation2 + $0x360] sm:$0xff] %v2625_v56  ;;  %vm1995_vm0 = vcmp.ge.f32.partialorder %v7135_v31, -1.0  ;;  %vm1870_vm5 = vcmp.eq.s32.totalorder %v6124_v48, %v5203_v18 }
 0x21b   :  { %vm2158_vm13 = vmand %vm1902_vm4, %vm2030_vm10  ;;  %v2627_v7 = vsel %vm2157_vm11, %v5967_v11, -inf  ;;  %v7137_v11 = vld [vmem:[#allocation65_spill] sm:$0xff]  ;;  %vm1907_vm10 = vcmp.eq.s32.totalorder %v1780_v26, %v5197_v6 }
 0x21c   :  { %vm2498_vm14 = vmand %vm2156_vm9, %vm2370_vm8  ;;  %v2628_v55 = vsel %vm2158_vm13, %v5974_v38, -inf  ;;  %2755 = vst [vmem:[#allocation2 + $0x370] sm:$0xff] %v2627_v7  ;;  %vm1997_vm4 = vcmp.ge.f32.partialorder %v7137_v11, -1.0  ;;  %vm1998_vm8 = vcmp.ge.f32.partialorder %v7138_v16, -1.0  ;;  %v6208_v15 = vpop.permute.xlu1 %1767 }
 0x21d   :  { %v2626_v12 = vsel %vm2498_vm14, %v5963_v50, -inf  ;;  %2756 = vst [vmem:[#allocation2 + $0x378] sm:$0xff] %v2628_v55  ;;  %vm2123_vm3 = vmand %vm1867_vm12, %vm1995_vm0  ;;  %v2215_v50 = vadd.s32 232, %v5216_v34  ;;  %vm1908_vm12 = vcmp.eq.s32.totalorder %v1780_v26, %v5199_v0  ;;  %vm1909_vm14 = vcmp.eq.s32.totalorder %v1780_v26, %v5201_v22 }
 0x21e   :  { %2754 = vst [vmem:[#allocation2 + $0x368] sm:$0xff] %v2626_v12  ;;  %vm2124_vm7 = vmand %vm1868_vm15, %vm1996_vm2  ;;  %v2593_v38 = vsel %vm2123_vm3, %v7135_v31, -inf  ;;  %vm2035_vm15 = vcmp.ge.f32.partialorder %v5999_v36, -1.0  ;;  %vm2036_vm0 = vcmp.ge.f32.partialorder %v6004_v47, -1.0 }
 0x21f   :  { %vm2125_vm9 = vmand %vm1869_vm1, %vm1997_vm4  ;;  %2721 = vst [vmem:[#allocation2 + $0x260] sm:$0xff] %v2593_v38  ;;  %vm1910_vm1 = vcmp.eq.s32.totalorder %v1780_v26, %v5203_v18  ;;  %vm2378_vm3 = vcmp.ne.s32.totalorder %v2215_v50, %v5783_v43 }
 0x220   :  { %vm2126_vm11 = vmand %vm1870_vm5, %vm1998_vm8  ;;  %v2595_v63 = vsel %vm2125_vm9, %v7137_v11, -inf  ;;  %vm2037_vm5 = vcmp.ge.f32.partialorder %v6007_v19, -1.0  ;;  %vm1911_vm8 = vcmp.eq.s32.totalorder %v1783_v20, %v5197_v6 }
 0x221   :  { %vm2466_vm13 = vmand %vm2124_vm7, %vm2338_vm6  ;;  %v2596_v27 = vsel %vm2126_vm11, %v7138_v16, -inf  ;;  %2723 = vst [vmem:[#allocation2 + $0x270] sm:$0xff] %v2595_v63  ;;  %vm2038_vm6 = vcmp.ge.f32.partialorder %v6028_v2, -1.0 }
 0x222   :  { %v2594_v5 = vsel %vm2466_vm13, %v7136_v33, -inf  ;;  %2724 = vst [vmem:[#allocation2 + $0x278] sm:$0xff] %v2596_v27  ;;  %vm2163_vm2 = vmand %vm1907_vm10, %vm2035_vm15  ;;  %vm1912_vm10 = vcmp.eq.s32.totalorder %v1783_v20, %v5199_v0  ;;  %vm1913_vm13 = vcmp.eq.s32.totalorder %v1783_v20, %v5201_v22  ;;  %vm2040_vm15 = vcmp.ge.f32.partialorder %v6047_v46, -1.0 }
 0x223   :  { %2722 = vst [vmem:[#allocation2 + $0x268] sm:$0xff] %v2594_v5  ;;  %vm2164_vm4 = vmand %vm1908_vm12, %vm2036_vm0  ;;  %v2633_v3 = vsel %vm2163_vm2, %v5999_v36, -inf  ;;  %vm2039_vm12 = vcmp.ge.f32.partialorder %v6037_v14, -1.0  ;;  %vm2382_vm2 = vcmp.ne.s32.totalorder %v2216_v32, %v5783_v43 }
 0x224   :  { %vm2165_vm7 = vmand %vm1909_vm14, %vm2037_vm5  ;;  %2761 = vst [vmem:[#allocation2 + $0x3a0] sm:$0xff] %v2633_v3  ;;  %vm1914_vm14 = vcmp.eq.s32.totalorder %v1783_v20, %v5203_v18 }
 0x225   :  { %vm2166_vm9 = vmand %vm1910_vm1, %vm2038_vm6  ;;  %v2635_v62 = vsel %vm2165_vm7, %v6007_v19, -inf  ;;  %vm2041_vm1 = vcmp.ge.f32.partialorder %v6051_v8, -1.0  ;;  %vm1879_vm6 = vcmp.eq.s32.totalorder %v6169_v28, %v5197_v6 }
 0x226   :  { %vm2506_vm11 = vmand %vm2164_vm4, %vm2378_vm3  ;;  %v2636_v4 = vsel %vm2166_vm9, %v6028_v2, -inf  ;;  %2763 = vst [vmem:[#allocation2 + $0x3b0] sm:$0xff] %v2635_v62  ;;  %vm2042_vm3 = vcmp.ge.f32.partialorder %v6064_v17, -1.0 }
 0x227   :  { %v2634_v36 = vsel %vm2506_vm11, %v6004_v47, -inf  ;;  %2764 = vst [vmem:[#allocation2 + $0x3b8] sm:$0xff] %v2636_v4  ;;  %vm2167_vm0 = vmand %vm1911_vm8, %vm2039_vm12  ;;  %v2208_v47 = vadd.s32 176, %v5216_v34  ;;  %vm1880_vm8 = vcmp.eq.s32.totalorder %v6169_v28, %v5199_v0  ;;  %vm1881_vm11 = vcmp.eq.s32.totalorder %v6169_v28, %v5201_v22 }
 0x228   :  { %2762 = vst [vmem:[#allocation2 + $0x3a8] sm:$0xff] %v2634_v36  ;;  %vm2168_vm5 = vmand %vm1912_vm10, %vm2040_vm15  ;;  %v2637_v19 = vsel %vm2167_vm0, %v6037_v14, -inf  ;;  %vm2007_vm10 = vcmp.ge.f32.partialorder %v5171_v10, -1.0  ;;  %v6245_v14 = vpop.permute.xlu1 %1776  ;;  %vm2008_vm12 = vcmp.ge.f32.partialorder %v5174_v40, -1.0 }
 0x229   :  { %vm2169_vm4 = vmand %vm1913_vm13, %vm2041_vm1  ;;  %2765 = vst [vmem:[#allocation2 + $0x3c0] sm:$0xff] %v2637_v19  ;;  %vm1882_vm13 = vcmp.eq.s32.totalorder %v6169_v28, %v5203_v18  ;;  %vm2350_vm0 = vcmp.ne.s32.totalorder %v2208_v47, %v5783_v43 }
 0x22a   :  { %vm2170_vm7 = vmand %vm1914_vm14, %vm2042_vm3  ;;  %v2639_v2 = vsel %vm2169_vm4, %v6051_v8, -inf  ;;  %vm2009_vm14 = vcmp.ge.f32.partialorder %v5177_v51, -1.0  ;;  %vm1891_vm3 = vcmp.eq.s32.totalorder %v6208_v15, %v5197_v6 }
 0x22b   :  { %vm2510_vm9 = vmand %vm2168_vm5, %vm2382_vm2  ;;  %v2640_v48 = vsel %vm2170_vm7, %v6064_v17, -inf  ;;  %2767 = vst [vmem:[#allocation2 + $0x3d0] sm:$0xff] %v2639_v2  ;;  %v7139_v17 = vld [vmem:[#allocation68_spill] sm:$0xff] }
 0x22c   :  { %v2638_v30 = vsel %vm2510_vm9, %v6047_v46, -inf  ;;  %2768 = vst [vmem:[#allocation2 + $0x3d8] sm:$0xff] %v2640_v48  ;;  %vm2135_vm15 = vmand %vm1879_vm6, %vm2007_vm10  ;;  %vm2010_vm2 = vcmp.ge.f32.partialorder %v7139_v17, -1.0  ;;  %v2211_v46 = vadd.s32 200, %v5216_v34  ;;  %vm1892_vm6 = vcmp.eq.s32.totalorder %v6208_v15, %v5199_v0 }
 0x22d   :  { %2766 = vst [vmem:[#allocation2 + $0x3c8] sm:$0xff] %v2638_v30  ;;  %vm2136_vm1 = vmand %vm1880_vm8, %vm2008_vm12  ;;  %v2605_v8 = vsel %vm2135_vm15, %v5171_v10, -inf  ;;  %v7140_v10 = vld [vmem:[#allocation12_spill] sm:$0xff]  ;;  %vm1893_vm9 = vcmp.eq.s32.totalorder %v6208_v15, %v5201_v22  ;;  %vm2020_vm10 = vcmp.ge.f32.partialorder %v7141_v52, -1.0 }
 0x22e   :  { %vm2137_vm5 = vmand %vm1881_vm11, %vm2009_vm14  ;;  %2733 = vst [vmem:[#allocation2 + $0x2c0] sm:$0xff] %v2605_v8  ;;  %vm2019_vm8 = vcmp.ge.f32.partialorder %v7140_v10, -1.0  ;;  %vm1894_vm11 = vcmp.eq.s32.totalorder %v6208_v15, %v5203_v18  ;;  %vm2362_vm15 = vcmp.ne.s32.totalorder %v2211_v46, %v5783_v43 }
 0x22f   :  { %vm2138_vm4 = vmand %vm1882_vm13, %vm2010_vm2  ;;  %v2607_v58 = vsel %vm2137_vm5, %v5177_v51, -inf  ;;  %v7142_v51 = vld [vmem:[#allocation99_spill] sm:$0xff]  ;;  %vm1903_vm2 = vcmp.eq.s32.totalorder %v6245_v14, %v5197_v6 }
 0x230   :  { %vm2478_vm7 = vmand %vm2136_vm1, %vm2350_vm0  ;;  %v2608_v53 = vsel %vm2138_vm4, %v7139_v17, -inf  ;;  %2735 = vst [vmem:[#allocation2 + $0x2d0] sm:$0xff] %v2607_v58  ;;  %vm2021_vm13 = vcmp.ge.f32.partialorder %v7142_v51, -1.0  ;;  %vm2022_vm0 = vcmp.ge.f32.partialorder %v7143_v41, -1.0  ;;  %v1786_v39 = vpop.permute.xlu1 %1785 }
 0x231   :  { %v2606_v45 = vsel %vm2478_vm7, %v5174_v40, -inf  ;;  %2736 = vst [vmem:[#allocation2 + $0x2d8] sm:$0xff] %v2608_v53  ;;  %vm2147_vm12 = vmand %vm1891_vm3, %vm2019_vm8  ;;  %v2214_v40 = vadd.s32 224, %v5216_v34  ;;  %vm1904_vm3 = vcmp.eq.s32.totalorder %v6245_v14, %v5199_v0  ;;  %vm1905_vm7 = vcmp.eq.s32.totalorder %v6245_v14, %v5201_v22 }
 0x232   :  { %2734 = vst [vmem:[#allocation2 + $0x2c8] sm:$0xff] %v2606_v45  ;;  %vm2148_vm14 = vmand %vm1892_vm6, %vm2020_vm10  ;;  %v2617_v21 = vsel %vm2147_vm12, %v7140_v10, -inf  ;;  %vm2031_vm6 = vcmp.ge.f32.partialorder %v7144_v57, -1.0  ;;  %vm2032_vm8 = vcmp.ge.f32.partialorder %v7145_v60, -1.0 }
 0x233   :  { %vm2149_vm1 = vmand %vm1893_vm9, %vm2021_vm13  ;;  %2745 = vst [vmem:[#allocation2 + $0x320] sm:$0xff] %v2617_v21  ;;  %vm1906_vm9 = vcmp.eq.s32.totalorder %v6245_v14, %v5203_v18  ;;  %vm2374_vm12 = vcmp.ne.s32.totalorder %v2214_v40, %v5783_v43 }
 0x234   :  { %vm2150_vm5 = vmand %vm1894_vm11, %vm2022_vm0  ;;  %v2619_v9 = vsel %vm2149_vm1, %v7142_v51, -inf  ;;  %vm2033_vm11 = vcmp.ge.f32.partialorder %v7146_v42, -1.0  ;;  %vm1915_vm0 = vcmp.eq.s32.totalorder %v1786_v39, %v5197_v6 }
 0x235   :  { %vm2490_vm4 = vmand %vm2148_vm14, %vm2362_vm15  ;;  %v2620_v1 = vsel %vm2150_vm5, %v7143_v41, -inf  ;;  %2747 = vst [vmem:[#allocation2 + $0x330] sm:$0xff] %v2619_v9  ;;  %vm2034_vm15 = vcmp.ge.f32.partialorder %v7147_v61, -1.0 }
 0x236   :  { %v2618_v59 = vsel %vm2490_vm4, %v7141_v52, -inf  ;;  %2748 = vst [vmem:[#allocation2 + $0x338] sm:$0xff] %v2620_v1  ;;  %vm2159_vm10 = vmand %vm1903_vm2, %vm2031_vm6  ;;  %vm1916_vm2 = vcmp.eq.s32.totalorder %v1786_v39, %v5199_v0  ;;  %vm1917_vm4 = vcmp.eq.s32.totalorder %v1786_v39, %v5201_v22  ;;  %vm2044_vm6 = vcmp.ge.f32.partialorder %v6115_v54, -1.0 }
 0x237   :  { %2746 = vst [vmem:[#allocation2 + $0x328] sm:$0xff] %v2618_v59  ;;  %vm2160_vm13 = vmand %vm1904_vm3, %vm2032_vm8  ;;  %v2629_v37 = vsel %vm2159_vm10, %v7144_v57, -inf  ;;  %vm2043_vm3 = vcmp.ge.f32.partialorder %v6112_v49, -1.0  ;;  %vm2386_vm10 = vcmp.ne.s32.totalorder %v2217_v29, %v5783_v43 }
 0x238   :  { %vm2161_vm14 = vmand %vm1905_vm7, %vm2033_vm11  ;;  %2757 = vst [vmem:[#allocation2 + $0x380] sm:$0xff] %v2629_v37  ;;  %vm1918_vm7 = vcmp.eq.s32.totalorder %v1786_v39, %v5203_v18 }
 0x239   :  { %vm2162_vm1 = vmand %vm1906_vm9, %vm2034_vm15  ;;  %v2631_v35 = vsel %vm2161_vm14, %v7146_v42, -inf  ;;  %vm2045_vm9 = vcmp.ge.f32.partialorder %v6118_v44, -1.0 }
 0x23a   :  { %vm2502_vm5 = vmand %vm2160_vm13, %vm2374_vm12  ;;  %v2632_v24 = vsel %vm2162_vm1, %v7147_v61, -inf  ;;  %2759 = vst [vmem:[#allocation2 + $0x390] sm:$0xff] %v2631_v35  ;;  %vm2046_vm12 = vcmp.ge.f32.partialorder %v6127_v25, -1.0 }
 0x23b   :  { %v2630_v28 = vsel %vm2502_vm5, %v7145_v60, -inf  ;;  %2760 = vst [vmem:[#allocation2 + $0x398] sm:$0xff] %v2632_v24  ;;  %vm2171_vm8 = vmand %vm1915_vm0, %vm2043_vm3 }
 0x23c   :  { %2758 = vst [vmem:[#allocation2 + $0x388] sm:$0xff] %v2630_v28  ;;  %vm2172_vm11 = vmand %vm1916_vm2, %vm2044_vm6  ;;  %v2641_v6 = vsel %vm2171_vm8, %v6112_v49, -inf }
 0x23d   :  { %vm2173_vm13 = vmand %vm1917_vm4, %vm2045_vm9  ;;  %2769 = vst [vmem:[#allocation2 + $0x3e0] sm:$0xff] %v2641_v6 }
 0x23e   :  { %vm2174_vm15 = vmand %vm1918_vm7, %vm2046_vm12  ;;  %v2643_v18 = vsel %vm2173_vm13, %v6118_v44, -inf }
 0x23f   :  { %vm2514_vm14 = vmand %vm2172_vm11, %vm2386_vm10  ;;  %v2644_v34 = vsel %vm2174_vm15, %v6127_v25, -inf  ;;  %2771 = vst [vmem:[#allocation2 + $0x3f0] sm:$0xff] %v2643_v18 }
 0x240   :  { %v2642_v0 = vsel %vm2514_vm14, %v6115_v54, -inf  ;;  %2772 = vst [vmem:[#allocation2 + $0x3f8] sm:$0xff] %v2644_v34 }
 0x241   :  { %2770 = vst [vmem:[#allocation2 + $0x3e8] sm:$0xff] %v2642_v0 }
 0x242   :  { %3044 = dma.vmem_to_hbm [thread:$0]  %s3037_s15, 16384, %s3039_s18, [#allocation3], %s3112_s4, %s3112_s4, %s3113_s19  }
 0x243   :  { %3106 = dma.done.wait [#allocation3], 16384  }
 0x244   :  { %3107 = vsyncadd [#allocation3], 4294950912 }
 0x245   :  { %3049 = vsyncpa [#allocation3], 1 }

</bundles_post_ra>
